<compile_context>
chip_gen: v6e
topology: v6e:2x2x1
jax: 0.10.0
libtpu: 0.0.40
codegen_flags: <defaults>
</compile_context>

<pallas_src>
import functools

import jax
import jax.numpy as jnp
from jax.experimental import pallas as pl
from jax.experimental.pallas import tpu as pltpu


_VMEM = pl.BlockSpec(memory_space=pltpu.MemorySpace.VMEM)
_CPARAMS = pltpu.CompilerParams(vmem_limit_bytes=64 * 1024 * 1024)


# ----------------------------- Pallas kernels -----------------------------

def _mean_axis1_kernel(x_ref, o_ref, *, r):
    # mean over the small static middle axis of an (M, R, C) array -> (M, C)
    acc = x_ref[:, 0, :].astype(jnp.float32)
    for i in range(1, r):
        acc = acc + x_ref[:, i, :].astype(jnp.float32)
    o_ref[...] = (acc * (1.0 / float(r))).astype(o_ref.dtype)


def _bottleneck_kernel(x_ref, w1_ref, b1_ref, w2_ref, b2_ref, w3_ref, b3_ref,
                       mask_ref, o_ref, h1pad_ref, *, wo, cb, downsample):
    """Fused ResNet bottleneck (frozen BN folded into weights at init).

    x_ref:    (M, Cin) bf16, rows ordered as n*Ho*Wo + h*Wo + w
    w1_ref:   (Cin, Cb) bf16, or (Cin, Cb+Cout) bf16 when downsample (conv1 | shortcut)
    w2_ref:   (9, Cb, Cb) bf16   -- 3x3 conv taps, tap t = (dh, dw) row-major
    w3_ref:   (Cb, Cout) bf16
    b*_ref:   (1, .) f32
    mask_ref: (M, 9) f32 validity mask of neighbor (h+dh, w+dw) per tap
    h1pad_ref: (M + 16, Cb) f32 scratch (8-row zero halos around relu(conv1))
    """
    m = x_ref.shape[0]
    halo = 8  # aligned left halo; right halo >= wo + 1
    x = x_ref[...]

    # ---- conv1 1x1 (+ fused 1x1 downsample shortcut columns) + relu ----
    acc1 = jnp.dot(x, w1_ref[...], preferred_element_type=jnp.float32) + b1_ref[...]
    if downsample:
        h1 = jnp.maximum(acc1[:, :cb], 0.0)      # conv1 branch (relu)
        res = acc1[:, cb:]                       # stride-2 1x1 shortcut (no relu)
    else:
        h1 = jnp.maximum(acc1, 0.0)
        res = x.astype(jnp.float32)              # identity shortcut

    # ---- stash relu(conv1) in the zero-padded scratch (in-kernel im2col base) ----
    h1pad_ref[...] = jnp.zeros_like(h1pad_ref)
    h1pad_ref[pl.ds(halo, m), :] = h1

    # ---- conv2 3x3 stride-1 pad-1: 9 shifted/masked matmuls, f32 accumulation ----
    acc2 = None
    t = 0
    for dh in (-1, 0, 1):
        for dw in (-1, 0, 1):
            off = dh * wo + dw
            sh = h1pad_ref[pl.ds(halo + off, m), :]          # (M, Cb) f32
            if dh != 0 or dw != 0:
                sh = sh * mask_ref[:, t:t + 1]               # zero out-of-image rows
            contrib = jnp.dot(sh.astype(jnp.bfloat16), w2_ref[t],
                              preferred_element_type=jnp.float32)
            acc2 = contrib if acc2 is None else acc2 + contrib
            t += 1
    h2 = jnp.maximum(acc2 + b2_ref[...], 0.0).astype(jnp.bfloat16)

    # ---- conv3 1x1 + residual + relu ----
    acc3 = jnp.dot(h2, w3_ref[...], preferred_element_type=jnp.float32)
    o_ref[...] = jnp.maximum(acc3 + b3_ref[...] + res, 0.0).astype(o_ref.dtype)


def _tail_kernel(h_ref, pool_ref, w_ref, b_ref, label_ref, loss_ref):
    # global average pool (pooling-matrix matmul) + linear classifier + softmax xent
    pooled = jnp.dot(pool_ref[...], h_ref[...],
                     preferred_element_type=jnp.float32)                 # (N, C)
    logits = jnp.dot(pooled.astype(jnp.bfloat16), w_ref[...],
                     preferred_element_type=jnp.float32) + b_ref[...]    # (N, K)
    # stable log-softmax cross entropy (zero-label terms are exactly 0, no 0*inf)
    z = logits - jnp.max(logits, axis=1, keepdims=True)
    logp = z - jnp.log(jnp.sum(jnp.exp(z), axis=1, keepdims=True))
    per_row = jnp.sum(-label_ref[...] * logp, axis=1, keepdims=True)     # (N, 1)
    loss_ref[...] = jnp.mean(per_row, axis=0, keepdims=True) / 10.0      # (1, 1)


# ----------------------------- pallas_call wrappers -----------------------------

def mean_axis1(x, out_dtype):
    m, r, c = x.shape
    return pl.pallas_call(
        functools.partial(_mean_axis1_kernel, r=r),
        in_specs=[_VMEM],
        out_specs=_VMEM,
        out_shape=jax.ShapeDtypeStruct((m, c), out_dtype),
        compiler_params=_CPARAMS,
    )(x)


def bottleneck_block(x2d, p, masks, wo, downsample):
    m = x2d.shape[0]
    cb = p['w2'].shape[-1]
    cout = p['w3'].shape[-1]
    kern = functools.partial(_bottleneck_kernel, wo=wo, cb=cb, downsample=downsample)
    return pl.pallas_call(
        kern,
        in_specs=[_VMEM] * 8,
        out_specs=_VMEM,
        out_shape=jax.ShapeDtypeStruct((m, cout), jnp.bfloat16),
        scratch_shapes=[pltpu.VMEM((m + 16, cb), jnp.float32)],
        compiler_params=_CPARAMS,
    )(x2d, p['w1'], p['b1'], p['w2'], p['b2'], p['w3'], p['b3'], masks)


def tail_loss(h2d, pool_mat, cls_w, cls_b, label):
    return pl.pallas_call(
        _tail_kernel,
        in_specs=[_VMEM] * 5,
        out_specs=_VMEM,
        out_shape=jax.ShapeDtypeStruct((1, 1), jnp.float32),
        compiler_params=_CPARAMS,
    )(h2d, pool_mat, cls_w, cls_b, label)


# ----------------------------- JAX glue -----------------------------

def _conv3x3_masks(n, ho, wo):
    # (M, 9) f32: mask[r, t] = 1 if neighbor (h+dh, w+dw) of pixel r is inside the image
    r = jnp.arange(n * ho * wo, dtype=jnp.int32)
    hh = (r // wo) % ho
    ww = r % wo
    cols = []
    for dh in (-1, 0, 1):
        for dw in (-1, 0, 1):
            cols.append((hh + dh >= 0) & (hh + dh < ho) & (ww + dw >= 0) & (ww + dw < wo))
    return jnp.stack(cols, axis=1).astype(jnp.float32)


@functools.partial(jax.jit, static_argnames=("num_cls",))
def multilabel_cls_forward(params, x_nchw, labels_list, num_cls):
    # ----- label one-hot + normalization (data-dependent scatter over a Python list; XLA glue) -----
    onehots = [jnp.zeros((num_cls,), jnp.float32).at[l - 1].set(1.0) for l in labels_list]
    label = jnp.stack(onehots, axis=0)
    label = label / jnp.sum(label, axis=1, keepdims=True)

    # ----- NCHW -> NHWC (one XLA layout pass over the input) -----
    x = jnp.transpose(x_nchw, (0, 2, 3, 1)).astype(jnp.float32)
    n, h, w, c = x.shape
    rh, rw = h // 7, w // 7
    # TODO(synk): AdaptiveAvgPool2d(7) assumes H, W are multiples of 7 (true for 14x14);
    # PyTorch also handles non-divisible sizes with uneven bins.

    # ----- AdaptiveAvgPool2d(7): two lane-contiguous mean reductions, no 6-D transpose -----
    pa = mean_axis1(x.reshape(n * h * 7, rw, c), jnp.float32)       # pool along W
    pb = mean_axis1(pa.reshape(n * 7, rh, 7 * c), jnp.bfloat16)     # pool along H
    xp = pb.reshape(n, 7, 7, c)

    # ----- ResNetHead res5: 3 bottlenecks; block0 has stride 2 (stride_in_1x1) + downsample -----
    xs = xp[:, ::2, ::2, :]                      # 1x1 stride-2 pick (tiny XLA slice)
    ho, wo = xs.shape[1], xs.shape[2]
    a0 = xs.reshape(n * ho * wo, c)
    masks = _conv3x3_masks(n, ho, wo)
    y = bottleneck_block(a0, params['block0'], masks, wo, downsample=True)
    y = bottleneck_block(y, params['block1'], masks, wo, downsample=False)
    y = bottleneck_block(y, params['block2'], masks, wo, downsample=False)

    # ----- AdaptiveAvgPool2d(1) + flatten + classifier + softmax xent, one fused kernel -----
    hw = ho * wo
    pool_mat = (jnp.kron(jnp.eye(n, dtype=jnp.float32),
                         jnp.ones((1, hw), jnp.float32)) / hw).astype(jnp.bfloat16)
    loss = tail_loss(y, pool_mat, params['cls_w'], params['cls_b'], label)
    return {'multi-label-loss': loss[0, 0]}


# ----------------------------- deterministic parameter init (BN folded here) -----------------------------

def _conv_w(key, shape, std=0.01):
    return std * jax.random.normal(key, shape, dtype=jnp.float32)


def _bn(key, cch):
    k1, k2 = jax.random.split(key)
    scale = 1.0 + 0.1 * jax.random.normal(k1, (cch,), dtype=jnp.float32)
    bias = 0.01 * jax.random.normal(k2, (cch,), dtype=jnp.float32)
    return scale, bias


def init_block(key, c_in, c_b, c_out, downsample):
    """Bottleneck params with frozen-BN scale folded into the (bf16) weights at init."""
    ks = jax.random.split(key, 8)
    w1 = _conv_w(ks[0], (c_in, c_b));      s1, b1 = _bn(ks[1], c_b)
    w2 = _conv_w(ks[2], (9, c_b, c_b));    s2, b2 = _bn(ks[3], c_b)   # 3x3 taps, (dh,dw) row-major
    w3 = _conv_w(ks[4], (c_b, c_out));     s3, b3 = _bn(ks[5], c_out)
    p = {
        'w2': (w2 * s2[None, None, :]).astype(jnp.bfloat16), 'b2': b2.reshape(1, -1),
        'w3': (w3 * s3[None, :]).astype(jnp.bfloat16),       'b3': b3.reshape(1, -1),
    }
    if downsample:
        wd = _conv_w(ks[6], (c_in, c_out)); sd, bd = _bn(ks[7], c_out)
        # concatenate conv1 and shortcut columns -> one matmul on the shared LHS
        p['w1'] = jnp.concatenate([w1 * s1[None, :], wd * sd[None, :]], axis=1).astype(jnp.bfloat16)
        p['b1'] = jnp.concatenate([b1, bd]).reshape(1, -1)
    else:
        p['w1'] = (w1 * s1[None, :]).astype(jnp.bfloat16)
        p['b1'] = b1.reshape(1, -1)
    return p


if __name__ == "__main__":
    # Scaled-down smoke-test config (real model: in=1024, bottleneck=512, out=2048):
    C_IN, C_B, C_OUT, NUM_CLS = 32, 16, 64, 8

    key = jax.random.PRNGKey(0)
    kx, kp = jax.random.split(key)
    x = jax.random.normal(kx, (2, C_IN, 14, 14), dtype=jnp.float32)   # NCHW, like PyTorch

    kb0, kb1, kb2, kc = jax.random.split(kp, 4)
    params = {
        'block0': init_block(kb0, C_IN, C_B, C_OUT, True),
        'block1': init_block(kb1, C_OUT, C_B, C_OUT, False),
        'block2': init_block(kb2, C_OUT, C_B, C_OUT, False),
        # nn.Linear: weight ~ N(0, 0.01), bias = 0 (matches module init); stored (in, out)
        'cls_w': (0.01 * jax.random.normal(kc, (C_OUT, NUM_CLS), dtype=jnp.float32)).astype(jnp.bfloat16),
        'cls_b': jnp.zeros((1, NUM_CLS), jnp.float32),
    }

    # labels are 1-indexed class ids, like the PyTorch scatter_(0, labels - 1, 1.0)
    labels_list = [jnp.array([1, 3, 5], dtype=jnp.int32),
                   jnp.array([2, 8], dtype=jnp.int32)]

    out = multilabel_cls_forward(params, x, labels_list, num_cls=NUM_CLS)
    jax.block_until_ready(out['multi-label-loss'])
    print("KERNEL_OK")
</pallas_src>

<mosaic_0001>
module attributes {stable_mosaic.version = 11 : i64} {
  func.func @_mean_axis1_kernel(%arg0: memref<196x2x32xf32, #tpu.memory_space<vmem>>, %arg1: memref<196x32xf32, #tpu.memory_space<vmem>>) attributes {dimension_semantics = [], scalar_prefetch = 0 : i64, scratch_operands = 0 : i64, tpu.core_type = #tpu.core_type<tc>} {
    %c0 = arith.constant 0 : index
    %c0_0 = arith.constant 0 : index
    %c0_1 = arith.constant 0 : index
    %0 = vector.load %arg0[%c0, %c0_0, %c0_1] : memref<196x2x32xf32, #tpu.memory_space<vmem>>, vector<196x1x32xf32>
    %1 = vector.shape_cast %0 : vector<196x1x32xf32> to vector<196x32xf32>
    %c0_2 = arith.constant 0 : index
    %c1 = arith.constant 1 : index
    %c0_3 = arith.constant 0 : index
    %2 = vector.load %arg0[%c0_2, %c1, %c0_3] : memref<196x2x32xf32, #tpu.memory_space<vmem>>, vector<196x1x32xf32>
    %3 = vector.shape_cast %2 : vector<196x1x32xf32> to vector<196x32xf32>
    %4 = arith.addf %1, %3 : vector<196x32xf32>
    %cst = arith.constant 5.000000e-01 : f32
    %5 = vector.broadcast %cst : f32 to vector<196x32xf32>
    %6 = arith.mulf %4, %5 : vector<196x32xf32>
    %c0_4 = arith.constant 0 : index
    %c0_5 = arith.constant 0 : index
    %7 = vector.load %arg1[%c0_4, %c0_5] : memref<196x32xf32, #tpu.memory_space<vmem>>, vector<196x32xf32>
    tpu.vector_store %arg1[%c0_4, %c0_5], %6 {strides = array<i32>} : memref<196x32xf32, #tpu.memory_space<vmem>>, vector<196x32xf32>,
    return
  }
}

module attributes {stable_mosaic.version = 11 : i64} {
  func.func @_mean_axis1_kernel(%arg0: memref<14x2x224xf32, #tpu.memory_space<vmem>>, %arg1: memref<14x224xbf16, #tpu.memory_space<vmem>>) attributes {dimension_semantics = [], scalar_prefetch = 0 : i64, scratch_operands = 0 : i64, tpu.core_type = #tpu.core_type<tc>} {
    %c0 = arith.constant 0 : index
    %c0_0 = arith.constant 0 : index
    %c0_1 = arith.constant 0 : index
    %0 = vector.load %arg0[%c0, %c0_0, %c0_1] : memref<14x2x224xf32, #tpu.memory_space<vmem>>, vector<14x1x224xf32>
    %1 = vector.shape_cast %0 : vector<14x1x224xf32> to vector<14x224xf32>
    %c0_2 = arith.constant 0 : index
    %c1 = arith.constant 1 : index
    %c0_3 = arith.constant 0 : index
    %2 = vector.load %arg0[%c0_2, %c1, %c0_3] : memref<14x2x224xf32, #tpu.memory_space<vmem>>, vector<14x1x224xf32>
    %3 = vector.shape_cast %2 : vector<14x1x224xf32> to vector<14x224xf32>
    %4 = arith.addf %1, %3 : vector<14x224xf32>
    %cst = arith.constant 5.000000e-01 : f32
    %5 = vector.broadcast %cst : f32 to vector<14x224xf32>
    %6 = arith.mulf %4, %5 : vector<14x224xf32>
    %7 = arith.truncf %6 : vector<14x224xf32> to vector<14x224xbf16>
    %c0_4 = arith.constant 0 : index
    %c0_5 = arith.constant 0 : index
    %8 = vector.load %arg1[%c0_4, %c0_5] : memref<14x224xbf16, #tpu.memory_space<vmem>>, vector<14x224xbf16>
    tpu.vector_store %arg1[%c0_4, %c0_5], %7 {strides = array<i32>} : memref<14x224xbf16, #tpu.memory_space<vmem>>, vector<14x224xbf16>,
    return
  }
}

module attributes {stable_mosaic.version = 11 : i64} {
  func.func @_bottleneck_kernel(%arg0: memref<32x32xbf16, #tpu.memory_space<vmem>>, %arg1: memref<32x80xbf16, #tpu.memory_space<vmem>>, %arg2: memref<1x80xf32, #tpu.memory_space<vmem>>, %arg3: memref<9x16x16xbf16, #tpu.memory_space<vmem>>, %arg4: memref<1x16xf32, #tpu.memory_space<vmem>>, %arg5: memref<16x64xbf16, #tpu.memory_space<vmem>>, %arg6: memref<1x64xf32, #tpu.memory_space<vmem>>, %arg7: memref<32x9xf32, #tpu.memory_space<vmem>>, %arg8: memref<32x64xbf16, #tpu.memory_space<vmem>>, %arg9: memref<48x16xf32, #tpu.memory_space<vmem>>) attributes {dimension_semantics = [], scalar_prefetch = 0 : i64, scratch_operands = 1 : i64, tpu.core_type = #tpu.core_type<tc>} {
    %c0 = arith.constant 0 : index
    %c0_0 = arith.constant 0 : index
    %0 = vector.load %arg0[%c0, %c0_0] : memref<32x32xbf16, #tpu.memory_space<vmem>>, vector<32x32xbf16>
    %c0_1 = arith.constant 0 : index
    %c0_2 = arith.constant 0 : index
    %1 = vector.load %arg1[%c0_1, %c0_2] : memref<32x80xbf16, #tpu.memory_space<vmem>>, vector<32x80xbf16>
    %cst = arith.constant dense<0.000000e+00> : vector<32x80xf32>
    %2 = tpu.matmul %0, %1, %cst {dimension_numbers = #tpu.dot_dimension_numbers<[1], [0], [0], [1], [0, 0, 1, 1], [], []>} : vector<32x32xbf16>, vector<32x80xbf16>, vector<32x80xf32> -> vector<32x80xf32>
    %c0_3 = arith.constant 0 : index
    %c0_4 = arith.constant 0 : index
    %3 = vector.load %arg2[%c0_3, %c0_4] : memref<1x80xf32, #tpu.memory_space<vmem>>, vector<1x80xf32>
    %4 = vector.broadcast %3 : vector<1x80xf32> to vector<32x80xf32>
    %5 = arith.addf %2, %4 : vector<32x80xf32>
    %6 = vector.extract_strided_slice %5 {offsets = [0, 0], sizes = [32, 16], strides = [1, 1]} : vector<32x80xf32> to vector<32x16xf32>
    %cst_5 = arith.constant 0.000000e+00 : f32
    %7 = vector.broadcast %cst_5 : f32 to vector<32x16xf32>
    %8 = arith.maximumf %6, %7 : vector<32x16xf32>
    %9 = vector.extract_strided_slice %5 {offsets = [0, 16], sizes = [32, 64], strides = [1, 1]} : vector<32x80xf32> to vector<32x64xf32>
    %cst_6 = arith.constant 0.000000e+00 : f32
    %10 = vector.broadcast %cst_6 : f32 to vector<48x16xf32>
    %c0_7 = arith.constant 0 : index
    %c0_8 = arith.constant 0 : index
    %11 = vector.load %arg9[%c0_7, %c0_8] : memref<48x16xf32, #tpu.memory_space<vmem>>, vector<48x16xf32>
    tpu.vector_store %arg9[%c0_7, %c0_8], %10 {strides = array<i32>} : memref<48x16xf32, #tpu.memory_space<vmem>>, vector<48x16xf32>,
    %c8 = arith.constant 8 : index
    %c0_9 = arith.constant 0 : index
    %12 = vector.load %arg9[%c8, %c0_9] : memref<48x16xf32, #tpu.memory_space<vmem>>, vector<32x16xf32>
    tpu.vector_store %arg9[%c8, %c0_9], %8 {strides = array<i32>} : memref<48x16xf32, #tpu.memory_space<vmem>>, vector<32x16xf32>,
    %c3 = arith.constant 3 : index
    %c0_10 = arith.constant 0 : index
    %13 = vector.load %arg9[%c3, %c0_10] : memref<48x16xf32, #tpu.memory_space<vmem>>, vector<32x16xf32>
    %c0_11 = arith.constant 0 : index
    %c0_12 = arith.constant 0 : index
    %14 = vector.load %arg7[%c0_11, %c0_12] : memref<32x9xf32, #tpu.memory_space<vmem>>, vector<32x1xf32>
    %15 = vector.broadcast %14 : vector<32x1xf32> to vector<32x16xf32>
    %16 = arith.mulf %13, %15 : vector<32x16xf32>
    %17 = arith.truncf %16 : vector<32x16xf32> to vector<32x16xbf16>
    %c0_13 = arith.constant 0 : index
    %c0_14 = arith.constant 0 : index
    %c0_15 = arith.constant 0 : index
    %18 = vector.load %arg3[%c0_13, %c0_14, %c0_15] : memref<9x16x16xbf16, #tpu.memory_space<vmem>>, vector<1x16x16xbf16>
    %19 = vector.shape_cast %18 : vector<1x16x16xbf16> to vector<16x16xbf16>
    %cst_16 = arith.constant dense<0.000000e+00> : vector<32x16xf32>
    %20 = tpu.matmul %17, %19, %cst_16 {dimension_numbers = #tpu.dot_dimension_numbers<[1], [0], [0], [1], [0, 0, 1, 1], [], []>} : vector<32x16xbf16>, vector<16x16xbf16>, vector<32x16xf32> -> vector<32x16xf32>
    %c4 = arith.constant 4 : index
    %c0_17 = arith.constant 0 : index
    %21 = vector.load %arg9[%c4, %c0_17] : memref<48x16xf32, #tpu.memory_space<vmem>>, vector<32x16xf32>
    %c0_18 = arith.constant 0 : index
    %c1 = arith.constant 1 : index
    %22 = vector.load %arg7[%c0_18, %c1] : memref<32x9xf32, #tpu.memory_space<vmem>>, vector<32x1xf32>
    %23 = vector.broadcast %22 : vector<32x1xf32> to vector<32x16xf32>
    %24 = arith.mulf %21, %23 : vector<32x16xf32>
    %25 = arith.truncf %24 : vector<32x16xf32> to vector<32x16xbf16>
    %c1_19 = arith.constant 1 : index
    %c0_20 = arith.constant 0 : index
    %c0_21 = arith.constant 0 : index
    %26 = vector.load %arg3[%c1_19, %c0_20, %c0_21] : memref<9x16x16xbf16, #tpu.memory_space<vmem>>, vector<1x16x16xbf16>
    %27 = vector.shape_cast %26 : vector<1x16x16xbf16> to vector<16x16xbf16>
    %cst_22 = arith.constant dense<0.000000e+00> : vector<32x16xf32>
    %28 = tpu.matmul %25, %27, %cst_22 {dimension_numbers = #tpu.dot_dimension_numbers<[1], [0], [0], [1], [0, 0, 1, 1], [], []>} : vector<32x16xbf16>, vector<16x16xbf16>, vector<32x16xf32> -> vector<32x16xf32>
    %29 = arith.addf %20, %28 : vector<32x16xf32>
    %c5 = arith.constant 5 : index
    %c0_23 = arith.constant 0 : index
    %30 = vector.load %arg9[%c5, %c0_23] : memref<48x16xf32, #tpu.memory_space<vmem>>, vector<32x16xf32>
    %c0_24 = arith.constant 0 : index
    %c2 = arith.constant 2 : index
    %31 = vector.load %arg7[%c0_24, %c2] : memref<32x9xf32, #tpu.memory_space<vmem>>, vector<32x1xf32>
    %32 = vector.broadcast %31 : vector<32x1xf32> to vector<32x16xf32>
    %33 = arith.mulf %30, %32 : vector<32x16xf32>
    %34 = arith.truncf %33 : vector<32x16xf32> to vector<32x16xbf16>
    %c2_25 = arith.constant 2 : index
    %c0_26 = arith.constant 0 : index
    %c0_27 = arith.constant 0 : index
    %35 = vector.load %arg3[%c2_25, %c0_26, %c0_27] : memref<9x16x16xbf16, #tpu.memory_space<vmem>>, vector<1x16x16xbf16>
    %36 = vector.shape_cast %35 : vector<1x16x16xbf16> to vector<16x16xbf16>
    %cst_28 = arith.constant dense<0.000000e+00> : vector<32x16xf32>
    %37 = tpu.matmul %34, %36, %cst_28 {dimension_numbers = #tpu.dot_dimension_numbers<[1], [0], [0], [1], [0, 0, 1, 1], [], []>} : vector<32x16xbf16>, vector<16x16xbf16>, vector<32x16xf32> -> vector<32x16xf32>
    %38 = arith.addf %29, %37 : vector<32x16xf32>
    %c7 = arith.constant 7 : index
    %c0_29 = arith.constant 0 : index
    %39 = vector.load %arg9[%c7, %c0_29] : memref<48x16xf32, #tpu.memory_space<vmem>>, vector<32x16xf32>
    %c0_30 = arith.constant 0 : index
    %c3_31 = arith.constant 3 : index
    %40 = vector.load %arg7[%c0_30, %c3_31] : memref<32x9xf32, #tpu.memory_space<vmem>>, vector<32x1xf32>
    %41 = vector.broadcast %40 : vector<32x1xf32> to vector<32x16xf32>
    %42 = arith.mulf %39, %41 : vector<32x16xf32>
    %43 = arith.truncf %42 : vector<32x16xf32> to vector<32x16xbf16>
    %c3_32 = arith.constant 3 : index
    %c0_33 = arith.constant 0 : index
    %c0_34 = arith.constant 0 : index
    %44 = vector.load %arg3[%c3_32, %c0_33, %c0_34] : memref<9x16x16xbf16, #tpu.memory_space<vmem>>, vector<1x16x16xbf16>
    %45 = vector.shape_cast %44 : vector<1x16x16xbf16> to vector<16x16xbf16>
    %cst_35 = arith.constant dense<0.000000e+00> : vector<32x16xf32>
    %46 = tpu.matmul %43, %45, %cst_35 {dimension_numbers = #tpu.dot_dimension_numbers<[1], [0], [0], [1], [0, 0, 1, 1], [], []>} : vector<32x16xbf16>, vector<16x16xbf16>, vector<32x16xf32> -> vector<32x16xf32>
    %47 = arith.addf %38, %46 : vector<32x16xf32>
    %c8_36 = arith.constant 8 : index
    %c0_37 = arith.constant 0 : index
    %48 = vector.load %arg9[%c8_36, %c0_37] : memref<48x16xf32, #tpu.memory_space<vmem>>, vector<32x16xf32>
    %49 = arith.truncf %48 : vector<32x16xf32> to vector<32x16xbf16>
    %c4_38 = arith.constant 4 : index
    %c0_39 = arith.constant 0 : index
    %c0_40 = arith.constant 0 : index
    %50 = vector.load %arg3[%c4_38, %c0_39, %c0_40] : memref<9x16x16xbf16, #tpu.memory_space<vmem>>, vector<1x16x16xbf16>
    %51 = vector.shape_cast %50 : vector<1x16x16xbf16> to vector<16x16xbf16>
    %cst_41 = arith.constant dense<0.000000e+00> : vector<32x16xf32>
    %52 = tpu.matmul %49, %51, %cst_41 {dimension_numbers = #tpu.dot_dimension_numbers<[1], [0], [0], [1], [0, 0, 1, 1], [], []>} : vector<32x16xbf16>, vector<16x16xbf16>, vector<32x16xf32> -> vector<32x16xf32>
    %53 = arith.addf %47, %52 : vector<32x16xf32>
    %c9 = arith.constant 9 : index
    %c0_42 = arith.constant 0 : index
    %54 = vector.load %arg9[%c9, %c0_42] : memref<48x16xf32, #tpu.memory_space<vmem>>, vector<32x16xf32>
    %c0_43 = arith.constant 0 : index
    %c5_44 = arith.constant 5 : index
    %55 = vector.load %arg7[%c0_43, %c5_44] : memref<32x9xf32, #tpu.memory_space<vmem>>, vector<32x1xf32>
    %56 = vector.broadcast %55 : vector<32x1xf32> to vector<32x16xf32>
    %57 = arith.mulf %54, %56 : vector<32x16xf32>
    %58 = arith.truncf %57 : vector<32x16xf32> to vector<32x16xbf16>
    %c5_45 = arith.constant 5 : index
    %c0_46 = arith.constant 0 : index
    %c0_47 = arith.constant 0 : index
    %59 = vector.load %arg3[%c5_45, %c0_46, %c0_47] : memref<9x16x16xbf16, #tpu.memory_space<vmem>>, vector<1x16x16xbf16>
    %60 = vector.shape_cast %59 : vector<1x16x16xbf16> to vector<16x16xbf16>
    %cst_48 = arith.constant dense<0.000000e+00> : vector<32x16xf32>
    %61 = tpu.matmul %58, %60, %cst_48 {dimension_numbers = #tpu.dot_dimension_numbers<[1], [0], [0], [1], [0, 0, 1, 1], [], []>} : vector<32x16xbf16>, vector<16x16xbf16>, vector<32x16xf32> -> vector<32x16xf32>
    %62 = arith.addf %53, %61 : vector<32x16xf32>
    %c11 = arith.constant 11 : index
    %c0_49 = arith.constant 0 : index
    %63 = vector.load %arg9[%c11, %c0_49] : memref<48x16xf32, #tpu.memory_space<vmem>>, vector<32x16xf32>
    %c0_50 = arith.constant 0 : index
    %c6 = arith.constant 6 : index
    %64 = vector.load %arg7[%c0_50, %c6] : memref<32x9xf32, #tpu.memory_space<vmem>>, vector<32x1xf32>
    %65 = vector.broadcast %64 : vector<32x1xf32> to vector<32x16xf32>
    %66 = arith.mulf %63, %65 : vector<32x16xf32>
    %67 = arith.truncf %66 : vector<32x16xf32> to vector<32x16xbf16>
    %c6_51 = arith.constant 6 : index
    %c0_52 = arith.constant 0 : index
    %c0_53 = arith.constant 0 : index
    %68 = vector.load %arg3[%c6_51, %c0_52, %c0_53] : memref<9x16x16xbf16, #tpu.memory_space<vmem>>, vector<1x16x16xbf16>
    %69 = vector.shape_cast %68 : vector<1x16x16xbf16> to vector<16x16xbf16>
    %cst_54 = arith.constant dense<0.000000e+00> : vector<32x16xf32>
    %70 = tpu.matmul %67, %69, %cst_54 {dimension_numbers = #tpu.dot_dimension_numbers<[1], [0], [0], [1], [0, 0, 1, 1], [], []>} : vector<32x16xbf16>, vector<16x16xbf16>, vector<32x16xf32> -> vector<32x16xf32>
    %71 = arith.addf %62, %70 : vector<32x16xf32>
    %c12 = arith.constant 12 : index
    %c0_55 = arith.constant 0 : index
    %72 = vector.load %arg9[%c12, %c0_55] : memref<48x16xf32, #tpu.memory_space<vmem>>, vector<32x16xf32>
    %c0_56 = arith.constant 0 : index
    %c7_57 = arith.constant 7 : index
    %73 = vector.load %arg7[%c0_56, %c7_57] : memref<32x9xf32, #tpu.memory_space<vmem>>, vector<32x1xf32>
    %74 = vector.broadcast %73 : vector<32x1xf32> to vector<32x16xf32>
    %75 = arith.mulf %72, %74 : vector<32x16xf32>
    %76 = arith.truncf %75 : vector<32x16xf32> to vector<32x16xbf16>
    %c7_58 = arith.constant 7 : index
    %c0_59 = arith.constant 0 : index
    %c0_60 = arith.constant 0 : index
    %77 = vector.load %arg3[%c7_58, %c0_59, %c0_60] : memref<9x16x16xbf16, #tpu.memory_space<vmem>>, vector<1x16x16xbf16>
    %78 = vector.shape_cast %77 : vector<1x16x16xbf16> to vector<16x16xbf16>
    %cst_61 = arith.constant dense<0.000000e+00> : vector<32x16xf32>
    %79 = tpu.matmul %76, %78, %cst_61 {dimension_numbers = #tpu.dot_dimension_numbers<[1], [0], [0], [1], [0, 0, 1, 1], [], []>} : vector<32x16xbf16>, vector<16x16xbf16>, vector<32x16xf32> -> vector<32x16xf32>
    %80 = arith.addf %71, %79 : vector<32x16xf32>
    %c13 = arith.constant 13 : index
    %c0_62 = arith.constant 0 : index
    %81 = vector.load %arg9[%c13, %c0_62] : memref<48x16xf32, #tpu.memory_space<vmem>>, vector<32x16xf32>
    %c0_63 = arith.constant 0 : index
    %c8_64 = arith.constant 8 : index
    %82 = vector.load %arg7[%c0_63, %c8_64] : memref<32x9xf32, #tpu.memory_space<vmem>>, vector<32x1xf32>
    %83 = vector.broadcast %82 : vector<32x1xf32> to vector<32x16xf32>
    %84 = arith.mulf %81, %83 : vector<32x16xf32>
    %85 = arith.truncf %84 : vector<32x16xf32> to vector<32x16xbf16>
    %c8_65 = arith.constant 8 : index
    %c0_66 = arith.constant 0 : index
    %c0_67 = arith.constant 0 : index
    %86 = vector.load %arg3[%c8_65, %c0_66, %c0_67] : memref<9x16x16xbf16, #tpu.memory_space<vmem>>, vector<1x16x16xbf16>
    %87 = vector.shape_cast %86 : vector<1x16x16xbf16> to vector<16x16xbf16>
    %cst_68 = arith.constant dense<0.000000e+00> : vector<32x16xf32>
    %88 = tpu.matmul %85, %87, %cst_68 {dimension_numbers = #tpu.dot_dimension_numbers<[1], [0], [0], [1], [0, 0, 1, 1], [], []>} : vector<32x16xbf16>, vector<16x16xbf16>, vector<32x16xf32> -> vector<32x16xf32>
    %89 = arith.addf %80, %88 : vector<32x16xf32>
    %c0_69 = arith.constant 0 : index
    %c0_70 = arith.constant 0 : index
    %90 = vector.load %arg4[%c0_69, %c0_70] : memref<1x16xf32, #tpu.memory_space<vmem>>, vector<1x16xf32>
    %91 = vector.broadcast %90 : vector<1x16xf32> to vector<32x16xf32>
    %92 = arith.addf %89, %91 : vector<32x16xf32>
    %cst_71 = arith.constant 0.000000e+00 : f32
    %93 = vector.broadcast %cst_71 : f32 to vector<32x16xf32>
    %94 = arith.maximumf %92, %93 : vector<32x16xf32>
    %95 = arith.truncf %94 : vector<32x16xf32> to vector<32x16xbf16>
    %c0_72 = arith.constant 0 : index
    %c0_73 = arith.constant 0 : index
    %96 = vector.load %arg5[%c0_72, %c0_73] : memref<16x64xbf16, #tpu.memory_space<vmem>>, vector<16x64xbf16>
    %cst_74 = arith.constant dense<0.000000e+00> : vector<32x64xf32>
    %97 = tpu.matmul %95, %96, %cst_74 {dimension_numbers = #tpu.dot_dimension_numbers<[1], [0], [0], [1], [0, 0, 1, 1], [], []>} : vector<32x16xbf16>, vector<16x64xbf16>, vector<32x64xf32> -> vector<32x64xf32>
    %c0_75 = arith.constant 0 : index
    %c0_76 = arith.constant 0 : index
    %98 = vector.load %arg6[%c0_75, %c0_76] : memref<1x64xf32, #tpu.memory_space<vmem>>, vector<1x64xf32>
    %99 = vector.broadcast %98 : vector<1x64xf32> to vector<32x64xf32>
    %100 = arith.addf %97, %99 : vector<32x64xf32>
    %101 = arith.addf %100, %9 : vector<32x64xf32>
    %cst_77 = arith.constant 0.000000e+00 : f32
    %102 = vector.broadcast %cst_77 : f32 to vector<32x64xf32>
    %103 = arith.maximumf %101, %102 : vector<32x64xf32>
    %104 = arith.truncf %103 : vector<32x64xf32> to vector<32x64xbf16>
    %c0_78 = arith.constant 0 : index
    %c0_79 = arith.constant 0 : index
    %105 = vector.load %arg8[%c0_78, %c0_79] : memref<32x64xbf16, #tpu.memory_space<vmem>>, vector<32x64xbf16>
    tpu.vector_store %arg8[%c0_78, %c0_79], %104 {strides = array<i32>} : memref<32x64xbf16, #tpu.memory_space<vmem>>, vector<32x64xbf16>,
    return
  }
}

module attributes {stable_mosaic.version = 11 : i64} {
  func.func @_bottleneck_kernel(%arg0: memref<32x64xbf16, #tpu.memory_space<vmem>>, %arg1: memref<64x16xbf16, #tpu.memory_space<vmem>>, %arg2: memref<1x16xf32, #tpu.memory_space<vmem>>, %arg3: memref<9x16x16xbf16, #tpu.memory_space<vmem>>, %arg4: memref<1x16xf32, #tpu.memory_space<vmem>>, %arg5: memref<16x64xbf16, #tpu.memory_space<vmem>>, %arg6: memref<1x64xf32, #tpu.memory_space<vmem>>, %arg7: memref<32x9xf32, #tpu.memory_space<vmem>>, %arg8: memref<32x64xbf16, #tpu.memory_space<vmem>>, %arg9: memref<48x16xf32, #tpu.memory_space<vmem>>) attributes {dimension_semantics = [], scalar_prefetch = 0 : i64, scratch_operands = 1 : i64, tpu.core_type = #tpu.core_type<tc>} {
    %c0 = arith.constant 0 : index
    %c0_0 = arith.constant 0 : index
    %0 = vector.load %arg0[%c0, %c0_0] : memref<32x64xbf16, #tpu.memory_space<vmem>>, vector<32x64xbf16>
    %c0_1 = arith.constant 0 : index
    %c0_2 = arith.constant 0 : index
    %1 = vector.load %arg1[%c0_1, %c0_2] : memref<64x16xbf16, #tpu.memory_space<vmem>>, vector<64x16xbf16>
    %cst = arith.constant dense<0.000000e+00> : vector<32x16xf32>
    %2 = tpu.matmul %0, %1, %cst {dimension_numbers = #tpu.dot_dimension_numbers<[1], [0], [0], [1], [0, 0, 1, 1], [], []>} : vector<32x64xbf16>, vector<64x16xbf16>, vector<32x16xf32> -> vector<32x16xf32>
    %c0_3 = arith.constant 0 : index
    %c0_4 = arith.constant 0 : index
    %3 = vector.load %arg2[%c0_3, %c0_4] : memref<1x16xf32, #tpu.memory_space<vmem>>, vector<1x16xf32>
    %4 = vector.broadcast %3 : vector<1x16xf32> to vector<32x16xf32>
    %5 = arith.addf %2, %4 : vector<32x16xf32>
    %cst_5 = arith.constant 0.000000e+00 : f32
    %6 = vector.broadcast %cst_5 : f32 to vector<32x16xf32>
    %7 = arith.maximumf %5, %6 : vector<32x16xf32>
    %8 = arith.extf %0 : vector<32x64xbf16> to vector<32x64xf32>
    %cst_6 = arith.constant 0.000000e+00 : f32
    %9 = vector.broadcast %cst_6 : f32 to vector<48x16xf32>
    %c0_7 = arith.constant 0 : index
    %c0_8 = arith.constant 0 : index
    %10 = vector.load %arg9[%c0_7, %c0_8] : memref<48x16xf32, #tpu.memory_space<vmem>>, vector<48x16xf32>
    tpu.vector_store %arg9[%c0_7, %c0_8], %9 {strides = array<i32>} : memref<48x16xf32, #tpu.memory_space<vmem>>, vector<48x16xf32>,
    %c8 = arith.constant 8 : index
    %c0_9 = arith.constant 0 : index
    %11 = vector.load %arg9[%c8, %c0_9] : memref<48x16xf32, #tpu.memory_space<vmem>>, vector<32x16xf32>
    tpu.vector_store %arg9[%c8, %c0_9], %7 {strides = array<i32>} : memref<48x16xf32, #tpu.memory_space<vmem>>, vector<32x16xf32>,
    %c3 = arith.constant 3 : index
    %c0_10 = arith.constant 0 : index
    %12 = vector.load %arg9[%c3, %c0_10] : memref<48x16xf32, #tpu.memory_space<vmem>>, vector<32x16xf32>
    %c0_11 = arith.constant 0 : index
    %c0_12 = arith.constant 0 : index
    %13 = vector.load %arg7[%c0_11, %c0_12] : memref<32x9xf32, #tpu.memory_space<vmem>>, vector<32x1xf32>
    %14 = vector.broadcast %13 : vector<32x1xf32> to vector<32x16xf32>
    %15 = arith.mulf %12, %14 : vector<32x16xf32>
    %16 = arith.truncf %15 : vector<32x16xf32> to vector<32x16xbf16>
    %c0_13 = arith.constant 0 : index
    %c0_14 = arith.constant 0 : index
    %c0_15 = arith.constant 0 : index
    %17 = vector.load %arg3[%c0_13, %c0_14, %c0_15] : memref<9x16x16xbf16, #tpu.memory_space<vmem>>, vector<1x16x16xbf16>
    %18 = vector.shape_cast %17 : vector<1x16x16xbf16> to vector<16x16xbf16>
    %cst_16 = arith.constant dense<0.000000e+00> : vector<32x16xf32>
    %19 = tpu.matmul %16, %18, %cst_16 {dimension_numbers = #tpu.dot_dimension_numbers<[1], [0], [0], [1], [0, 0, 1, 1], [], []>} : vector<32x16xbf16>, vector<16x16xbf16>, vector<32x16xf32> -> vector<32x16xf32>
    %c4 = arith.constant 4 : index
    %c0_17 = arith.constant 0 : index
    %20 = vector.load %arg9[%c4, %c0_17] : memref<48x16xf32, #tpu.memory_space<vmem>>, vector<32x16xf32>
    %c0_18 = arith.constant 0 : index
    %c1 = arith.constant 1 : index
    %21 = vector.load %arg7[%c0_18, %c1] : memref<32x9xf32, #tpu.memory_space<vmem>>, vector<32x1xf32>
    %22 = vector.broadcast %21 : vector<32x1xf32> to vector<32x16xf32>
    %23 = arith.mulf %20, %22 : vector<32x16xf32>
    %24 = arith.truncf %23 : vector<32x16xf32> to vector<32x16xbf16>
    %c1_19 = arith.constant 1 : index
    %c0_20 = arith.constant 0 : index
    %c0_21 = arith.constant 0 : index
    %25 = vector.load %arg3[%c1_19, %c0_20, %c0_21] : memref<9x16x16xbf16, #tpu.memory_space<vmem>>, vector<1x16x16xbf16>
    %26 = vector.shape_cast %25 : vector<1x16x16xbf16> to vector<16x16xbf16>
    %cst_22 = arith.constant dense<0.000000e+00> : vector<32x16xf32>
    %27 = tpu.matmul %24, %26, %cst_22 {dimension_numbers = #tpu.dot_dimension_numbers<[1], [0], [0], [1], [0, 0, 1, 1], [], []>} : vector<32x16xbf16>, vector<16x16xbf16>, vector<32x16xf32> -> vector<32x16xf32>
    %28 = arith.addf %19, %27 : vector<32x16xf32>
    %c5 = arith.constant 5 : index
    %c0_23 = arith.constant 0 : index
    %29 = vector.load %arg9[%c5, %c0_23] : memref<48x16xf32, #tpu.memory_space<vmem>>, vector<32x16xf32>
    %c0_24 = arith.constant 0 : index
    %c2 = arith.constant 2 : index
    %30 = vector.load %arg7[%c0_24, %c2] : memref<32x9xf32, #tpu.memory_space<vmem>>, vector<32x1xf32>
    %31 = vector.broadcast %30 : vector<32x1xf32> to vector<32x16xf32>
    %32 = arith.mulf %29, %31 : vector<32x16xf32>
    %33 = arith.truncf %32 : vector<32x16xf32> to vector<32x16xbf16>
    %c2_25 = arith.constant 2 : index
    %c0_26 = arith.constant 0 : index
    %c0_27 = arith.constant 0 : index
    %34 = vector.load %arg3[%c2_25, %c0_26, %c0_27] : memref<9x16x16xbf16, #tpu.memory_space<vmem>>, vector<1x16x16xbf16>
    %35 = vector.shape_cast %34 : vector<1x16x16xbf16> to vector<16x16xbf16>
    %cst_28 = arith.constant dense<0.000000e+00> : vector<32x16xf32>
    %36 = tpu.matmul %33, %35, %cst_28 {dimension_numbers = #tpu.dot_dimension_numbers<[1], [0], [0], [1], [0, 0, 1, 1], [], []>} : vector<32x16xbf16>, vector<16x16xbf16>, vector<32x16xf32> -> vector<32x16xf32>
    %37 = arith.addf %28, %36 : vector<32x16xf32>
    %c7 = arith.constant 7 : index
    %c0_29 = arith.constant 0 : index
    %38 = vector.load %arg9[%c7, %c0_29] : memref<48x16xf32, #tpu.memory_space<vmem>>, vector<32x16xf32>
    %c0_30 = arith.constant 0 : index
    %c3_31 = arith.constant 3 : index
    %39 = vector.load %arg7[%c0_30, %c3_31] : memref<32x9xf32, #tpu.memory_space<vmem>>, vector<32x1xf32>
    %40 = vector.broadcast %39 : vector<32x1xf32> to vector<32x16xf32>
    %41 = arith.mulf %38, %40 : vector<32x16xf32>
    %42 = arith.truncf %41 : vector<32x16xf32> to vector<32x16xbf16>
    %c3_32 = arith.constant 3 : index
    %c0_33 = arith.constant 0 : index
    %c0_34 = arith.constant 0 : index
    %43 = vector.load %arg3[%c3_32, %c0_33, %c0_34] : memref<9x16x16xbf16, #tpu.memory_space<vmem>>, vector<1x16x16xbf16>
    %44 = vector.shape_cast %43 : vector<1x16x16xbf16> to vector<16x16xbf16>
    %cst_35 = arith.constant dense<0.000000e+00> : vector<32x16xf32>
    %45 = tpu.matmul %42, %44, %cst_35 {dimension_numbers = #tpu.dot_dimension_numbers<[1], [0], [0], [1], [0, 0, 1, 1], [], []>} : vector<32x16xbf16>, vector<16x16xbf16>, vector<32x16xf32> -> vector<32x16xf32>
    %46 = arith.addf %37, %45 : vector<32x16xf32>
    %c8_36 = arith.constant 8 : index
    %c0_37 = arith.constant 0 : index
    %47 = vector.load %arg9[%c8_36, %c0_37] : memref<48x16xf32, #tpu.memory_space<vmem>>, vector<32x16xf32>
    %48 = arith.truncf %47 : vector<32x16xf32> to vector<32x16xbf16>
    %c4_38 = arith.constant 4 : index
    %c0_39 = arith.constant 0 : index
    %c0_40 = arith.constant 0 : index
    %49 = vector.load %arg3[%c4_38, %c0_39, %c0_40] : memref<9x16x16xbf16, #tpu.memory_space<vmem>>, vector<1x16x16xbf16>
    %50 = vector.shape_cast %49 : vector<1x16x16xbf16> to vector<16x16xbf16>
    %cst_41 = arith.constant dense<0.000000e+00> : vector<32x16xf32>
    %51 = tpu.matmul %48, %50, %cst_41 {dimension_numbers = #tpu.dot_dimension_numbers<[1], [0], [0], [1], [0, 0, 1, 1], [], []>} : vector<32x16xbf16>, vector<16x16xbf16>, vector<32x16xf32> -> vector<32x16xf32>
    %52 = arith.addf %46, %51 : vector<32x16xf32>
    %c9 = arith.constant 9 : index
    %c0_42 = arith.constant 0 : index
    %53 = vector.load %arg9[%c9, %c0_42] : memref<48x16xf32, #tpu.memory_space<vmem>>, vector<32x16xf32>
    %c0_43 = arith.constant 0 : index
    %c5_44 = arith.constant 5 : index
    %54 = vector.load %arg7[%c0_43, %c5_44] : memref<32x9xf32, #tpu.memory_space<vmem>>, vector<32x1xf32>
    %55 = vector.broadcast %54 : vector<32x1xf32> to vector<32x16xf32>
    %56 = arith.mulf %53, %55 : vector<32x16xf32>
    %57 = arith.truncf %56 : vector<32x16xf32> to vector<32x16xbf16>
    %c5_45 = arith.constant 5 : index
    %c0_46 = arith.constant 0 : index
    %c0_47 = arith.constant 0 : index
    %58 = vector.load %arg3[%c5_45, %c0_46, %c0_47] : memref<9x16x16xbf16, #tpu.memory_space<vmem>>, vector<1x16x16xbf16>
    %59 = vector.shape_cast %58 : vector<1x16x16xbf16> to vector<16x16xbf16>
    %cst_48 = arith.constant dense<0.000000e+00> : vector<32x16xf32>
    %60 = tpu.matmul %57, %59, %cst_48 {dimension_numbers = #tpu.dot_dimension_numbers<[1], [0], [0], [1], [0, 0, 1, 1], [], []>} : vector<32x16xbf16>, vector<16x16xbf16>, vector<32x16xf32> -> vector<32x16xf32>
    %61 = arith.addf %52, %60 : vector<32x16xf32>
    %c11 = arith.constant 11 : index
    %c0_49 = arith.constant 0 : index
    %62 = vector.load %arg9[%c11, %c0_49] : memref<48x16xf32, #tpu.memory_space<vmem>>, vector<32x16xf32>
    %c0_50 = arith.constant 0 : index
    %c6 = arith.constant 6 : index
    %63 = vector.load %arg7[%c0_50, %c6] : memref<32x9xf32, #tpu.memory_space<vmem>>, vector<32x1xf32>
    %64 = vector.broadcast %63 : vector<32x1xf32> to vector<32x16xf32>
    %65 = arith.mulf %62, %64 : vector<32x16xf32>
    %66 = arith.truncf %65 : vector<32x16xf32> to vector<32x16xbf16>
    %c6_51 = arith.constant 6 : index
    %c0_52 = arith.constant 0 : index
    %c0_53 = arith.constant 0 : index
    %67 = vector.load %arg3[%c6_51, %c0_52, %c0_53] : memref<9x16x16xbf16, #tpu.memory_space<vmem>>, vector<1x16x16xbf16>
    %68 = vector.shape_cast %67 : vector<1x16x16xbf16> to vector<16x16xbf16>
    %cst_54 = arith.constant dense<0.000000e+00> : vector<32x16xf32>
    %69 = tpu.matmul %66, %68, %cst_54 {dimension_numbers = #tpu.dot_dimension_numbers<[1], [0], [0], [1], [0, 0, 1, 1], [], []>} : vector<32x16xbf16>, vector<16x16xbf16>, vector<32x16xf32> -> vector<32x16xf32>
    %70 = arith.addf %61, %69 : vector<32x16xf32>
    %c12 = arith.constant 12 : index
    %c0_55 = arith.constant 0 : index
    %71 = vector.load %arg9[%c12, %c0_55] : memref<48x16xf32, #tpu.memory_space<vmem>>, vector<32x16xf32>
    %c0_56 = arith.constant 0 : index
    %c7_57 = arith.constant 7 : index
    %72 = vector.load %arg7[%c0_56, %c7_57] : memref<32x9xf32, #tpu.memory_space<vmem>>, vector<32x1xf32>
    %73 = vector.broadcast %72 : vector<32x1xf32> to vector<32x16xf32>
    %74 = arith.mulf %71, %73 : vector<32x16xf32>
    %75 = arith.truncf %74 : vector<32x16xf32> to vector<32x16xbf16>
    %c7_58 = arith.constant 7 : index
    %c0_59 = arith.constant 0 : index
    %c0_60 = arith.constant 0 : index
    %76 = vector.load %arg3[%c7_58, %c0_59, %c0_60] : memref<9x16x16xbf16, #tpu.memory_space<vmem>>, vector<1x16x16xbf16>
    %77 = vector.shape_cast %76 : vector<1x16x16xbf16> to vector<16x16xbf16>
    %cst_61 = arith.constant dense<0.000000e+00> : vector<32x16xf32>
    %78 = tpu.matmul %75, %77, %cst_61 {dimension_numbers = #tpu.dot_dimension_numbers<[1], [0], [0], [1], [0, 0, 1, 1], [], []>} : vector<32x16xbf16>, vector<16x16xbf16>, vector<32x16xf32> -> vector<32x16xf32>
    %79 = arith.addf %70, %78 : vector<32x16xf32>
    %c13 = arith.constant 13 : index
    %c0_62 = arith.constant 0 : index
    %80 = vector.load %arg9[%c13, %c0_62] : memref<48x16xf32, #tpu.memory_space<vmem>>, vector<32x16xf32>
    %c0_63 = arith.constant 0 : index
    %c8_64 = arith.constant 8 : index
    %81 = vector.load %arg7[%c0_63, %c8_64] : memref<32x9xf32, #tpu.memory_space<vmem>>, vector<32x1xf32>
    %82 = vector.broadcast %81 : vector<32x1xf32> to vector<32x16xf32>
    %83 = arith.mulf %80, %82 : vector<32x16xf32>
    %84 = arith.truncf %83 : vector<32x16xf32> to vector<32x16xbf16>
    %c8_65 = arith.constant 8 : index
    %c0_66 = arith.constant 0 : index
    %c0_67 = arith.constant 0 : index
    %85 = vector.load %arg3[%c8_65, %c0_66, %c0_67] : memref<9x16x16xbf16, #tpu.memory_space<vmem>>, vector<1x16x16xbf16>
    %86 = vector.shape_cast %85 : vector<1x16x16xbf16> to vector<16x16xbf16>
    %cst_68 = arith.constant dense<0.000000e+00> : vector<32x16xf32>
    %87 = tpu.matmul %84, %86, %cst_68 {dimension_numbers = #tpu.dot_dimension_numbers<[1], [0], [0], [1], [0, 0, 1, 1], [], []>} : vector<32x16xbf16>, vector<16x16xbf16>, vector<32x16xf32> -> vector<32x16xf32>
    %88 = arith.addf %79, %87 : vector<32x16xf32>
    %c0_69 = arith.constant 0 : index
    %c0_70 = arith.constant 0 : index
    %89 = vector.load %arg4[%c0_69, %c0_70] : memref<1x16xf32, #tpu.memory_space<vmem>>, vector<1x16xf32>
    %90 = vector.broadcast %89 : vector<1x16xf32> to vector<32x16xf32>
    %91 = arith.addf %88, %90 : vector<32x16xf32>
    %cst_71 = arith.constant 0.000000e+00 : f32
    %92 = vector.broadcast %cst_71 : f32 to vector<32x16xf32>
    %93 = arith.maximumf %91, %92 : vector<32x16xf32>
    %94 = arith.truncf %93 : vector<32x16xf32> to vector<32x16xbf16>
    %c0_72 = arith.constant 0 : index
    %c0_73 = arith.constant 0 : index
    %95 = vector.load %arg5[%c0_72, %c0_73] : memref<16x64xbf16, #tpu.memory_space<vmem>>, vector<16x64xbf16>
    %cst_74 = arith.constant dense<0.000000e+00> : vector<32x64xf32>
    %96 = tpu.matmul %94, %95, %cst_74 {dimension_numbers = #tpu.dot_dimension_numbers<[1], [0], [0], [1], [0, 0, 1, 1], [], []>} : vector<32x16xbf16>, vector<16x64xbf16>, vector<32x64xf32> -> vector<32x64xf32>
    %c0_75 = arith.constant 0 : index
    %c0_76 = arith.constant 0 : index
    %97 = vector.load %arg6[%c0_75, %c0_76] : memref<1x64xf32, #tpu.memory_space<vmem>>, vector<1x64xf32>
    %98 = vector.broadcast %97 : vector<1x64xf32> to vector<32x64xf32>
    %99 = arith.addf %96, %98 : vector<32x64xf32>
    %100 = arith.addf %99, %8 : vector<32x64xf32>
    %cst_77 = arith.constant 0.000000e+00 : f32
    %101 = vector.broadcast %cst_77 : f32 to vector<32x64xf32>
    %102 = arith.maximumf %100, %101 : vector<32x64xf32>
    %103 = arith.truncf %102 : vector<32x64xf32> to vector<32x64xbf16>
    %c0_78 = arith.constant 0 : index
    %c0_79 = arith.constant 0 : index
    %104 = vector.load %arg8[%c0_78, %c0_79] : memref<32x64xbf16, #tpu.memory_space<vmem>>, vector<32x64xbf16>
    tpu.vector_store %arg8[%c0_78, %c0_79], %103 {strides = array<i32>} : memref<32x64xbf16, #tpu.memory_space<vmem>>, vector<32x64xbf16>,
    return
  }
}

module attributes {stable_mosaic.version = 11 : i64} {
  func.func @_tail_kernel(%arg0: memref<32x64xbf16, #tpu.memory_space<vmem>>, %arg1: memref<2x32xbf16, #tpu.memory_space<vmem>>, %arg2: memref<64x8xbf16, #tpu.memory_space<vmem>>, %arg3: memref<1x8xf32, #tpu.memory_space<vmem>>, %arg4: memref<2x8xf32, #tpu.memory_space<vmem>>, %arg5: memref<1x1xf32, #tpu.memory_space<vmem>>) attributes {dimension_semantics = [], scalar_prefetch = 0 : i64, scratch_operands = 0 : i64, tpu.core_type = #tpu.core_type<tc>} {
    %c0 = arith.constant 0 : index
    %c0_0 = arith.constant 0 : index
    %0 = vector.load %arg1[%c0, %c0_0] : memref<2x32xbf16, #tpu.memory_space<vmem>>, vector<2x32xbf16>
    %c0_1 = arith.constant 0 : index
    %c0_2 = arith.constant 0 : index
    %1 = vector.load %arg0[%c0_1, %c0_2] : memref<32x64xbf16, #tpu.memory_space<vmem>>, vector<32x64xbf16>
    %cst = arith.constant dense<0.000000e+00> : vector<2x64xf32>
    %2 = tpu.matmul %0, %1, %cst {dimension_numbers = #tpu.dot_dimension_numbers<[1], [0], [0], [1], [0, 0, 1, 1], [], []>} : vector<2x32xbf16>, vector<32x64xbf16>, vector<2x64xf32> -> vector<2x64xf32>
    %3 = arith.truncf %2 : vector<2x64xf32> to vector<2x64xbf16>
    %c0_3 = arith.constant 0 : index
    %c0_4 = arith.constant 0 : index
    %4 = vector.load %arg2[%c0_3, %c0_4] : memref<64x8xbf16, #tpu.memory_space<vmem>>, vector<64x8xbf16>
    %cst_5 = arith.constant dense<0.000000e+00> : vector<2x8xf32>
    %5 = tpu.matmul %3, %4, %cst_5 {dimension_numbers = #tpu.dot_dimension_numbers<[1], [0], [0], [1], [0, 0, 1, 1], [], []>} : vector<2x64xbf16>, vector<64x8xbf16>, vector<2x8xf32> -> vector<2x8xf32>
    %c0_6 = arith.constant 0 : index
    %c0_7 = arith.constant 0 : index
    %6 = vector.load %arg3[%c0_6, %c0_7] : memref<1x8xf32, #tpu.memory_space<vmem>>, vector<1x8xf32>
    %7 = vector.broadcast %6 : vector<1x8xf32> to vector<2x8xf32>
    %8 = arith.addf %5, %7 : vector<2x8xf32>
    %cst_8 = arith.constant dense<0xFF800000> : vector<2xf32>
    %9 = vector.multi_reduction <maximumf>, %8, %cst_8 [1] : vector<2x8xf32> to vector<2xf32>
    %10 = vector.shape_cast %9 : vector<2xf32> to vector<2x1xf32>
    %11 = vector.broadcast %10 : vector<2x1xf32> to vector<2x8xf32>
    %12 = arith.subf %8, %11 : vector<2x8xf32>
    %13 = math.exp %12 : vector<2x8xf32>
    %cst_9 = arith.constant dense<0.000000e+00> : vector<2xf32>
    %14 = vector.multi_reduction <add>, %13, %cst_9 [1] : vector<2x8xf32> to vector<2xf32>
    %15 = vector.shape_cast %14 : vector<2xf32> to vector<2x1xf32>
    %16 = math.log %15 : vector<2x1xf32>
    %17 = vector.broadcast %16 : vector<2x1xf32> to vector<2x8xf32>
    %18 = arith.subf %12, %17 : vector<2x8xf32>
    %c0_10 = arith.constant 0 : index
    %c0_11 = arith.constant 0 : index
    %19 = vector.load %arg4[%c0_10, %c0_11] : memref<2x8xf32, #tpu.memory_space<vmem>>, vector<2x8xf32>
    %cst_12 = arith.constant 0.000000e+00 : f32
    %20 = vector.broadcast %cst_12 : f32 to vector<2x8xf32>
    %21 = arith.subf %20, %19 : vector<2x8xf32>
    %22 = arith.mulf %21, %18 : vector<2x8xf32>
    %cst_13 = arith.constant dense<0.000000e+00> : vector<2xf32>
    %23 = vector.multi_reduction <add>, %22, %cst_13 [1] : vector<2x8xf32> to vector<2xf32>
    %24 = vector.shape_cast %23 : vector<2xf32> to vector<2x1xf32>
    %cst_14 = arith.constant dense<0.000000e+00> : vector<1xf32>
    %25 = vector.multi_reduction <add>, %24, %cst_14 [0] : vector<2x1xf32> to vector<1xf32>
    %26 = vector.shape_cast %25 : vector<1xf32> to vector<1x1xf32>
    %cst_15 = arith.constant 2.000000e+00 : f32
    %27 = vector.broadcast %cst_15 : f32 to vector<1x1xf32>
    %28 = arith.divf %26, %27 : vector<1x1xf32>
    %cst_16 = arith.constant 1.000000e+01 : f32
    %29 = vector.broadcast %cst_16 : f32 to vector<1x1xf32>
    %30 = arith.divf %28, %29 : vector<1x1xf32>
    %c0_17 = arith.constant 0 : index
    %c0_18 = arith.constant 0 : index
    %31 = vector.load %arg5[%c0_17, %c0_18] : memref<1x1xf32, #tpu.memory_space<vmem>>, vector<1x1xf32>
    tpu.vector_store %arg5[%c0_17, %c0_18], %30 {strides = array<i32>} : memref<1x1xf32, #tpu.memory_space<vmem>>, vector<1x1xf32>,
    return
  }
}

</mosaic_0001>

<bundles_post_ra>
// kernel: multilabel_cls_forward.7
= control target key start
LH: loop header
LB: loop body
LE: loop exit
PB: predicated region body
PF: predicated region fallthrough
CT: control target
= control target key end

     0   :  { %v105_v32 = vlaneseq  ;;  %vm372_vm0 = vcmask 1041409   ;;  %vm375_vm1 = vcmask 1042434   ;;  %vm378_vm2 = vcmask 1043459   ;;  %s656_s0 = inlined_call_operand.vmem [shape: f32[14,2,224], index: 0, kind: input, shape index: {}]   ;;  %s657_s1 = inlined_call_operand.vmem [shape: bf16[14,224], index: 1, kind: output, shape index: {}]  }
   0x1   :  { %v8_v0 = vld [vmem:[%s656_s0] ss:$2 sm:$0x3]  ;;  %v455_v1 = vld [vmem:[%s656_s0 + $0x1] ss:$2 sm:$0x3] }
   0x2   :  { %v442_v2 = vld [vmem:[%s656_s0 + $0x4] ss:$2 sm:$0x3]  ;;  %v443_v3 = vld [vmem:[%s656_s0 + $0x8] ss:$2 sm:$0x3]  ;;  %v63_v26 = vadd.f32 %v455_v1, %v8_v0 }
   0x3   :  { %v444_v4 = vld [vmem:[%s656_s0 + $0xc] ss:$2 sm:$0x3]  ;;  %v456_v5 = vld [vmem:[%s656_s0 + $0x5] ss:$2 sm:$0x3] }
   0x4   :  { %v457_v6 = vld [vmem:[%s656_s0 + $0x9] ss:$2 sm:$0x3]  ;;  %v458_v7 = vld [vmem:[%s656_s0 + $0xd] ss:$2 sm:$0x3]  ;;  %v64_v29 = vadd.f32 %v456_v5, %v442_v2 }
   0x5   :  { %v445_v8 = vld [vmem:[%s656_s0 + $0x10] ss:$2 sm:$0x3]  ;;  %v446_v9 = vld [vmem:[%s656_s0 + $0x14] ss:$2 sm:$0x3]  ;;  %v65_v30 = vadd.f32 %v457_v6, %v443_v3  ;;  %v66_v31 = vadd.f32 %v458_v7, %v444_v4 }
   0x6   :  { %v447_v10 = vld [vmem:[%s656_s0 + $0x18] ss:$2 sm:$0x3]  ;;  %v448_v11 = vld [vmem:[%s656_s0 + $0x1c] ss:$2 sm:$0x3] }
   0x7   :  { %v459_v12 = vld [vmem:[%s656_s0 + $0x11] ss:$2 sm:$0x3]  ;;  %v460_v13 = vld [vmem:[%s656_s0 + $0x15] ss:$2 sm:$0x3] }
   0x8   :  { %v449_v14 = vld [vmem:[%s656_s0 + $0x20] ss:$2 sm:$0x3]  ;;  %v450_v15 = vld [vmem:[%s656_s0 + $0x24] ss:$2 sm:$0x3]  ;;  %v67_v33 = vadd.f32 %v459_v12, %v445_v8  ;;  %v68_v34 = vadd.f32 %v460_v13, %v446_v9 }
   0x9   :  { %v451_v16 = vld [vmem:[%s656_s0 + $0x28] ss:$2 sm:$0x3]  ;;  %v461_v17 = vld [vmem:[%s656_s0 + $0x19] ss:$2 sm:$0x3] }
   0xa   :  { %v462_v18 = vld [vmem:[%s656_s0 + $0x1d] ss:$2 sm:$0x3]  ;;  %v452_v19 = vld [vmem:[%s656_s0 + $0x2c] ss:$2 sm:$0x3]  ;;  %v69_v35 = vadd.f32 %v461_v17, %v447_v10 }
   0xb   :  { %v453_v20 = vld [vmem:[%s656_s0 + $0x30] ss:$2 sm:$0x3]  ;;  %v454_v21 = vld [vmem:[%s656_s0 + $0x34] ss:$2 sm:$0x3]  ;;  %v70_v36 = vadd.f32 %v462_v18, %v448_v11 }
   0xc   :  { %v463_v22 = vld [vmem:[%s656_s0 + $0x21] ss:$2 sm:$0x3]  ;;  %v464_v23 = vld [vmem:[%s656_s0 + $0x25] ss:$2 sm:$0x3] }
   0xd   :  { %v465_v24 = vld [vmem:[%s656_s0 + $0x29] ss:$2 sm:$0x3]  ;;  %v466_v25 = vld [vmem:[%s656_s0 + $0x2d] ss:$2 sm:$0x3]  ;;  %v71_v37 = vadd.f32 %v463_v22, %v449_v14  ;;  %v72_v38 = vadd.f32 %v464_v23, %v450_v15 }
   0xe   :  { %v467_v27 = vld [vmem:[%s656_s0 + $0x31] ss:$2 sm:$0x3]  ;;  %v468_v28 = vld [vmem:[%s656_s0 + $0x35] ss:$2 sm:$0x3]  ;;  %v73_v39 = vadd.f32 %v465_v24, %v451_v16  ;;  %v74_v40 = vadd.f32 %v466_v25, %v452_v19 }
   0xf   :  { %v75_v41 = vadd.f32 %v467_v27, %v453_v20  ;;  %v76_v42 = vadd.f32 %v468_v28, %v454_v21  ;;  %v77_v43 = vmul.f32 0.5, %v63_v26  ;;  %v78_v44 = vmul.f32 0.5, %v64_v29 }
  0x10   :  { %v79_v45 = vmul.f32 0.5, %v65_v30  ;;  %v80_v46 = vmul.f32 0.5, %v66_v31  ;;  %v106_v47 = vshrl.u32 %v105_v32, 7  ;;  %v81_v48 = vmul.f32 0.5, %v67_v33 }
  0x11   :  { %v82_v49 = vmul.f32 0.5, %v68_v34  ;;  %v83_v50 = vmul.f32 0.5, %v69_v35  ;;  %v84_v51 = vmul.f32 0.5, %v70_v36  ;;  %v85_v52 = vmul.f32 0.5, %v71_v37 }
  0x12   :  { %v86_v53 = vmul.f32 0.5, %v72_v38  ;;  %v107_v54 = vsub.s32 0, %v106_v47  ;;  %v111_v55 = vsub.s32 1, %v106_v47  ;;  %v87_v56 = vmul.f32 0.5, %v73_v39 }
  0x13   :  { %v88_v57 = vmul.f32 0.5, %v74_v40  ;;  %v89_v58 = vmul.f32 0.5, %v75_v41  ;;  %v90_v59 = vmul.f32 0.5, %v76_v42  ;;  %vm381_vm3 = vcmask 1044484  }
  0x14   :  { %v108_v60 = vrot.slane %v77_v43, %v107_v54  ;;  %v112_v61 = vrot.slane %v77_v43, %v111_v55  ;;  %v116_v62 = vrot.slane %v78_v44, %v107_v54  ;;  %v120_v63 = vrot.slane %v78_v44, %v111_v55 }
  0x15   :  { %v124_v0 = vrot.slane %v79_v45, %v107_v54  ;;  %v128_v1 = vrot.slane %v79_v45, %v111_v55  ;;  %v132_v2 = vrot.slane %v80_v46, %v107_v54  ;;  %v136_v3 = vrot.slane %v80_v46, %v111_v55 }
  0x16   :  { %v140_v4 = vrot.slane %v81_v48, %v107_v54  ;;  %v144_v5 = vrot.slane %v81_v48, %v111_v55  ;;  %v148_v6 = vrot.slane %v82_v49, %v107_v54  ;;  %v152_v7 = vrot.slane %v82_v49, %v111_v55 }
  0x17   :  { %v156_v8 = vrot.slane %v83_v50, %v107_v54  ;;  %v160_v9 = vrot.slane %v83_v50, %v111_v55  ;;  %v164_v10 = vrot.slane %v84_v51, %v107_v54  ;;  %v168_v11 = vrot.slane %v84_v51, %v111_v55 }
  0x18   :  { %v172_v12 = vrot.slane %v85_v52, %v107_v54  ;;  %v176_v13 = vrot.slane %v85_v52, %v111_v55  ;;  %v180_v14 = vrot.slane %v86_v53, %v107_v54  ;;  %v184_v15 = vrot.slane %v86_v53, %v111_v55 }
  0x19   :  { %v188_v16 = vrot.slane %v87_v56, %v107_v54  ;;  %v192_v17 = vrot.slane %v87_v56, %v111_v55  ;;  %v196_v18 = vrot.slane %v88_v57, %v107_v54  ;;  %v200_v19 = vrot.slane %v88_v57, %v111_v55 }
  0x1a   :  { %v204_v20 = vrot.slane %v89_v58, %v107_v54  ;;  %v208_v21 = vrot.slane %v89_v58, %v111_v55  ;;  %v212_v22 = vrot.slane %v90_v59, %v107_v54  ;;  %v216_v23 = vrot.slane %v90_v59, %v111_v55 }
  0x1b   :  { %v591_v24 = vpack.c.bf16 %v112_v61, %v108_v60  ;;  %v484_v25 = vpack.c.bf16 %v120_v63, %v116_v62  ;;  %v485_v26 = vpack.c.bf16 %v128_v1, %v124_v0  ;;  %v486_v27 = vpack.c.bf16 %v136_v3, %v132_v2 }
  0x1c   :  { %v487_v28 = vpack.c.bf16 %v144_v5, %v140_v4  ;;  %v488_v29 = vpack.c.bf16 %v152_v7, %v148_v6  ;;  %v593_v30 = vpack.c.bf16 %v160_v9, %v156_v8  ;;  %v490_v31 = vpack.c.bf16 %v168_v11, %v164_v10 }
  0x1d   :  { %v595_v32 = vpack.c.bf16 %v176_v13, %v172_v12  ;;  %v597_v33 = vpack.c.bf16 %v184_v15, %v180_v14  ;;  %v599_v34 = vpack.c.bf16 %v192_v17, %v188_v16  ;;  %v601_v35 = vpack.c.bf16 %v200_v19, %v196_v18 }
  0x1e   :  { %v603_v36 = vpack.c.bf16 %v208_v21, %v204_v20  ;;  %v605_v37 = vpack.c.bf16 %v216_v23, %v212_v22  ;;  %v343_v38 = vunpack.c.l.b16 %v591_v24  ;;  %v344_v39 = vunpack.c.h.b16 %v591_v24 }
  0x1f   :  { %v345_v40 = vunpack.c.l.b16 %v484_v25  ;;  %v346_v41 = vunpack.c.h.b16 %v484_v25  ;;  %v347_v42 = vunpack.c.l.b16 %v485_v26  ;;  %v348_v43 = vunpack.c.h.b16 %v485_v26 }
  0x20   :  { %v349_v44 = vunpack.c.l.b16 %v486_v27  ;;  %v350_v45 = vunpack.c.h.b16 %v486_v27  ;;  %v351_v46 = vunpack.c.l.b16 %v487_v28  ;;  %v352_v47 = vunpack.c.h.b16 %v487_v28 }
  0x21   :  { %vm384_vm4 = vcmask 1045509   ;;  %v353_v48 = vunpack.c.l.b16 %v488_v29  ;;  %v354_v49 = vunpack.c.h.b16 %v488_v29  ;;  %v355_v50 = vunpack.c.l.b16 %v593_v30 }
  0x22   :  { %v356_v51 = vunpack.c.h.b16 %v593_v30  ;;  %vm387_vm5 = vcmask 1046534   ;;  %v357_v52 = vunpack.c.l.b16 %v490_v31  ;;  %v358_v53 = vunpack.c.h.b16 %v490_v31 }
  0x23   :  { %v359_v54 = vunpack.c.l.b16 %v595_v32  ;;  %v360_v55 = vunpack.c.h.b16 %v595_v32  ;;  %vm390_vm6 = vcmask 1047559   ;;  %v361_v56 = vunpack.c.l.b16 %v597_v33 }
  0x24   :  { %v362_v57 = vunpack.c.h.b16 %v597_v33  ;;  %v363_v58 = vunpack.c.l.b16 %v599_v34  ;;  %v364_v59 = vunpack.c.h.b16 %v599_v34  ;;  %v365_v60 = vunpack.c.l.b16 %v601_v35 }
  0x25   :  { %v366_v61 = vunpack.c.h.b16 %v601_v35  ;;  %v367_v62 = vunpack.c.l.b16 %v603_v36  ;;  %v368_v63 = vunpack.c.h.b16 %v603_v36  ;;  %vm430_vm7 = vcmask 1043456  }
  0x26   :  { %vm431_vm8 = vcmask 785412   ;;  %v369_v0 = vunpack.c.l.b16 %v605_v37  ;;  %v370_v1 = vunpack.c.h.b16 %v605_v37  ;;  %v371_v2 = vrot.slane %v345_v40, 7 }
  0x27   :  { %v374_v3 = vrot.slane %v347_v42, 6  ;;  %v377_v4 = vrot.slane %v349_v44, 5  ;;  %v380_v5 = vrot.slane %v351_v46, 4  ;;  %v383_v6 = vrot.slane %v353_v48, 3  ;;  %vm432_vm10 = vmor %vm431_vm8, %vm430_vm7 }
  0x28   :  { %v386_v7 = vrot.slane %v355_v50, 2  ;;  %v373_v8 = vsel %vm372_vm0, %v371_v2, %v343_v38  ;;  %v389_v9 = vrot.slane %v357_v52, 1  ;;  %v392_v10 = vrot.slane %v346_v41, 7 }
  0x29   :  { %v394_v11 = vrot.slane %v348_v43, 6  ;;  %v376_v12 = vsel %vm375_vm1, %v374_v3, %v373_v8  ;;  %v396_v13 = vrot.slane %v350_v45, 5  ;;  %v398_v14 = vrot.slane %v352_v47, 4 }
  0x2a   :  { %v400_v15 = vrot.slane %v354_v49, 3  ;;  %vm434_vm9 = vcmask 1042432   ;;  %v379_v16 = vsel %vm378_vm2, %v377_v4, %v376_v12  ;;  %v393_v17 = vsel %vm372_vm0, %v392_v10, %v344_v39 }
  0x2b   :  { %v402_v18 = vrot.slane %v356_v51, 2  ;;  %v404_v19 = vrot.slane %v358_v53, 1  ;;  %v382_v20 = vsel %vm381_vm3, %v380_v5, %v379_v16  ;;  %v395_v21 = vsel %vm375_vm1, %v394_v11, %v393_v17 }
  0x2c   :  { %v406_v22 = vrot.slane %v361_v56, 7  ;;  %v408_v23 = vrot.slane %v363_v58, 6  ;;  %v385_v24 = vsel %vm384_vm4, %v383_v6, %v382_v20  ;;  %v397_v25 = vsel %vm378_vm2, %v396_v13, %v395_v21 }
  0x2d   :  { %v410_v26 = vrot.slane %v365_v60, 5  ;;  %v412_v27 = vrot.slane %v367_v62, 4  ;;  %v388_v28 = vsel %vm387_vm5, %v386_v7, %v385_v24  ;;  %v399_v29 = vsel %vm381_vm3, %v398_v14, %v397_v25 }
  0x2e   :  { %v407_v30 = vsel %vm372_vm0, %v406_v22, %v359_v54  ;;  %v414_v31 = vrot.slane %v369_v0, 3  ;;  %v391_v32 = vsel %vm390_vm6, %v389_v9, %v388_v28  ;;  %v401_v33 = vsel %vm384_vm4, %v400_v15, %v399_v29 }
  0x2f   :  { %v409_v34 = vsel %vm375_vm1, %v408_v23, %v407_v30  ;;  %v416_v35 = vrot.slane %v362_v57, 7  ;;  %v403_v36 = vsel %vm387_vm5, %v402_v18, %v401_v33  ;;  %v418_v38 = vrot.slane %v364_v59, 6 }
  0x30   :  { %v411_v37 = vsel %vm378_vm2, %v410_v26, %v409_v34  ;;  %v420_v39 = vrot.slane %v366_v61, 5  ;;  %v405_v40 = vsel %vm390_vm6, %v404_v19, %v403_v36  ;;  %v422_v43 = vrot.slane %v368_v63, 4 }
  0x31   :  { %v413_v41 = vsel %vm381_vm3, %v412_v27, %v411_v37  ;;  %v417_v42 = vsel %vm372_vm0, %v416_v35, %v360_v55  ;;  %v424_v45 = vrot.slane %v370_v1, 3  ;;  %v426_v46 = vpack.c.b16 %v405_v40, %v391_v32 }
  0x32   :  { %v419_v44 = vsel %vm375_vm1, %v418_v38, %v417_v42  ;;  %vm435_vm11 = vcmask 784388   ;;  %v415_v47 = vsel %vm384_vm4, %v414_v31, %v413_v41 }
  0x33   :  { %v421_v48 = vsel %vm378_vm2, %v420_v39, %v419_v44  ;;  %433 = vst.msk [vmem:[%s657_s1] sm:$0xff] %vm432_vm10, %v426_v46  ;;  %vm436_vm12 = vmor %vm435_vm11, %vm434_vm9 }
  0x34   :  { %v423_v49 = vsel %vm381_vm3, %v422_v43, %v421_v48 }
  0x35   :  { %v425_v50 = vsel %vm384_vm4, %v424_v45, %v423_v49 }
  0x36   :  { %v427_v51 = vpack.c.b16 %v425_v50, %v415_v47 }
  0x38   :  { %437 = vst.msk [vmem:[%s657_s1 + $0x8] sm:$0x77] %vm436_vm12, %v427_v51 }

// kernel: multilabel_cls_forward.6
= control target key start
LH: loop header
LB: loop body
LE: loop exit
PB: predicated region body
PF: predicated region fallthrough
CT: control target
= control target key end

     0   :  { %vm989_vm0 = vcmask 1041409   ;;  %vm992_vm1 = vcmask 1042434   ;;  %vm995_vm2 = vcmask 1043459   ;;  %vm998_vm3 = vcmask 1044484   ;;  %s2849_s0 = inlined_call_operand.vmem [shape: f32[196,2,32], index: 0, kind: input, shape index: {}]   ;;  %s2850_s1 = inlined_call_operand.vmem [shape: f32[196,32], index: 1, kind: output, shape index: {}]  }
   0x1   :  { %v8_v0 = vld [vmem:[%s2849_s0] sm:$0x1]  ;;  %v9_v1 = vld [vmem:[%s2849_s0 + $0x2] sm:$0x1]  ;;  %v10_v2 = vld [vmem:[%s2849_s0 + $0x4] sm:$0x1] }
   0x2   :  { %v11_v3 = vld [vmem:[%s2849_s0 + $0x6] sm:$0x1]  ;;  %v12_v4 = vld [vmem:[%s2849_s0 + $0x8] sm:$0x1]  ;;  %v13_v5 = vld [vmem:[%s2849_s0 + $0xa] sm:$0x1] }
   0x3   :  { %v14_v6 = vld [vmem:[%s2849_s0 + $0xc] sm:$0x1]  ;;  %v15_v7 = vld [vmem:[%s2849_s0 + $0xe] sm:$0x1]  ;;  %v204_v8 = vld [vmem:[%s2849_s0 + $0x1] sm:$0x1] }
   0x4   :  { %v205_v9 = vld [vmem:[%s2849_s0 + $0x3] sm:$0x1]  ;;  %v206_v10 = vld [vmem:[%s2849_s0 + $0x5] sm:$0x1]  ;;  %v207_v11 = vld [vmem:[%s2849_s0 + $0x7] sm:$0x1]  ;;  %v400_v12 = vadd.f32 %v204_v8, %v8_v0 }
   0x5   :  { %v208_v13 = vld [vmem:[%s2849_s0 + $0x9] sm:$0x1]  ;;  %v209_v14 = vld [vmem:[%s2849_s0 + $0xb] sm:$0x1]  ;;  %v210_v15 = vld [vmem:[%s2849_s0 + $0xd] sm:$0x1]  ;;  %v401_v16 = vadd.f32 %v205_v9, %v9_v1  ;;  %v402_v17 = vadd.f32 %v206_v10, %v10_v2  ;;  %v403_v18 = vadd.f32 %v207_v11, %v11_v3 }
   0x6   :  { %v211_v19 = vld [vmem:[%s2849_s0 + $0xf] sm:$0x1]  ;;  %v404_v20 = vadd.f32 %v208_v13, %v12_v4  ;;  %v405_v21 = vadd.f32 %v209_v14, %v13_v5  ;;  %v406_v22 = vadd.f32 %v210_v15, %v14_v6  ;;  %v596_v23 = vmul.f32 0.5, %v400_v12  ;;  %v16_v31 = vld [vmem:[%s2849_s0 + $0x10] sm:$0x1] }
   0x7   :  { %v407_v24 = vadd.f32 %v211_v19, %v15_v7  ;;  %v597_v25 = vmul.f32 0.5, %v401_v16  ;;  %v598_v26 = vmul.f32 0.5, %v402_v17  ;;  %v599_v27 = vmul.f32 0.5, %v403_v18  ;;  %v17_v36 = vld [vmem:[%s2849_s0 + $0x12] sm:$0x1] }
   0x8   :  { %v600_v28 = vmul.f32 0.5, %v404_v20  ;;  %v601_v29 = vmul.f32 0.5, %v405_v21  ;;  %v602_v30 = vmul.f32 0.5, %v406_v22  ;;  %vm1001_vm4 = vcmask 1045509   ;;  %v18_v37 = vld [vmem:[%s2849_s0 + $0x14] sm:$0x1] }
   0x9   :  { %v603_v32 = vmul.f32 0.5, %v407_v24  ;;  %v988_v33 = vrot.slane %v597_v25, 7  ;;  %v991_v34 = vrot.slane %v598_v26, 6  ;;  %v994_v35 = vrot.slane %v599_v27, 5  ;;  %v19_v38 = vld [vmem:[%s2849_s0 + $0x16] sm:$0x1] }
   0xa   :  { %v997_v39 = vrot.slane %v600_v28, 4  ;;  %v1000_v40 = vrot.slane %v601_v29, 3  ;;  %v1003_v41 = vrot.slane %v602_v30, 2  ;;  %vm1004_vm5 = vcmask 1046534   ;;  %v20_v42 = vld [vmem:[%s2849_s0 + $0x18] sm:$0x1] }
   0xb   :  { %v990_v43 = vsel %vm989_vm0, %v988_v33, %v596_v23  ;;  %v1006_v44 = vrot.slane %v603_v32, 1  ;;  %vm1007_vm6 = vcmask 1047559   ;;  %vm1362_vm7 = vcmask 261120   ;;  %v21_v45 = vld [vmem:[%s2849_s0 + $0x1a] sm:$0x1] }
   0xc   :  { %v993_v46 = vsel %vm992_vm1, %v991_v34, %v990_v43  ;;  %v22_v47 = vld [vmem:[%s2849_s0 + $0x1c] sm:$0x1]  ;;  %v23_v48 = vld [vmem:[%s2849_s0 + $0x1e] sm:$0x1]  ;;  %v212_v49 = vld [vmem:[%s2849_s0 + $0x11] sm:$0x1] }
   0xd   :  { %v996_v50 = vsel %vm995_vm2, %v994_v35, %v993_v46  ;;  %v213_v51 = vld [vmem:[%s2849_s0 + $0x13] sm:$0x1]  ;;  %v214_v52 = vld [vmem:[%s2849_s0 + $0x15] sm:$0x1]  ;;  %v215_v53 = vld [vmem:[%s2849_s0 + $0x17] sm:$0x1]  ;;  %v408_v54 = vadd.f32 %v212_v49, %v16_v31 }
   0xe   :  { %v999_v55 = vsel %vm998_vm3, %v997_v39, %v996_v50  ;;  %v216_v56 = vld [vmem:[%s2849_s0 + $0x19] sm:$0x1]  ;;  %v217_v57 = vld [vmem:[%s2849_s0 + $0x1b] sm:$0x1]  ;;  %v218_v58 = vld [vmem:[%s2849_s0 + $0x1d] sm:$0x1]  ;;  %v409_v59 = vadd.f32 %v213_v51, %v17_v36  ;;  %v410_v60 = vadd.f32 %v214_v52, %v18_v37  ;;  %v411_v61 = vadd.f32 %v215_v53, %v19_v38 }
   0xf   :  { %v1002_v62 = vsel %vm1001_vm4, %v1000_v40, %v999_v55  ;;  %v219_v63 = vld [vmem:[%s2849_s0 + $0x1f] sm:$0x1]  ;;  %v412_v0 = vadd.f32 %v216_v56, %v20_v42  ;;  %v413_v1 = vadd.f32 %v217_v57, %v21_v45  ;;  %v414_v2 = vadd.f32 %v218_v58, %v22_v47  ;;  %v24_v11 = vld [vmem:[%s2849_s0 + $0x20] sm:$0x1]  ;;  %v25_v12 = vld [vmem:[%s2849_s0 + $0x22] sm:$0x1] }
  0x10   :  { %v1005_v3 = vsel %vm1004_vm5, %v1003_v41, %v1002_v62  ;;  %v415_v4 = vadd.f32 %v219_v63, %v23_v48  ;;  %v604_v5 = vmul.f32 0.5, %v408_v54  ;;  %v605_v6 = vmul.f32 0.5, %v409_v59  ;;  %v26_v13 = vld [vmem:[%s2849_s0 + $0x24] sm:$0x1]  ;;  %v27_v18 = vld [vmem:[%s2849_s0 + $0x26] sm:$0x1] }
  0x11   :  { %v1008_v7 = vsel %vm1007_vm6, %v1006_v44, %v1005_v3  ;;  %v606_v8 = vmul.f32 0.5, %v410_v60  ;;  %v607_v9 = vmul.f32 0.5, %v411_v61  ;;  %v608_v10 = vmul.f32 0.5, %v412_v0  ;;  %v28_v19 = vld [vmem:[%s2849_s0 + $0x28] sm:$0x1] }
  0x12   :  { %1363 = vst.msk [vmem:[%s2850_s1] sm:$0xff] %vm1362_vm7, %v1008_v7  ;;  %v609_v14 = vmul.f32 0.5, %v413_v1  ;;  %v610_v15 = vmul.f32 0.5, %v414_v2  ;;  %v611_v16 = vmul.f32 0.5, %v415_v4  ;;  %v1009_v17 = vrot.slane %v605_v6, 7 }
  0x13   :  { %v29_v20 = vld [vmem:[%s2849_s0 + $0x2a] sm:$0x1]  ;;  %v1011_v21 = vrot.slane %v606_v8, 6  ;;  %v1013_v22 = vrot.slane %v607_v9, 5  ;;  %v1015_v23 = vrot.slane %v608_v10, 4  ;;  %vm1387_vm8 = vcmask 257024  }
  0x14   :  { %v30_v24 = vld [vmem:[%s2849_s0 + $0x2c] sm:$0x1]  ;;  %v1010_v25 = vsel %vm989_vm0, %v1009_v17, %v604_v5  ;;  %v1017_v26 = vrot.slane %v609_v14, 3  ;;  %v1019_v27 = vrot.slane %v610_v15, 2  ;;  %v1021_v28 = vrot.slane %v611_v16, 1 }
  0x15   :  { %v31_v29 = vld [vmem:[%s2849_s0 + $0x2e] sm:$0x1]  ;;  %v1012_v30 = vsel %vm992_vm1, %v1011_v21, %v1010_v25  ;;  %v220_v31 = vld [vmem:[%s2849_s0 + $0x21] sm:$0x1]  ;;  %v221_v32 = vld [vmem:[%s2849_s0 + $0x23] sm:$0x1] }
  0x16   :  { %v222_v33 = vld [vmem:[%s2849_s0 + $0x25] sm:$0x1]  ;;  %v1014_v34 = vsel %vm995_vm2, %v1013_v22, %v1012_v30  ;;  %v223_v35 = vld [vmem:[%s2849_s0 + $0x27] sm:$0x1]  ;;  %v224_v36 = vld [vmem:[%s2849_s0 + $0x29] sm:$0x1]  ;;  %v416_v38 = vadd.f32 %v220_v31, %v24_v11  ;;  %v417_v39 = vadd.f32 %v221_v32, %v25_v12 }
  0x17   :  { %v225_v37 = vld [vmem:[%s2849_s0 + $0x2b] sm:$0x1]  ;;  %v418_v40 = vadd.f32 %v222_v33, %v26_v13  ;;  %v1016_v41 = vsel %vm998_vm3, %v1015_v23, %v1014_v34  ;;  %v226_v42 = vld [vmem:[%s2849_s0 + $0x2d] sm:$0x1]  ;;  %v227_v43 = vld [vmem:[%s2849_s0 + $0x2f] sm:$0x1]  ;;  %v419_v44 = vadd.f32 %v223_v35, %v27_v18  ;;  %v420_v45 = vadd.f32 %v224_v36, %v28_v19 }
  0x18   :  { %v421_v46 = vadd.f32 %v225_v37, %v29_v20  ;;  %v1018_v47 = vsel %vm1001_vm4, %v1017_v26, %v1016_v41  ;;  %v422_v48 = vadd.f32 %v226_v42, %v30_v24  ;;  %v423_v49 = vadd.f32 %v227_v43, %v31_v29  ;;  %v32_v55 = vld [vmem:[%s2849_s0 + $0x30] sm:$0x1]  ;;  %v33_v60 = vld [vmem:[%s2849_s0 + $0x32] sm:$0x1]  ;;  %v34_v61 = vld [vmem:[%s2849_s0 + $0x34] sm:$0x1] }
  0x19   :  { %v612_v50 = vmul.f32 0.5, %v416_v38  ;;  %v1020_v51 = vsel %vm1004_vm5, %v1019_v27, %v1018_v47  ;;  %v613_v52 = vmul.f32 0.5, %v417_v39  ;;  %v614_v53 = vmul.f32 0.5, %v418_v40  ;;  %v35_v62 = vld [vmem:[%s2849_s0 + $0x36] sm:$0x1] }
  0x1a   :  { %v615_v54 = vmul.f32 0.5, %v419_v44  ;;  %v1022_v56 = vsel %vm1007_vm6, %v1021_v28, %v1020_v51  ;;  %v616_v57 = vmul.f32 0.5, %v420_v45  ;;  %v617_v58 = vmul.f32 0.5, %v421_v46  ;;  %v36_v3 = vld [vmem:[%s2849_s0 + $0x38] sm:$0x1] }
  0x1b   :  { %v618_v59 = vmul.f32 0.5, %v422_v48  ;;  %1364 = vst.msk [vmem:[%s2850_s1 + $0x8] sm:$0xff] %vm1362_vm7, %v1022_v56  ;;  %v619_v63 = vmul.f32 0.5, %v423_v49  ;;  %v1023_v0 = vrot.slane %v613_v52, 7  ;;  %v1025_v1 = vrot.slane %v614_v53, 6 }
  0x1c   :  { %v1027_v2 = vrot.slane %v615_v54, 5  ;;  %v1029_v4 = vrot.slane %v616_v57, 4  ;;  %v1031_v5 = vrot.slane %v617_v58, 3  ;;  %v37_v6 = vld [vmem:[%s2849_s0 + $0x3a] sm:$0x1] }
  0x1d   :  { %v38_v7 = vld [vmem:[%s2849_s0 + $0x3c] sm:$0x1]  ;;  %v1024_v8 = vsel %vm989_vm0, %v1023_v0, %v612_v50  ;;  %v1033_v9 = vrot.slane %v618_v59, 2  ;;  %v1035_v10 = vrot.slane %v619_v63, 1  ;;  %v39_v11 = vld [vmem:[%s2849_s0 + $0x3e] sm:$0x1] }
  0x1e   :  { %v228_v12 = vld [vmem:[%s2849_s0 + $0x31] sm:$0x1]  ;;  %v1026_v13 = vsel %vm992_vm1, %v1025_v1, %v1024_v8  ;;  %v229_v14 = vld [vmem:[%s2849_s0 + $0x33] sm:$0x1]  ;;  %v230_v15 = vld [vmem:[%s2849_s0 + $0x35] sm:$0x1] }
  0x1f   :  { %v231_v16 = vld [vmem:[%s2849_s0 + $0x37] sm:$0x1]  ;;  %v424_v17 = vadd.f32 %v228_v12, %v32_v55  ;;  %v1028_v18 = vsel %vm995_vm2, %v1027_v2, %v1026_v13  ;;  %v232_v19 = vld [vmem:[%s2849_s0 + $0x39] sm:$0x1]  ;;  %v233_v20 = vld [vmem:[%s2849_s0 + $0x3b] sm:$0x1]  ;;  %v425_v22 = vadd.f32 %v229_v14, %v33_v60  ;;  %v426_v23 = vadd.f32 %v230_v15, %v34_v61 }
  0x20   :  { %v234_v21 = vld [vmem:[%s2849_s0 + $0x3d] sm:$0x1]  ;;  %v427_v24 = vadd.f32 %v231_v16, %v35_v62  ;;  %v1030_v25 = vsel %vm998_vm3, %v1029_v4, %v1028_v18  ;;  %v235_v26 = vld [vmem:[%s2849_s0 + $0x3f] sm:$0x1]  ;;  %v428_v27 = vadd.f32 %v232_v19, %v36_v3  ;;  %v429_v28 = vadd.f32 %v233_v20, %v37_v6  ;;  %v40_v38 = vld [vmem:[%s2849_s0 + $0x40] sm:$0x1] }
  0x21   :  { %v430_v29 = vadd.f32 %v234_v21, %v38_v7  ;;  %v1032_v30 = vsel %vm1001_vm4, %v1031_v5, %v1030_v25  ;;  %v431_v31 = vadd.f32 %v235_v26, %v39_v11  ;;  %v620_v32 = vmul.f32 0.5, %v424_v17  ;;  %v41_v39 = vld [vmem:[%s2849_s0 + $0x42] sm:$0x1]  ;;  %v42_v40 = vld [vmem:[%s2849_s0 + $0x44] sm:$0x1] }
  0x22   :  { %v621_v33 = vmul.f32 0.5, %v425_v22  ;;  %v1034_v34 = vsel %vm1004_vm5, %v1033_v9, %v1032_v30  ;;  %v622_v35 = vmul.f32 0.5, %v426_v23  ;;  %v623_v36 = vmul.f32 0.5, %v427_v24  ;;  %v43_v45 = vld [vmem:[%s2849_s0 + $0x46] sm:$0x1] }
  0x23   :  { %v624_v37 = vmul.f32 0.5, %v428_v27  ;;  %v1036_v41 = vsel %vm1007_vm6, %v1035_v10, %v1034_v34  ;;  %v625_v42 = vmul.f32 0.5, %v429_v28  ;;  %v626_v43 = vmul.f32 0.5, %v430_v29  ;;  %v44_v46 = vld [vmem:[%s2849_s0 + $0x48] sm:$0x1] }
  0x24   :  { %v627_v44 = vmul.f32 0.5, %v431_v31  ;;  %v45_v47 = vld [vmem:[%s2849_s0 + $0x4a] sm:$0x1]  ;;  %1365 = vst.msk [vmem:[%s2850_s1 + $0x10] sm:$0xff] %vm1362_vm7, %v1036_v41  ;;  %v1037_v48 = vrot.slane %v621_v33, 7  ;;  %v1039_v49 = vrot.slane %v622_v35, 6 }
  0x25   :  { %v1041_v50 = vrot.slane %v623_v36, 5  ;;  %v46_v51 = vld [vmem:[%s2849_s0 + $0x4c] sm:$0x1]  ;;  %v1043_v52 = vrot.slane %v624_v37, 4  ;;  %v1045_v53 = vrot.slane %v625_v42, 3  ;;  %v1047_v54 = vrot.slane %v626_v43, 2 }
  0x26   :  { %v1049_v55 = vrot.slane %v627_v44, 1  ;;  %v47_v56 = vld [vmem:[%s2849_s0 + $0x4e] sm:$0x1]  ;;  %v1038_v57 = vsel %vm989_vm0, %v1037_v48, %v620_v32  ;;  %v236_v58 = vld [vmem:[%s2849_s0 + $0x41] sm:$0x1] }
  0x27   :  { %v237_v59 = vld [vmem:[%s2849_s0 + $0x43] sm:$0x1]  ;;  %v238_v60 = vld [vmem:[%s2849_s0 + $0x45] sm:$0x1]  ;;  %v1040_v61 = vsel %vm992_vm1, %v1039_v49, %v1038_v57  ;;  %v239_v62 = vld [vmem:[%s2849_s0 + $0x47] sm:$0x1]  ;;  %v432_v1 = vadd.f32 %v236_v58, %v40_v38 }
  0x28   :  { %v240_v63 = vld [vmem:[%s2849_s0 + $0x49] sm:$0x1]  ;;  %v241_v0 = vld [vmem:[%s2849_s0 + $0x4b] sm:$0x1]  ;;  %v433_v2 = vadd.f32 %v237_v59, %v41_v39  ;;  %v434_v3 = vadd.f32 %v238_v60, %v42_v40  ;;  %v1042_v4 = vsel %vm995_vm2, %v1041_v50, %v1040_v61  ;;  %v242_v5 = vld [vmem:[%s2849_s0 + $0x4d] sm:$0x1]  ;;  %v435_v7 = vadd.f32 %v239_v62, %v43_v45 }
  0x29   :  { %v243_v6 = vld [vmem:[%s2849_s0 + $0x4f] sm:$0x1]  ;;  %v436_v8 = vadd.f32 %v240_v63, %v44_v46  ;;  %v437_v9 = vadd.f32 %v241_v0, %v45_v47  ;;  %v1044_v10 = vsel %vm998_vm3, %v1043_v52, %v1042_v4  ;;  %v438_v11 = vadd.f32 %v242_v5, %v46_v51  ;;  %v48_v18 = vld [vmem:[%s2849_s0 + $0x50] sm:$0x1]  ;;  %v49_v23 = vld [vmem:[%s2849_s0 + $0x52] sm:$0x1] }
  0x2a   :  { %v439_v12 = vadd.f32 %v243_v6, %v47_v56  ;;  %v628_v13 = vmul.f32 0.5, %v432_v1  ;;  %v1046_v14 = vsel %vm1001_vm4, %v1045_v53, %v1044_v10  ;;  %v629_v15 = vmul.f32 0.5, %v433_v2  ;;  %v50_v24 = vld [vmem:[%s2849_s0 + $0x54] sm:$0x1]  ;;  %v51_v25 = vld [vmem:[%s2849_s0 + $0x56] sm:$0x1] }
  0x2b   :  { %v630_v16 = vmul.f32 0.5, %v434_v3  ;;  %v631_v17 = vmul.f32 0.5, %v435_v7  ;;  %v1048_v19 = vsel %vm1004_vm5, %v1047_v54, %v1046_v14  ;;  %v632_v20 = vmul.f32 0.5, %v436_v8  ;;  %v52_v30 = vld [vmem:[%s2849_s0 + $0x58] sm:$0x1] }
  0x2c   :  { %v633_v21 = vmul.f32 0.5, %v437_v9  ;;  %v634_v22 = vmul.f32 0.5, %v438_v11  ;;  %v1050_v26 = vsel %vm1007_vm6, %v1049_v55, %v1048_v19  ;;  %v635_v27 = vmul.f32 0.5, %v439_v12  ;;  %v53_v31 = vld [vmem:[%s2849_s0 + $0x5a] sm:$0x1] }
  0x2d   :  { %v1051_v28 = vrot.slane %v629_v15, 7  ;;  %v1053_v29 = vrot.slane %v630_v16, 6  ;;  %1366 = vst.msk [vmem:[%s2850_s1 + $0x18] sm:$0xff] %vm1362_vm7, %v1050_v26  ;;  %v1055_v32 = vrot.slane %v631_v17, 5  ;;  %v1057_v33 = vrot.slane %v632_v20, 4 }
  0x2e   :  { %v1059_v34 = vrot.slane %v633_v21, 3  ;;  %v54_v35 = vld [vmem:[%s2849_s0 + $0x5c] sm:$0x1]  ;;  %v1061_v37 = vrot.slane %v634_v22, 2  ;;  %v1063_v38 = vrot.slane %v635_v27, 1 }
  0x2f   :  { %v1052_v36 = vsel %vm989_vm0, %v1051_v28, %v628_v13  ;;  %v55_v39 = vld [vmem:[%s2849_s0 + $0x5e] sm:$0x1]  ;;  %v244_v40 = vld [vmem:[%s2849_s0 + $0x51] sm:$0x1]  ;;  %v245_v42 = vld [vmem:[%s2849_s0 + $0x53] sm:$0x1] }
  0x30   :  { %v1054_v41 = vsel %vm992_vm1, %v1053_v29, %v1052_v36  ;;  %v246_v43 = vld [vmem:[%s2849_s0 + $0x55] sm:$0x1]  ;;  %v247_v44 = vld [vmem:[%s2849_s0 + $0x57] sm:$0x1]  ;;  %v440_v45 = vadd.f32 %v244_v40, %v48_v18  ;;  %v248_v47 = vld [vmem:[%s2849_s0 + $0x59] sm:$0x1]  ;;  %v441_v50 = vadd.f32 %v245_v42, %v49_v23 }
  0x31   :  { %v1056_v46 = vsel %vm995_vm2, %v1055_v32, %v1054_v41  ;;  %v249_v48 = vld [vmem:[%s2849_s0 + $0x5b] sm:$0x1]  ;;  %v250_v49 = vld [vmem:[%s2849_s0 + $0x5d] sm:$0x1]  ;;  %v442_v51 = vadd.f32 %v246_v43, %v50_v24  ;;  %v443_v52 = vadd.f32 %v247_v44, %v51_v25  ;;  %v251_v54 = vld [vmem:[%s2849_s0 + $0x5f] sm:$0x1]  ;;  %v444_v55 = vadd.f32 %v248_v47, %v52_v30 }
  0x32   :  { %v1058_v53 = vsel %vm998_vm3, %v1057_v33, %v1056_v46  ;;  %v445_v56 = vadd.f32 %v249_v48, %v53_v31  ;;  %v446_v57 = vadd.f32 %v250_v49, %v54_v35  ;;  %v447_v59 = vadd.f32 %v251_v54, %v55_v39  ;;  %v56_v2 = vld [vmem:[%s2849_s0 + $0x60] sm:$0x1]  ;;  %v57_v3 = vld [vmem:[%s2849_s0 + $0x62] sm:$0x1]  ;;  %v58_v4 = vld [vmem:[%s2849_s0 + $0x64] sm:$0x1] }
  0x33   :  { %v1060_v58 = vsel %vm1001_vm4, %v1059_v34, %v1058_v53  ;;  %v636_v60 = vmul.f32 0.5, %v440_v45  ;;  %v637_v61 = vmul.f32 0.5, %v441_v50  ;;  %v638_v63 = vmul.f32 0.5, %v442_v51  ;;  %v59_v9 = vld [vmem:[%s2849_s0 + $0x66] sm:$0x1] }
  0x34   :  { %v1062_v62 = vsel %vm1004_vm5, %v1061_v37, %v1060_v58  ;;  %v639_v0 = vmul.f32 0.5, %v443_v52  ;;  %v640_v1 = vmul.f32 0.5, %v444_v55  ;;  %v641_v6 = vmul.f32 0.5, %v445_v56  ;;  %v60_v10 = vld [vmem:[%s2849_s0 + $0x68] sm:$0x1] }
  0x35   :  { %v1064_v5 = vsel %vm1007_vm6, %v1063_v38, %v1062_v62  ;;  %v642_v7 = vmul.f32 0.5, %v446_v57  ;;  %v643_v8 = vmul.f32 0.5, %v447_v59  ;;  %v61_v11 = vld [vmem:[%s2849_s0 + $0x6a] sm:$0x1]  ;;  %v1065_v12 = vrot.slane %v637_v61, 7 }
  0x36   :  { %1367 = vst.msk [vmem:[%s2850_s1 + $0x20] sm:$0xff] %vm1362_vm7, %v1064_v5  ;;  %v1067_v13 = vrot.slane %v638_v63, 6  ;;  %v1069_v14 = vrot.slane %v639_v0, 5  ;;  %v62_v15 = vld [vmem:[%s2849_s0 + $0x6c] sm:$0x1]  ;;  %v1071_v16 = vrot.slane %v640_v1, 4 }
  0x37   :  { %v1073_v17 = vrot.slane %v641_v6, 3  ;;  %v1075_v18 = vrot.slane %v642_v7, 2  ;;  %v1077_v19 = vrot.slane %v643_v8, 1  ;;  %v63_v20 = vld [vmem:[%s2849_s0 + $0x6e] sm:$0x1]  ;;  %v1066_v21 = vsel %vm989_vm0, %v1065_v12, %v636_v60 }
  0x38   :  { %v252_v22 = vld [vmem:[%s2849_s0 + $0x61] sm:$0x1]  ;;  %v253_v23 = vld [vmem:[%s2849_s0 + $0x63] sm:$0x1]  ;;  %v254_v24 = vld [vmem:[%s2849_s0 + $0x65] sm:$0x1]  ;;  %v1068_v25 = vsel %vm992_vm1, %v1067_v13, %v1066_v21 }
  0x39   :  { %v255_v26 = vld [vmem:[%s2849_s0 + $0x67] sm:$0x1]  ;;  %v256_v27 = vld [vmem:[%s2849_s0 + $0x69] sm:$0x1]  ;;  %v257_v28 = vld [vmem:[%s2849_s0 + $0x6b] sm:$0x1]  ;;  %v448_v29 = vadd.f32 %v252_v22, %v56_v2  ;;  %v449_v30 = vadd.f32 %v253_v23, %v57_v3  ;;  %v450_v31 = vadd.f32 %v254_v24, %v58_v4  ;;  %v1070_v32 = vsel %vm995_vm2, %v1069_v14, %v1068_v25 }
  0x3a   :  { %v258_v33 = vld [vmem:[%s2849_s0 + $0x6d] sm:$0x1]  ;;  %v259_v34 = vld [vmem:[%s2849_s0 + $0x6f] sm:$0x1]  ;;  %v451_v35 = vadd.f32 %v255_v26, %v59_v9  ;;  %v452_v36 = vadd.f32 %v256_v27, %v60_v10  ;;  %v453_v37 = vadd.f32 %v257_v28, %v61_v11  ;;  %v1072_v38 = vsel %vm998_vm3, %v1071_v16, %v1070_v32  ;;  %v64_v46 = vld [vmem:[%s2849_s0 + $0x70] sm:$0x1] }
  0x3b   :  { %v454_v39 = vadd.f32 %v258_v33, %v62_v15  ;;  %v455_v40 = vadd.f32 %v259_v34, %v63_v20  ;;  %v644_v41 = vmul.f32 0.5, %v448_v29  ;;  %v1074_v42 = vsel %vm1001_vm4, %v1073_v17, %v1072_v38  ;;  %v65_v51 = vld [vmem:[%s2849_s0 + $0x72] sm:$0x1]  ;;  %v66_v52 = vld [vmem:[%s2849_s0 + $0x74] sm:$0x1] }
  0x3c   :  { %v645_v43 = vmul.f32 0.5, %v449_v30  ;;  %v646_v44 = vmul.f32 0.5, %v450_v31  ;;  %v647_v45 = vmul.f32 0.5, %v451_v35  ;;  %v1076_v47 = vsel %vm1004_vm5, %v1075_v18, %v1074_v42  ;;  %v67_v53 = vld [vmem:[%s2849_s0 + $0x76] sm:$0x1] }
  0x3d   :  { %v648_v48 = vmul.f32 0.5, %v452_v36  ;;  %v649_v49 = vmul.f32 0.5, %v453_v37  ;;  %v650_v50 = vmul.f32 0.5, %v454_v39  ;;  %v1078_v54 = vsel %vm1007_vm6, %v1077_v19, %v1076_v47  ;;  %v68_v58 = vld [vmem:[%s2849_s0 + $0x78] sm:$0x1] }
  0x3e   :  { %v651_v55 = vmul.f32 0.5, %v455_v40  ;;  %v1079_v56 = vrot.slane %v645_v43, 7  ;;  %v1081_v57 = vrot.slane %v646_v44, 6  ;;  %v69_v59 = vld [vmem:[%s2849_s0 + $0x7a] sm:$0x1]  ;;  %1368 = vst.msk [vmem:[%s2850_s1 + $0x28] sm:$0xff] %vm1362_vm7, %v1078_v54 }
  0x3f   :  { %v1083_v60 = vrot.slane %v647_v45, 5  ;;  %v1085_v61 = vrot.slane %v648_v48, 4  ;;  %v1087_v62 = vrot.slane %v649_v49, 3  ;;  %v70_v63 = vld [vmem:[%s2849_s0 + $0x7c] sm:$0x1]  ;;  %v1089_v1 = vrot.slane %v650_v50, 2 }
  0x40   :  { %v1080_v0 = vsel %vm989_vm0, %v1079_v56, %v644_v41  ;;  %v1091_v2 = vrot.slane %v651_v55, 1  ;;  %v71_v3 = vld [vmem:[%s2849_s0 + $0x7e] sm:$0x1]  ;;  %v260_v4 = vld [vmem:[%s2849_s0 + $0x71] sm:$0x1] }
  0x41   :  { %v1082_v5 = vsel %vm992_vm1, %v1081_v57, %v1080_v0  ;;  %v261_v6 = vld [vmem:[%s2849_s0 + $0x73] sm:$0x1]  ;;  %v262_v7 = vld [vmem:[%s2849_s0 + $0x75] sm:$0x1]  ;;  %v263_v8 = vld [vmem:[%s2849_s0 + $0x77] sm:$0x1]  ;;  %v456_v9 = vadd.f32 %v260_v4, %v64_v46 }
  0x42   :  { %v1084_v10 = vsel %vm995_vm2, %v1083_v60, %v1082_v5  ;;  %v264_v11 = vld [vmem:[%s2849_s0 + $0x79] sm:$0x1]  ;;  %v265_v12 = vld [vmem:[%s2849_s0 + $0x7b] sm:$0x1]  ;;  %v266_v13 = vld [vmem:[%s2849_s0 + $0x7d] sm:$0x1]  ;;  %v457_v14 = vadd.f32 %v261_v6, %v65_v51  ;;  %v458_v15 = vadd.f32 %v262_v7, %v66_v52  ;;  %v459_v16 = vadd.f32 %v263_v8, %v67_v53 }
  0x43   :  { %v1086_v17 = vsel %vm998_vm3, %v1085_v61, %v1084_v10  ;;  %v267_v18 = vld [vmem:[%s2849_s0 + $0x7f] sm:$0x1]  ;;  %v460_v19 = vadd.f32 %v264_v11, %v68_v58  ;;  %v461_v20 = vadd.f32 %v265_v12, %v69_v59  ;;  %v462_v21 = vadd.f32 %v266_v13, %v70_v63  ;;  %v72_v30 = vld [vmem:[%s2849_s0 + $0x80] sm:$0x1]  ;;  %v73_v31 = vld [vmem:[%s2849_s0 + $0x82] sm:$0x1] }
  0x44   :  { %v1088_v22 = vsel %vm1001_vm4, %v1087_v62, %v1086_v17  ;;  %v463_v23 = vadd.f32 %v267_v18, %v71_v3  ;;  %v652_v24 = vmul.f32 0.5, %v456_v9  ;;  %v653_v25 = vmul.f32 0.5, %v457_v14  ;;  %v74_v32 = vld [vmem:[%s2849_s0 + $0x84] sm:$0x1]  ;;  %v75_v37 = vld [vmem:[%s2849_s0 + $0x86] sm:$0x1] }
  0x45   :  { %v1090_v26 = vsel %vm1004_vm5, %v1089_v1, %v1088_v22  ;;  %v654_v27 = vmul.f32 0.5, %v458_v15  ;;  %v655_v28 = vmul.f32 0.5, %v459_v16  ;;  %v656_v29 = vmul.f32 0.5, %v460_v19  ;;  %v76_v38 = vld [vmem:[%s2849_s0 + $0x88] sm:$0x1] }
  0x46   :  { %v1092_v33 = vsel %vm1007_vm6, %v1091_v2, %v1090_v26  ;;  %v657_v34 = vmul.f32 0.5, %v461_v20  ;;  %v658_v35 = vmul.f32 0.5, %v462_v21  ;;  %v659_v36 = vmul.f32 0.5, %v463_v23  ;;  %v77_v39 = vld [vmem:[%s2849_s0 + $0x8a] sm:$0x1] }
  0x47   :  { %1369 = vst.msk [vmem:[%s2850_s1 + $0x30] sm:$0xff] %vm1362_vm7, %v1092_v33  ;;  %v1093_v40 = vrot.slane %v653_v25, 7  ;;  %v1095_v41 = vrot.slane %v654_v27, 6  ;;  %v1097_v42 = vrot.slane %v655_v28, 5  ;;  %v78_v43 = vld [vmem:[%s2849_s0 + $0x8c] sm:$0x1] }
  0x48   :  { %v1099_v44 = vrot.slane %v656_v29, 4  ;;  %v1101_v45 = vrot.slane %v657_v34, 3  ;;  %v1103_v46 = vrot.slane %v658_v35, 2  ;;  %v1105_v47 = vrot.slane %v659_v36, 1  ;;  %v79_v48 = vld [vmem:[%s2849_s0 + $0x8e] sm:$0x1] }
  0x49   :  { %v1094_v49 = vsel %vm989_vm0, %v1093_v40, %v652_v24  ;;  %v268_v50 = vld [vmem:[%s2849_s0 + $0x81] sm:$0x1]  ;;  %v269_v51 = vld [vmem:[%s2849_s0 + $0x83] sm:$0x1]  ;;  %v270_v52 = vld [vmem:[%s2849_s0 + $0x85] sm:$0x1] }
  0x4a   :  { %v1096_v53 = vsel %vm992_vm1, %v1095_v41, %v1094_v49  ;;  %v271_v54 = vld [vmem:[%s2849_s0 + $0x87] sm:$0x1]  ;;  %v272_v55 = vld [vmem:[%s2849_s0 + $0x89] sm:$0x1]  ;;  %v273_v56 = vld [vmem:[%s2849_s0 + $0x8b] sm:$0x1]  ;;  %v464_v57 = vadd.f32 %v268_v50, %v72_v30  ;;  %v465_v58 = vadd.f32 %v269_v51, %v73_v31  ;;  %v466_v59 = vadd.f32 %v270_v52, %v74_v32 }
  0x4b   :  { %v1098_v60 = vsel %vm995_vm2, %v1097_v42, %v1096_v53  ;;  %v274_v61 = vld [vmem:[%s2849_s0 + $0x8d] sm:$0x1]  ;;  %v275_v62 = vld [vmem:[%s2849_s0 + $0x8f] sm:$0x1]  ;;  %v467_v63 = vadd.f32 %v271_v54, %v75_v37  ;;  %v468_v0 = vadd.f32 %v272_v55, %v76_v38  ;;  %v469_v1 = vadd.f32 %v273_v56, %v77_v39  ;;  %v80_v10 = vld [vmem:[%s2849_s0 + $0x90] sm:$0x1] }
  0x4c   :  { %v1100_v2 = vsel %vm998_vm3, %v1099_v44, %v1098_v60  ;;  %v470_v3 = vadd.f32 %v274_v61, %v78_v43  ;;  %v471_v4 = vadd.f32 %v275_v62, %v79_v48  ;;  %v660_v5 = vmul.f32 0.5, %v464_v57  ;;  %v81_v15 = vld [vmem:[%s2849_s0 + $0x92] sm:$0x1]  ;;  %v82_v16 = vld [vmem:[%s2849_s0 + $0x94] sm:$0x1] }
  0x4d   :  { %v1102_v6 = vsel %vm1001_vm4, %v1101_v45, %v1100_v2  ;;  %v661_v7 = vmul.f32 0.5, %v465_v58  ;;  %v662_v8 = vmul.f32 0.5, %v466_v59  ;;  %v663_v9 = vmul.f32 0.5, %v467_v63  ;;  %v83_v17 = vld [vmem:[%s2849_s0 + $0x96] sm:$0x1] }
  0x4e   :  { %v1104_v11 = vsel %vm1004_vm5, %v1103_v46, %v1102_v6  ;;  %v664_v12 = vmul.f32 0.5, %v468_v0  ;;  %v665_v13 = vmul.f32 0.5, %v469_v1  ;;  %v666_v14 = vmul.f32 0.5, %v470_v3  ;;  %v84_v22 = vld [vmem:[%s2849_s0 + $0x98] sm:$0x1] }
  0x4f   :  { %v1106_v18 = vsel %vm1007_vm6, %v1105_v47, %v1104_v11  ;;  %v667_v19 = vmul.f32 0.5, %v471_v4  ;;  %v1107_v20 = vrot.slane %v661_v7, 7  ;;  %v1109_v21 = vrot.slane %v662_v8, 6  ;;  %v85_v23 = vld [vmem:[%s2849_s0 + $0x9a] sm:$0x1] }
  0x50   :  { %1370 = vst.msk [vmem:[%s2850_s1 + $0x38] sm:$0xff] %vm1362_vm7, %v1106_v18  ;;  %v1111_v24 = vrot.slane %v663_v9, 5  ;;  %v1113_v25 = vrot.slane %v664_v12, 4  ;;  %v1115_v26 = vrot.slane %v665_v13, 3  ;;  %v86_v27 = vld [vmem:[%s2849_s0 + $0x9c] sm:$0x1] }
  0x51   :  { %v1108_v28 = vsel %vm989_vm0, %v1107_v20, %v660_v5  ;;  %v1117_v29 = vrot.slane %v666_v14, 2  ;;  %v1119_v30 = vrot.slane %v667_v19, 1  ;;  %v87_v31 = vld [vmem:[%s2849_s0 + $0x9e] sm:$0x1]  ;;  %v276_v32 = vld [vmem:[%s2849_s0 + $0x91] sm:$0x1] }
  0x52   :  { %v1110_v33 = vsel %vm992_vm1, %v1109_v21, %v1108_v28  ;;  %v277_v34 = vld [vmem:[%s2849_s0 + $0x93] sm:$0x1]  ;;  %v278_v35 = vld [vmem:[%s2849_s0 + $0x95] sm:$0x1]  ;;  %v279_v36 = vld [vmem:[%s2849_s0 + $0x97] sm:$0x1]  ;;  %v472_v37 = vadd.f32 %v276_v32, %v80_v10 }
  0x53   :  { %v1112_v38 = vsel %vm995_vm2, %v1111_v24, %v1110_v33  ;;  %v280_v39 = vld [vmem:[%s2849_s0 + $0x99] sm:$0x1]  ;;  %v281_v40 = vld [vmem:[%s2849_s0 + $0x9b] sm:$0x1]  ;;  %v282_v41 = vld [vmem:[%s2849_s0 + $0x9d] sm:$0x1]  ;;  %v473_v42 = vadd.f32 %v277_v34, %v81_v15  ;;  %v474_v43 = vadd.f32 %v278_v35, %v82_v16  ;;  %v475_v44 = vadd.f32 %v279_v36, %v83_v17 }
  0x54   :  { %v1114_v45 = vsel %vm998_vm3, %v1113_v25, %v1112_v38  ;;  %v283_v46 = vld [vmem:[%s2849_s0 + $0x9f] sm:$0x1]  ;;  %v476_v47 = vadd.f32 %v280_v39, %v84_v22  ;;  %v477_v48 = vadd.f32 %v281_v40, %v85_v23  ;;  %v478_v49 = vadd.f32 %v282_v41, %v86_v27  ;;  %v88_v58 = vld [vmem:[%s2849_s0 + $0xa0] sm:$0x1]  ;;  %v89_v59 = vld [vmem:[%s2849_s0 + $0xa2] sm:$0x1] }
  0x55   :  { %v1116_v50 = vsel %vm1001_vm4, %v1115_v26, %v1114_v45  ;;  %v479_v51 = vadd.f32 %v283_v46, %v87_v31  ;;  %v668_v52 = vmul.f32 0.5, %v472_v37  ;;  %v669_v53 = vmul.f32 0.5, %v473_v42  ;;  %v90_v60 = vld [vmem:[%s2849_s0 + $0xa4] sm:$0x1]  ;;  %v91_v1 = vld [vmem:[%s2849_s0 + $0xa6] sm:$0x1] }
  0x56   :  { %v1118_v54 = vsel %vm1004_vm5, %v1117_v29, %v1116_v50  ;;  %v670_v55 = vmul.f32 0.5, %v474_v43  ;;  %v671_v56 = vmul.f32 0.5, %v475_v44  ;;  %v672_v57 = vmul.f32 0.5, %v476_v47  ;;  %v92_v2 = vld [vmem:[%s2849_s0 + $0xa8] sm:$0x1] }
  0x57   :  { %v1120_v61 = vsel %vm1007_vm6, %v1119_v30, %v1118_v54  ;;  %v673_v62 = vmul.f32 0.5, %v477_v48  ;;  %v674_v63 = vmul.f32 0.5, %v478_v49  ;;  %v675_v0 = vmul.f32 0.5, %v479_v51  ;;  %v93_v3 = vld [vmem:[%s2849_s0 + $0xaa] sm:$0x1] }
  0x58   :  { %1371 = vst.msk [vmem:[%s2850_s1 + $0x40] sm:$0xff] %vm1362_vm7, %v1120_v61  ;;  %v1121_v4 = vrot.slane %v669_v53, 7  ;;  %v1123_v5 = vrot.slane %v670_v55, 6  ;;  %v1125_v6 = vrot.slane %v671_v56, 5  ;;  %v94_v7 = vld [vmem:[%s2849_s0 + $0xac] sm:$0x1] }
  0x59   :  { %v1127_v8 = vrot.slane %v672_v57, 4  ;;  %v1129_v9 = vrot.slane %v673_v62, 3  ;;  %v1131_v10 = vrot.slane %v674_v63, 2  ;;  %v1133_v11 = vrot.slane %v675_v0, 1  ;;  %v95_v12 = vld [vmem:[%s2849_s0 + $0xae] sm:$0x1] }
  0x5a   :  { %v1122_v13 = vsel %vm989_vm0, %v1121_v4, %v668_v52  ;;  %v284_v14 = vld [vmem:[%s2849_s0 + $0xa1] sm:$0x1]  ;;  %v285_v15 = vld [vmem:[%s2849_s0 + $0xa3] sm:$0x1]  ;;  %v286_v16 = vld [vmem:[%s2849_s0 + $0xa5] sm:$0x1] }
  0x5b   :  { %v1124_v17 = vsel %vm992_vm1, %v1123_v5, %v1122_v13  ;;  %v287_v18 = vld [vmem:[%s2849_s0 + $0xa7] sm:$0x1]  ;;  %v288_v19 = vld [vmem:[%s2849_s0 + $0xa9] sm:$0x1]  ;;  %v289_v20 = vld [vmem:[%s2849_s0 + $0xab] sm:$0x1]  ;;  %v480_v21 = vadd.f32 %v284_v14, %v88_v58  ;;  %v481_v22 = vadd.f32 %v285_v15, %v89_v59  ;;  %v482_v23 = vadd.f32 %v286_v16, %v90_v60 }
  0x5c   :  { %v1126_v24 = vsel %vm995_vm2, %v1125_v6, %v1124_v17  ;;  %v290_v25 = vld [vmem:[%s2849_s0 + $0xad] sm:$0x1]  ;;  %v291_v26 = vld [vmem:[%s2849_s0 + $0xaf] sm:$0x1]  ;;  %v483_v27 = vadd.f32 %v287_v18, %v91_v1  ;;  %v484_v28 = vadd.f32 %v288_v19, %v92_v2  ;;  %v485_v29 = vadd.f32 %v289_v20, %v93_v3  ;;  %v96_v38 = vld [vmem:[%s2849_s0 + $0xb0] sm:$0x1] }
  0x5d   :  { %v1128_v30 = vsel %vm998_vm3, %v1127_v8, %v1126_v24  ;;  %v486_v31 = vadd.f32 %v290_v25, %v94_v7  ;;  %v487_v32 = vadd.f32 %v291_v26, %v95_v12  ;;  %v676_v33 = vmul.f32 0.5, %v480_v21  ;;  %v97_v43 = vld [vmem:[%s2849_s0 + $0xb2] sm:$0x1]  ;;  %v98_v44 = vld [vmem:[%s2849_s0 + $0xb4] sm:$0x1] }
  0x5e   :  { %v1130_v34 = vsel %vm1001_vm4, %v1129_v9, %v1128_v30  ;;  %v677_v35 = vmul.f32 0.5, %v481_v22  ;;  %v678_v36 = vmul.f32 0.5, %v482_v23  ;;  %v679_v37 = vmul.f32 0.5, %v483_v27  ;;  %v99_v45 = vld [vmem:[%s2849_s0 + $0xb6] sm:$0x1] }
  0x5f   :  { %v1132_v39 = vsel %vm1004_vm5, %v1131_v10, %v1130_v34  ;;  %v680_v40 = vmul.f32 0.5, %v484_v28  ;;  %v681_v41 = vmul.f32 0.5, %v485_v29  ;;  %v682_v42 = vmul.f32 0.5, %v486_v31  ;;  %v100_v50 = vld [vmem:[%s2849_s0 + $0xb8] sm:$0x1] }
  0x60   :  { %v1134_v46 = vsel %vm1007_vm6, %v1133_v11, %v1132_v39  ;;  %v683_v47 = vmul.f32 0.5, %v487_v32  ;;  %v1135_v48 = vrot.slane %v677_v35, 7  ;;  %v1137_v49 = vrot.slane %v678_v36, 6  ;;  %v101_v51 = vld [vmem:[%s2849_s0 + $0xba] sm:$0x1] }
  0x61   :  { %1372 = vst.msk [vmem:[%s2850_s1 + $0x48] sm:$0xff] %vm1362_vm7, %v1134_v46  ;;  %v1139_v52 = vrot.slane %v679_v37, 5  ;;  %v1141_v53 = vrot.slane %v680_v40, 4  ;;  %v1143_v54 = vrot.slane %v681_v41, 3  ;;  %v102_v55 = vld [vmem:[%s2849_s0 + $0xbc] sm:$0x1] }
  0x62   :  { %v1136_v56 = vsel %vm989_vm0, %v1135_v48, %v676_v33  ;;  %v1145_v57 = vrot.slane %v682_v42, 2  ;;  %v1147_v58 = vrot.slane %v683_v47, 1  ;;  %v103_v59 = vld [vmem:[%s2849_s0 + $0xbe] sm:$0x1]  ;;  %v292_v60 = vld [vmem:[%s2849_s0 + $0xb1] sm:$0x1] }
  0x63   :  { %v1138_v61 = vsel %vm992_vm1, %v1137_v49, %v1136_v56  ;;  %v293_v62 = vld [vmem:[%s2849_s0 + $0xb3] sm:$0x1]  ;;  %v294_v63 = vld [vmem:[%s2849_s0 + $0xb5] sm:$0x1]  ;;  %v295_v0 = vld [vmem:[%s2849_s0 + $0xb7] sm:$0x1]  ;;  %v488_v1 = vadd.f32 %v292_v60, %v96_v38 }
  0x64   :  { %v1140_v2 = vsel %vm995_vm2, %v1139_v52, %v1138_v61  ;;  %v296_v3 = vld [vmem:[%s2849_s0 + $0xb9] sm:$0x1]  ;;  %v297_v4 = vld [vmem:[%s2849_s0 + $0xbb] sm:$0x1]  ;;  %v298_v5 = vld [vmem:[%s2849_s0 + $0xbd] sm:$0x1]  ;;  %v489_v6 = vadd.f32 %v293_v62, %v97_v43  ;;  %v490_v7 = vadd.f32 %v294_v63, %v98_v44  ;;  %v491_v8 = vadd.f32 %v295_v0, %v99_v45 }
  0x65   :  { %v1142_v9 = vsel %vm998_vm3, %v1141_v53, %v1140_v2  ;;  %v299_v10 = vld [vmem:[%s2849_s0 + $0xbf] sm:$0x1]  ;;  %v492_v11 = vadd.f32 %v296_v3, %v100_v50  ;;  %v493_v12 = vadd.f32 %v297_v4, %v101_v51  ;;  %v494_v13 = vadd.f32 %v298_v5, %v102_v55  ;;  %v104_v22 = vld [vmem:[%s2849_s0 + $0xc0] sm:$0x1]  ;;  %v105_v23 = vld [vmem:[%s2849_s0 + $0xc2] sm:$0x1] }
  0x66   :  { %v1144_v14 = vsel %vm1001_vm4, %v1143_v54, %v1142_v9  ;;  %v495_v15 = vadd.f32 %v299_v10, %v103_v59  ;;  %v684_v16 = vmul.f32 0.5, %v488_v1  ;;  %v685_v17 = vmul.f32 0.5, %v489_v6  ;;  %v106_v24 = vld [vmem:[%s2849_s0 + $0xc4] sm:$0x1]  ;;  %v107_v29 = vld [vmem:[%s2849_s0 + $0xc6] sm:$0x1] }
  0x67   :  { %v1146_v18 = vsel %vm1004_vm5, %v1145_v57, %v1144_v14  ;;  %v686_v19 = vmul.f32 0.5, %v490_v7  ;;  %v687_v20 = vmul.f32 0.5, %v491_v8  ;;  %v688_v21 = vmul.f32 0.5, %v492_v11  ;;  %v108_v30 = vld [vmem:[%s2849_s0 + $0xc8] sm:$0x1] }
  0x68   :  { %v1148_v25 = vsel %vm1007_vm6, %v1147_v58, %v1146_v18  ;;  %v689_v26 = vmul.f32 0.5, %v493_v12  ;;  %v690_v27 = vmul.f32 0.5, %v494_v13  ;;  %v691_v28 = vmul.f32 0.5, %v495_v15  ;;  %v109_v31 = vld [vmem:[%s2849_s0 + $0xca] sm:$0x1] }
  0x69   :  { %1373 = vst.msk [vmem:[%s2850_s1 + $0x50] sm:$0xff] %vm1362_vm7, %v1148_v25  ;;  %v1149_v32 = vrot.slane %v685_v17, 7  ;;  %v1151_v33 = vrot.slane %v686_v19, 6  ;;  %v1153_v34 = vrot.slane %v687_v20, 5  ;;  %v110_v35 = vld [vmem:[%s2849_s0 + $0xcc] sm:$0x1] }
  0x6a   :  { %v1155_v36 = vrot.slane %v688_v21, 4  ;;  %v1157_v37 = vrot.slane %v689_v26, 3  ;;  %v1159_v38 = vrot.slane %v690_v27, 2  ;;  %v1161_v39 = vrot.slane %v691_v28, 1  ;;  %v111_v40 = vld [vmem:[%s2849_s0 + $0xce] sm:$0x1] }
  0x6b   :  { %v1150_v41 = vsel %vm989_vm0, %v1149_v32, %v684_v16  ;;  %v300_v42 = vld [vmem:[%s2849_s0 + $0xc1] sm:$0x1]  ;;  %v301_v43 = vld [vmem:[%s2849_s0 + $0xc3] sm:$0x1]  ;;  %v302_v44 = vld [vmem:[%s2849_s0 + $0xc5] sm:$0x1] }
  0x6c   :  { %v1152_v45 = vsel %vm992_vm1, %v1151_v33, %v1150_v41  ;;  %v303_v46 = vld [vmem:[%s2849_s0 + $0xc7] sm:$0x1]  ;;  %v304_v47 = vld [vmem:[%s2849_s0 + $0xc9] sm:$0x1]  ;;  %v305_v48 = vld [vmem:[%s2849_s0 + $0xcb] sm:$0x1]  ;;  %v496_v49 = vadd.f32 %v300_v42, %v104_v22  ;;  %v497_v50 = vadd.f32 %v301_v43, %v105_v23  ;;  %v498_v51 = vadd.f32 %v302_v44, %v106_v24 }
  0x6d   :  { %v1154_v52 = vsel %vm995_vm2, %v1153_v34, %v1152_v45  ;;  %v306_v53 = vld [vmem:[%s2849_s0 + $0xcd] sm:$0x1]  ;;  %v307_v54 = vld [vmem:[%s2849_s0 + $0xcf] sm:$0x1]  ;;  %v499_v55 = vadd.f32 %v303_v46, %v107_v29  ;;  %v500_v56 = vadd.f32 %v304_v47, %v108_v30  ;;  %v501_v57 = vadd.f32 %v305_v48, %v109_v31  ;;  %v112_v2 = vld [vmem:[%s2849_s0 + $0xd0] sm:$0x1] }
  0x6e   :  { %v1156_v58 = vsel %vm998_vm3, %v1155_v36, %v1154_v52  ;;  %v502_v59 = vadd.f32 %v306_v53, %v110_v35  ;;  %v503_v60 = vadd.f32 %v307_v54, %v111_v40  ;;  %v692_v61 = vmul.f32 0.5, %v496_v49  ;;  %v113_v7 = vld [vmem:[%s2849_s0 + $0xd2] sm:$0x1]  ;;  %v114_v8 = vld [vmem:[%s2849_s0 + $0xd4] sm:$0x1] }
  0x6f   :  { %v1158_v62 = vsel %vm1001_vm4, %v1157_v37, %v1156_v58  ;;  %v693_v63 = vmul.f32 0.5, %v497_v50  ;;  %v694_v0 = vmul.f32 0.5, %v498_v51  ;;  %v695_v1 = vmul.f32 0.5, %v499_v55  ;;  %v115_v9 = vld [vmem:[%s2849_s0 + $0xd6] sm:$0x1] }
  0x70   :  { %v1160_v3 = vsel %vm1004_vm5, %v1159_v38, %v1158_v62  ;;  %v696_v4 = vmul.f32 0.5, %v500_v56  ;;  %v697_v5 = vmul.f32 0.5, %v501_v57  ;;  %v698_v6 = vmul.f32 0.5, %v502_v59  ;;  %v116_v14 = vld [vmem:[%s2849_s0 + $0xd8] sm:$0x1] }
  0x71   :  { %v1162_v10 = vsel %vm1007_vm6, %v1161_v39, %v1160_v3  ;;  %v699_v11 = vmul.f32 0.5, %v503_v60  ;;  %v1163_v12 = vrot.slane %v693_v63, 7  ;;  %v1165_v13 = vrot.slane %v694_v0, 6  ;;  %v117_v15 = vld [vmem:[%s2849_s0 + $0xda] sm:$0x1] }
  0x72   :  { %1374 = vst.msk [vmem:[%s2850_s1 + $0x58] sm:$0xff] %vm1362_vm7, %v1162_v10  ;;  %v1167_v16 = vrot.slane %v695_v1, 5  ;;  %v1169_v17 = vrot.slane %v696_v4, 4  ;;  %v1171_v18 = vrot.slane %v697_v5, 3  ;;  %v118_v19 = vld [vmem:[%s2849_s0 + $0xdc] sm:$0x1] }
  0x73   :  { %v1164_v20 = vsel %vm989_vm0, %v1163_v12, %v692_v61  ;;  %v1173_v21 = vrot.slane %v698_v6, 2  ;;  %v1175_v22 = vrot.slane %v699_v11, 1  ;;  %v119_v23 = vld [vmem:[%s2849_s0 + $0xde] sm:$0x1]  ;;  %v308_v24 = vld [vmem:[%s2849_s0 + $0xd1] sm:$0x1] }
  0x74   :  { %v1166_v25 = vsel %vm992_vm1, %v1165_v13, %v1164_v20  ;;  %v309_v26 = vld [vmem:[%s2849_s0 + $0xd3] sm:$0x1]  ;;  %v310_v27 = vld [vmem:[%s2849_s0 + $0xd5] sm:$0x1]  ;;  %v311_v28 = vld [vmem:[%s2849_s0 + $0xd7] sm:$0x1]  ;;  %v504_v29 = vadd.f32 %v308_v24, %v112_v2 }
  0x75   :  { %v1168_v30 = vsel %vm995_vm2, %v1167_v16, %v1166_v25  ;;  %v312_v31 = vld [vmem:[%s2849_s0 + $0xd9] sm:$0x1]  ;;  %v313_v32 = vld [vmem:[%s2849_s0 + $0xdb] sm:$0x1]  ;;  %v314_v33 = vld [vmem:[%s2849_s0 + $0xdd] sm:$0x1]  ;;  %v505_v34 = vadd.f32 %v309_v26, %v113_v7  ;;  %v506_v35 = vadd.f32 %v310_v27, %v114_v8  ;;  %v507_v36 = vadd.f32 %v311_v28, %v115_v9 }
  0x76   :  { %v1170_v37 = vsel %vm998_vm3, %v1169_v17, %v1168_v30  ;;  %v315_v38 = vld [vmem:[%s2849_s0 + $0xdf] sm:$0x1]  ;;  %v508_v39 = vadd.f32 %v312_v31, %v116_v14  ;;  %v509_v40 = vadd.f32 %v313_v32, %v117_v15  ;;  %v510_v41 = vadd.f32 %v314_v33, %v118_v19  ;;  %v120_v50 = vld [vmem:[%s2849_s0 + $0xe0] sm:$0x1]  ;;  %v121_v51 = vld [vmem:[%s2849_s0 + $0xe2] sm:$0x1] }
  0x77   :  { %v1172_v42 = vsel %vm1001_vm4, %v1171_v18, %v1170_v37  ;;  %v511_v43 = vadd.f32 %v315_v38, %v119_v23  ;;  %v700_v44 = vmul.f32 0.5, %v504_v29  ;;  %v701_v45 = vmul.f32 0.5, %v505_v34  ;;  %v122_v52 = vld [vmem:[%s2849_s0 + $0xe4] sm:$0x1]  ;;  %v123_v57 = vld [vmem:[%s2849_s0 + $0xe6] sm:$0x1] }
  0x78   :  { %v1174_v46 = vsel %vm1004_vm5, %v1173_v21, %v1172_v42  ;;  %v702_v47 = vmul.f32 0.5, %v506_v35  ;;  %v703_v48 = vmul.f32 0.5, %v507_v36  ;;  %v704_v49 = vmul.f32 0.5, %v508_v39  ;;  %v124_v58 = vld [vmem:[%s2849_s0 + $0xe8] sm:$0x1] }
  0x79   :  { %v1176_v53 = vsel %vm1007_vm6, %v1175_v22, %v1174_v46  ;;  %v705_v54 = vmul.f32 0.5, %v509_v40  ;;  %v706_v55 = vmul.f32 0.5, %v510_v41  ;;  %v707_v56 = vmul.f32 0.5, %v511_v43  ;;  %v125_v59 = vld [vmem:[%s2849_s0 + $0xea] sm:$0x1] }
  0x7a   :  { %1375 = vst.msk [vmem:[%s2850_s1 + $0x60] sm:$0xff] %vm1362_vm7, %v1176_v53  ;;  %v1177_v60 = vrot.slane %v701_v45, 7  ;;  %v1179_v61 = vrot.slane %v702_v47, 6  ;;  %v1181_v62 = vrot.slane %v703_v48, 5  ;;  %v126_v63 = vld [vmem:[%s2849_s0 + $0xec] sm:$0x1] }
  0x7b   :  { %v1183_v0 = vrot.slane %v704_v49, 4  ;;  %v1185_v1 = vrot.slane %v705_v54, 3  ;;  %v1187_v2 = vrot.slane %v706_v55, 2  ;;  %v1189_v3 = vrot.slane %v707_v56, 1  ;;  %v127_v4 = vld [vmem:[%s2849_s0 + $0xee] sm:$0x1] }
  0x7c   :  { %v1178_v5 = vsel %vm989_vm0, %v1177_v60, %v700_v44  ;;  %v316_v6 = vld [vmem:[%s2849_s0 + $0xe1] sm:$0x1]  ;;  %v317_v7 = vld [vmem:[%s2849_s0 + $0xe3] sm:$0x1]  ;;  %v318_v8 = vld [vmem:[%s2849_s0 + $0xe5] sm:$0x1] }
  0x7d   :  { %v1180_v9 = vsel %vm992_vm1, %v1179_v61, %v1178_v5  ;;  %v319_v10 = vld [vmem:[%s2849_s0 + $0xe7] sm:$0x1]  ;;  %v320_v11 = vld [vmem:[%s2849_s0 + $0xe9] sm:$0x1]  ;;  %v321_v12 = vld [vmem:[%s2849_s0 + $0xeb] sm:$0x1]  ;;  %v512_v13 = vadd.f32 %v316_v6, %v120_v50  ;;  %v513_v14 = vadd.f32 %v317_v7, %v121_v51  ;;  %v514_v15 = vadd.f32 %v318_v8, %v122_v52 }
  0x7e   :  { %v1182_v16 = vsel %vm995_vm2, %v1181_v62, %v1180_v9  ;;  %v322_v17 = vld [vmem:[%s2849_s0 + $0xed] sm:$0x1]  ;;  %v323_v18 = vld [vmem:[%s2849_s0 + $0xef] sm:$0x1]  ;;  %v515_v19 = vadd.f32 %v319_v10, %v123_v57  ;;  %v516_v20 = vadd.f32 %v320_v11, %v124_v58  ;;  %v517_v21 = vadd.f32 %v321_v12, %v125_v59  ;;  %v128_v30 = vld [vmem:[%s2849_s0 + $0xf0] sm:$0x1] }
  0x7f   :  { %v1184_v22 = vsel %vm998_vm3, %v1183_v0, %v1182_v16  ;;  %v518_v23 = vadd.f32 %v322_v17, %v126_v63  ;;  %v519_v24 = vadd.f32 %v323_v18, %v127_v4  ;;  %v708_v25 = vmul.f32 0.5, %v512_v13  ;;  %v129_v35 = vld [vmem:[%s2849_s0 + $0xf2] sm:$0x1]  ;;  %v130_v36 = vld [vmem:[%s2849_s0 + $0xf4] sm:$0x1] }
  0x80   :  { %v1186_v26 = vsel %vm1001_vm4, %v1185_v1, %v1184_v22  ;;  %v709_v27 = vmul.f32 0.5, %v513_v14  ;;  %v710_v28 = vmul.f32 0.5, %v514_v15  ;;  %v711_v29 = vmul.f32 0.5, %v515_v19  ;;  %v131_v37 = vld [vmem:[%s2849_s0 + $0xf6] sm:$0x1] }
  0x81   :  { %v1188_v31 = vsel %vm1004_vm5, %v1187_v2, %v1186_v26  ;;  %v712_v32 = vmul.f32 0.5, %v516_v20  ;;  %v713_v33 = vmul.f32 0.5, %v517_v21  ;;  %v714_v34 = vmul.f32 0.5, %v518_v23  ;;  %v132_v42 = vld [vmem:[%s2849_s0 + $0xf8] sm:$0x1] }
  0x82   :  { %v1190_v38 = vsel %vm1007_vm6, %v1189_v3, %v1188_v31  ;;  %v715_v39 = vmul.f32 0.5, %v519_v24  ;;  %v1191_v40 = vrot.slane %v709_v27, 7  ;;  %v1193_v41 = vrot.slane %v710_v28, 6  ;;  %v133_v43 = vld [vmem:[%s2849_s0 + $0xfa] sm:$0x1] }
  0x83   :  { %1376 = vst.msk [vmem:[%s2850_s1 + $0x68] sm:$0xff] %vm1362_vm7, %v1190_v38  ;;  %v1195_v44 = vrot.slane %v711_v29, 5  ;;  %v1197_v45 = vrot.slane %v712_v32, 4  ;;  %v1199_v46 = vrot.slane %v713_v33, 3  ;;  %v134_v47 = vld [vmem:[%s2849_s0 + $0xfc] sm:$0x1] }
  0x84   :  { %v1192_v48 = vsel %vm989_vm0, %v1191_v40, %v708_v25  ;;  %v1201_v49 = vrot.slane %v714_v34, 2  ;;  %v1203_v50 = vrot.slane %v715_v39, 1  ;;  %v135_v51 = vld [vmem:[%s2849_s0 + $0xfe] sm:$0x1]  ;;  %v324_v52 = vld [vmem:[%s2849_s0 + $0xf1] sm:$0x1] }
  0x85   :  { %v1194_v53 = vsel %vm992_vm1, %v1193_v41, %v1192_v48  ;;  %v325_v54 = vld [vmem:[%s2849_s0 + $0xf3] sm:$0x1]  ;;  %v326_v55 = vld [vmem:[%s2849_s0 + $0xf5] sm:$0x1]  ;;  %v327_v56 = vld [vmem:[%s2849_s0 + $0xf7] sm:$0x1]  ;;  %v520_v57 = vadd.f32 %v324_v52, %v128_v30 }
  0x86   :  { %v1196_v58 = vsel %vm995_vm2, %v1195_v44, %v1194_v53  ;;  %v328_v59 = vld [vmem:[%s2849_s0 + $0xf9] sm:$0x1]  ;;  %v329_v60 = vld [vmem:[%s2849_s0 + $0xfb] sm:$0x1]  ;;  %v330_v61 = vld [vmem:[%s2849_s0 + $0xfd] sm:$0x1]  ;;  %v521_v62 = vadd.f32 %v325_v54, %v129_v35  ;;  %v522_v63 = vadd.f32 %v326_v55, %v130_v36  ;;  %v523_v0 = vadd.f32 %v327_v56, %v131_v37 }
  0x87   :  { %v1198_v1 = vsel %vm998_vm3, %v1197_v45, %v1196_v58  ;;  %v331_v2 = vld [vmem:[%s2849_s0 + $0xff] sm:$0x1]  ;;  %v524_v3 = vadd.f32 %v328_v59, %v132_v42  ;;  %v525_v4 = vadd.f32 %v329_v60, %v133_v43  ;;  %v526_v5 = vadd.f32 %v330_v61, %v134_v47  ;;  %v136_v14 = vld [vmem:[%s2849_s0 + $0x100] sm:$0x1]  ;;  %v137_v15 = vld [vmem:[%s2849_s0 + $0x102] sm:$0x1] }
  0x88   :  { %v1200_v6 = vsel %vm1001_vm4, %v1199_v46, %v1198_v1  ;;  %v527_v7 = vadd.f32 %v331_v2, %v135_v51  ;;  %v716_v8 = vmul.f32 0.5, %v520_v57  ;;  %v717_v9 = vmul.f32 0.5, %v521_v62  ;;  %v138_v16 = vld [vmem:[%s2849_s0 + $0x104] sm:$0x1]  ;;  %v139_v21 = vld [vmem:[%s2849_s0 + $0x106] sm:$0x1] }
  0x89   :  { %v1202_v10 = vsel %vm1004_vm5, %v1201_v49, %v1200_v6  ;;  %v718_v11 = vmul.f32 0.5, %v522_v63  ;;  %v719_v12 = vmul.f32 0.5, %v523_v0  ;;  %v720_v13 = vmul.f32 0.5, %v524_v3  ;;  %v140_v22 = vld [vmem:[%s2849_s0 + $0x108] sm:$0x1] }
  0x8a   :  { %v1204_v17 = vsel %vm1007_vm6, %v1203_v50, %v1202_v10  ;;  %v721_v18 = vmul.f32 0.5, %v525_v4  ;;  %v722_v19 = vmul.f32 0.5, %v526_v5  ;;  %v723_v20 = vmul.f32 0.5, %v527_v7  ;;  %v141_v23 = vld [vmem:[%s2849_s0 + $0x10a] sm:$0x1] }
  0x8b   :  { %1377 = vst.msk [vmem:[%s2850_s1 + $0x70] sm:$0xff] %vm1362_vm7, %v1204_v17  ;;  %v1205_v24 = vrot.slane %v717_v9, 7  ;;  %v1207_v25 = vrot.slane %v718_v11, 6  ;;  %v1209_v26 = vrot.slane %v719_v12, 5  ;;  %v142_v27 = vld [vmem:[%s2849_s0 + $0x10c] sm:$0x1] }
  0x8c   :  { %v1211_v28 = vrot.slane %v720_v13, 4  ;;  %v1213_v29 = vrot.slane %v721_v18, 3  ;;  %v1215_v30 = vrot.slane %v722_v19, 2  ;;  %v1217_v31 = vrot.slane %v723_v20, 1  ;;  %v143_v32 = vld [vmem:[%s2849_s0 + $0x10e] sm:$0x1] }
  0x8d   :  { %v1206_v33 = vsel %vm989_vm0, %v1205_v24, %v716_v8  ;;  %v332_v34 = vld [vmem:[%s2849_s0 + $0x101] sm:$0x1]  ;;  %v333_v35 = vld [vmem:[%s2849_s0 + $0x103] sm:$0x1]  ;;  %v334_v36 = vld [vmem:[%s2849_s0 + $0x105] sm:$0x1] }
  0x8e   :  { %v1208_v37 = vsel %vm992_vm1, %v1207_v25, %v1206_v33  ;;  %v335_v38 = vld [vmem:[%s2849_s0 + $0x107] sm:$0x1]  ;;  %v336_v39 = vld [vmem:[%s2849_s0 + $0x109] sm:$0x1]  ;;  %v337_v40 = vld [vmem:[%s2849_s0 + $0x10b] sm:$0x1]  ;;  %v528_v41 = vadd.f32 %v332_v34, %v136_v14  ;;  %v529_v42 = vadd.f32 %v333_v35, %v137_v15  ;;  %v530_v43 = vadd.f32 %v334_v36, %v138_v16 }
  0x8f   :  { %v1210_v44 = vsel %vm995_vm2, %v1209_v26, %v1208_v37  ;;  %v338_v45 = vld [vmem:[%s2849_s0 + $0x10d] sm:$0x1]  ;;  %v339_v46 = vld [vmem:[%s2849_s0 + $0x10f] sm:$0x1]  ;;  %v531_v47 = vadd.f32 %v335_v38, %v139_v21  ;;  %v532_v48 = vadd.f32 %v336_v39, %v140_v22  ;;  %v533_v49 = vadd.f32 %v337_v40, %v141_v23  ;;  %v144_v58 = vld [vmem:[%s2849_s0 + $0x110] sm:$0x1] }
  0x90   :  { %v1212_v50 = vsel %vm998_vm3, %v1211_v28, %v1210_v44  ;;  %v534_v51 = vadd.f32 %v338_v45, %v142_v27  ;;  %v535_v52 = vadd.f32 %v339_v46, %v143_v32  ;;  %v724_v53 = vmul.f32 0.5, %v528_v41  ;;  %v145_v63 = vld [vmem:[%s2849_s0 + $0x112] sm:$0x1]  ;;  %v146_v0 = vld [vmem:[%s2849_s0 + $0x114] sm:$0x1] }
  0x91   :  { %v1214_v54 = vsel %vm1001_vm4, %v1213_v29, %v1212_v50  ;;  %v725_v55 = vmul.f32 0.5, %v529_v42  ;;  %v726_v56 = vmul.f32 0.5, %v530_v43  ;;  %v727_v57 = vmul.f32 0.5, %v531_v47  ;;  %v147_v1 = vld [vmem:[%s2849_s0 + $0x116] sm:$0x1] }
  0x92   :  { %v1216_v59 = vsel %vm1004_vm5, %v1215_v30, %v1214_v54  ;;  %v728_v60 = vmul.f32 0.5, %v532_v48  ;;  %v729_v61 = vmul.f32 0.5, %v533_v49  ;;  %v730_v62 = vmul.f32 0.5, %v534_v51  ;;  %v148_v6 = vld [vmem:[%s2849_s0 + $0x118] sm:$0x1] }
  0x93   :  { %v1218_v2 = vsel %vm1007_vm6, %v1217_v31, %v1216_v59  ;;  %v731_v3 = vmul.f32 0.5, %v535_v52  ;;  %v1219_v4 = vrot.slane %v725_v55, 7  ;;  %v1221_v5 = vrot.slane %v726_v56, 6  ;;  %v149_v7 = vld [vmem:[%s2849_s0 + $0x11a] sm:$0x1] }
  0x94   :  { %1378 = vst.msk [vmem:[%s2850_s1 + $0x78] sm:$0xff] %vm1362_vm7, %v1218_v2  ;;  %v1223_v8 = vrot.slane %v727_v57, 5  ;;  %v1225_v9 = vrot.slane %v728_v60, 4  ;;  %v1227_v10 = vrot.slane %v729_v61, 3  ;;  %v150_v11 = vld [vmem:[%s2849_s0 + $0x11c] sm:$0x1] }
  0x95   :  { %v1220_v12 = vsel %vm989_vm0, %v1219_v4, %v724_v53  ;;  %v1229_v13 = vrot.slane %v730_v62, 2  ;;  %v1231_v14 = vrot.slane %v731_v3, 1  ;;  %v151_v15 = vld [vmem:[%s2849_s0 + $0x11e] sm:$0x1]  ;;  %v340_v16 = vld [vmem:[%s2849_s0 + $0x111] sm:$0x1] }
  0x96   :  { %v1222_v17 = vsel %vm992_vm1, %v1221_v5, %v1220_v12  ;;  %v341_v18 = vld [vmem:[%s2849_s0 + $0x113] sm:$0x1]  ;;  %v342_v19 = vld [vmem:[%s2849_s0 + $0x115] sm:$0x1]  ;;  %v343_v20 = vld [vmem:[%s2849_s0 + $0x117] sm:$0x1]  ;;  %v536_v21 = vadd.f32 %v340_v16, %v144_v58 }
  0x97   :  { %v1224_v22 = vsel %vm995_vm2, %v1223_v8, %v1222_v17  ;;  %v344_v23 = vld [vmem:[%s2849_s0 + $0x119] sm:$0x1]  ;;  %v345_v24 = vld [vmem:[%s2849_s0 + $0x11b] sm:$0x1]  ;;  %v346_v25 = vld [vmem:[%s2849_s0 + $0x11d] sm:$0x1]  ;;  %v537_v26 = vadd.f32 %v341_v18, %v145_v63  ;;  %v538_v27 = vadd.f32 %v342_v19, %v146_v0  ;;  %v539_v28 = vadd.f32 %v343_v20, %v147_v1 }
  0x98   :  { %v1226_v29 = vsel %vm998_vm3, %v1225_v9, %v1224_v22  ;;  %v347_v30 = vld [vmem:[%s2849_s0 + $0x11f] sm:$0x1]  ;;  %v540_v31 = vadd.f32 %v344_v23, %v148_v6  ;;  %v541_v32 = vadd.f32 %v345_v24, %v149_v7  ;;  %v542_v33 = vadd.f32 %v346_v25, %v150_v11  ;;  %v152_v42 = vld [vmem:[%s2849_s0 + $0x120] sm:$0x1]  ;;  %v153_v43 = vld [vmem:[%s2849_s0 + $0x122] sm:$0x1] }
  0x99   :  { %v1228_v34 = vsel %vm1001_vm4, %v1227_v10, %v1226_v29  ;;  %v543_v35 = vadd.f32 %v347_v30, %v151_v15  ;;  %v732_v36 = vmul.f32 0.5, %v536_v21  ;;  %v733_v37 = vmul.f32 0.5, %v537_v26  ;;  %v154_v44 = vld [vmem:[%s2849_s0 + $0x124] sm:$0x1]  ;;  %v155_v49 = vld [vmem:[%s2849_s0 + $0x126] sm:$0x1] }
  0x9a   :  { %v1230_v38 = vsel %vm1004_vm5, %v1229_v13, %v1228_v34  ;;  %v734_v39 = vmul.f32 0.5, %v538_v27  ;;  %v735_v40 = vmul.f32 0.5, %v539_v28  ;;  %v736_v41 = vmul.f32 0.5, %v540_v31  ;;  %v156_v50 = vld [vmem:[%s2849_s0 + $0x128] sm:$0x1] }
  0x9b   :  { %v1232_v45 = vsel %vm1007_vm6, %v1231_v14, %v1230_v38  ;;  %v737_v46 = vmul.f32 0.5, %v541_v32  ;;  %v738_v47 = vmul.f32 0.5, %v542_v33  ;;  %v739_v48 = vmul.f32 0.5, %v543_v35  ;;  %v157_v51 = vld [vmem:[%s2849_s0 + $0x12a] sm:$0x1] }
  0x9c   :  { %1379 = vst.msk [vmem:[%s2850_s1 + $0x80] sm:$0xff] %vm1362_vm7, %v1232_v45  ;;  %v1233_v52 = vrot.slane %v733_v37, 7  ;;  %v1235_v53 = vrot.slane %v734_v39, 6  ;;  %v1237_v54 = vrot.slane %v735_v40, 5  ;;  %v158_v55 = vld [vmem:[%s2849_s0 + $0x12c] sm:$0x1] }
  0x9d   :  { %v1239_v56 = vrot.slane %v736_v41, 4  ;;  %v1241_v57 = vrot.slane %v737_v46, 3  ;;  %v1243_v58 = vrot.slane %v738_v47, 2  ;;  %v1245_v59 = vrot.slane %v739_v48, 1  ;;  %v159_v60 = vld [vmem:[%s2849_s0 + $0x12e] sm:$0x1] }
  0x9e   :  { %v1234_v61 = vsel %vm989_vm0, %v1233_v52, %v732_v36  ;;  %v348_v62 = vld [vmem:[%s2849_s0 + $0x121] sm:$0x1]  ;;  %v349_v63 = vld [vmem:[%s2849_s0 + $0x123] sm:$0x1]  ;;  %v350_v0 = vld [vmem:[%s2849_s0 + $0x125] sm:$0x1] }
  0x9f   :  { %v1236_v1 = vsel %vm992_vm1, %v1235_v53, %v1234_v61  ;;  %v351_v2 = vld [vmem:[%s2849_s0 + $0x127] sm:$0x1]  ;;  %v352_v3 = vld [vmem:[%s2849_s0 + $0x129] sm:$0x1]  ;;  %v353_v4 = vld [vmem:[%s2849_s0 + $0x12b] sm:$0x1]  ;;  %v544_v5 = vadd.f32 %v348_v62, %v152_v42  ;;  %v545_v6 = vadd.f32 %v349_v63, %v153_v43  ;;  %v546_v7 = vadd.f32 %v350_v0, %v154_v44 }
  0xa0   :  { %v1238_v8 = vsel %vm995_vm2, %v1237_v54, %v1236_v1  ;;  %v354_v9 = vld [vmem:[%s2849_s0 + $0x12d] sm:$0x1]  ;;  %v355_v10 = vld [vmem:[%s2849_s0 + $0x12f] sm:$0x1]  ;;  %v547_v11 = vadd.f32 %v351_v2, %v155_v49  ;;  %v548_v12 = vadd.f32 %v352_v3, %v156_v50  ;;  %v549_v13 = vadd.f32 %v353_v4, %v157_v51  ;;  %v160_v22 = vld [vmem:[%s2849_s0 + $0x130] sm:$0x1] }
  0xa1   :  { %v1240_v14 = vsel %vm998_vm3, %v1239_v56, %v1238_v8  ;;  %v550_v15 = vadd.f32 %v354_v9, %v158_v55  ;;  %v551_v16 = vadd.f32 %v355_v10, %v159_v60  ;;  %v740_v17 = vmul.f32 0.5, %v544_v5  ;;  %v161_v27 = vld [vmem:[%s2849_s0 + $0x132] sm:$0x1]  ;;  %v162_v28 = vld [vmem:[%s2849_s0 + $0x134] sm:$0x1] }
  0xa2   :  { %v1242_v18 = vsel %vm1001_vm4, %v1241_v57, %v1240_v14  ;;  %v741_v19 = vmul.f32 0.5, %v545_v6  ;;  %v742_v20 = vmul.f32 0.5, %v546_v7  ;;  %v743_v21 = vmul.f32 0.5, %v547_v11  ;;  %v163_v29 = vld [vmem:[%s2849_s0 + $0x136] sm:$0x1] }
  0xa3   :  { %v1244_v23 = vsel %vm1004_vm5, %v1243_v58, %v1242_v18  ;;  %v744_v24 = vmul.f32 0.5, %v548_v12  ;;  %v745_v25 = vmul.f32 0.5, %v549_v13  ;;  %v746_v26 = vmul.f32 0.5, %v550_v15  ;;  %v164_v34 = vld [vmem:[%s2849_s0 + $0x138] sm:$0x1] }
  0xa4   :  { %v1246_v30 = vsel %vm1007_vm6, %v1245_v59, %v1244_v23  ;;  %v747_v31 = vmul.f32 0.5, %v551_v16  ;;  %v1247_v32 = vrot.slane %v741_v19, 7  ;;  %v1249_v33 = vrot.slane %v742_v20, 6  ;;  %v165_v35 = vld [vmem:[%s2849_s0 + $0x13a] sm:$0x1] }
  0xa5   :  { %1380 = vst.msk [vmem:[%s2850_s1 + $0x88] sm:$0xff] %vm1362_vm7, %v1246_v30  ;;  %v1251_v36 = vrot.slane %v743_v21, 5  ;;  %v1253_v37 = vrot.slane %v744_v24, 4  ;;  %v1255_v38 = vrot.slane %v745_v25, 3  ;;  %v166_v39 = vld [vmem:[%s2849_s0 + $0x13c] sm:$0x1] }
  0xa6   :  { %v1248_v40 = vsel %vm989_vm0, %v1247_v32, %v740_v17  ;;  %v1257_v41 = vrot.slane %v746_v26, 2  ;;  %v1259_v42 = vrot.slane %v747_v31, 1  ;;  %v167_v43 = vld [vmem:[%s2849_s0 + $0x13e] sm:$0x1]  ;;  %v356_v44 = vld [vmem:[%s2849_s0 + $0x131] sm:$0x1] }
  0xa7   :  { %v1250_v45 = vsel %vm992_vm1, %v1249_v33, %v1248_v40  ;;  %v357_v46 = vld [vmem:[%s2849_s0 + $0x133] sm:$0x1]  ;;  %v358_v47 = vld [vmem:[%s2849_s0 + $0x135] sm:$0x1]  ;;  %v359_v48 = vld [vmem:[%s2849_s0 + $0x137] sm:$0x1]  ;;  %v552_v49 = vadd.f32 %v356_v44, %v160_v22 }
  0xa8   :  { %v1252_v50 = vsel %vm995_vm2, %v1251_v36, %v1250_v45  ;;  %v360_v51 = vld [vmem:[%s2849_s0 + $0x139] sm:$0x1]  ;;  %v361_v52 = vld [vmem:[%s2849_s0 + $0x13b] sm:$0x1]  ;;  %v362_v53 = vld [vmem:[%s2849_s0 + $0x13d] sm:$0x1]  ;;  %v553_v54 = vadd.f32 %v357_v46, %v161_v27  ;;  %v554_v55 = vadd.f32 %v358_v47, %v162_v28  ;;  %v555_v56 = vadd.f32 %v359_v48, %v163_v29 }
  0xa9   :  { %v1254_v57 = vsel %vm998_vm3, %v1253_v37, %v1252_v50  ;;  %v363_v58 = vld [vmem:[%s2849_s0 + $0x13f] sm:$0x1]  ;;  %v556_v59 = vadd.f32 %v360_v51, %v164_v34  ;;  %v557_v60 = vadd.f32 %v361_v52, %v165_v35  ;;  %v558_v61 = vadd.f32 %v362_v53, %v166_v39  ;;  %v168_v6 = vld [vmem:[%s2849_s0 + $0x140] sm:$0x1]  ;;  %v169_v7 = vld [vmem:[%s2849_s0 + $0x142] sm:$0x1] }
  0xaa   :  { %v1256_v62 = vsel %vm1001_vm4, %v1255_v38, %v1254_v57  ;;  %v559_v63 = vadd.f32 %v363_v58, %v167_v43  ;;  %v748_v0 = vmul.f32 0.5, %v552_v49  ;;  %v749_v1 = vmul.f32 0.5, %v553_v54  ;;  %v170_v8 = vld [vmem:[%s2849_s0 + $0x144] sm:$0x1]  ;;  %v171_v13 = vld [vmem:[%s2849_s0 + $0x146] sm:$0x1] }
  0xab   :  { %v1258_v2 = vsel %vm1004_vm5, %v1257_v41, %v1256_v62  ;;  %v750_v3 = vmul.f32 0.5, %v554_v55  ;;  %v751_v4 = vmul.f32 0.5, %v555_v56  ;;  %v752_v5 = vmul.f32 0.5, %v556_v59  ;;  %v172_v14 = vld [vmem:[%s2849_s0 + $0x148] sm:$0x1] }
  0xac   :  { %v1260_v9 = vsel %vm1007_vm6, %v1259_v42, %v1258_v2  ;;  %v753_v10 = vmul.f32 0.5, %v557_v60  ;;  %v754_v11 = vmul.f32 0.5, %v558_v61  ;;  %v755_v12 = vmul.f32 0.5, %v559_v63  ;;  %v173_v15 = vld [vmem:[%s2849_s0 + $0x14a] sm:$0x1] }
  0xad   :  { %1381 = vst.msk [vmem:[%s2850_s1 + $0x90] sm:$0xff] %vm1362_vm7, %v1260_v9  ;;  %v1261_v16 = vrot.slane %v749_v1, 7  ;;  %v1263_v17 = vrot.slane %v750_v3, 6  ;;  %v1265_v18 = vrot.slane %v751_v4, 5  ;;  %v174_v19 = vld [vmem:[%s2849_s0 + $0x14c] sm:$0x1] }
  0xae   :  { %v1267_v20 = vrot.slane %v752_v5, 4  ;;  %v1269_v21 = vrot.slane %v753_v10, 3  ;;  %v1271_v22 = vrot.slane %v754_v11, 2  ;;  %v1273_v23 = vrot.slane %v755_v12, 1  ;;  %v175_v24 = vld [vmem:[%s2849_s0 + $0x14e] sm:$0x1] }
  0xaf   :  { %v1262_v25 = vsel %vm989_vm0, %v1261_v16, %v748_v0  ;;  %v364_v26 = vld [vmem:[%s2849_s0 + $0x141] sm:$0x1]  ;;  %v365_v27 = vld [vmem:[%s2849_s0 + $0x143] sm:$0x1]  ;;  %v366_v28 = vld [vmem:[%s2849_s0 + $0x145] sm:$0x1] }
  0xb0   :  { %v1264_v29 = vsel %vm992_vm1, %v1263_v17, %v1262_v25  ;;  %v367_v30 = vld [vmem:[%s2849_s0 + $0x147] sm:$0x1]  ;;  %v368_v31 = vld [vmem:[%s2849_s0 + $0x149] sm:$0x1]  ;;  %v369_v32 = vld [vmem:[%s2849_s0 + $0x14b] sm:$0x1]  ;;  %v560_v33 = vadd.f32 %v364_v26, %v168_v6  ;;  %v561_v34 = vadd.f32 %v365_v27, %v169_v7  ;;  %v562_v35 = vadd.f32 %v366_v28, %v170_v8 }
  0xb1   :  { %v1266_v36 = vsel %vm995_vm2, %v1265_v18, %v1264_v29  ;;  %v370_v37 = vld [vmem:[%s2849_s0 + $0x14d] sm:$0x1]  ;;  %v371_v38 = vld [vmem:[%s2849_s0 + $0x14f] sm:$0x1]  ;;  %v563_v39 = vadd.f32 %v367_v30, %v171_v13  ;;  %v564_v40 = vadd.f32 %v368_v31, %v172_v14  ;;  %v565_v41 = vadd.f32 %v369_v32, %v173_v15  ;;  %v176_v50 = vld [vmem:[%s2849_s0 + $0x150] sm:$0x1] }
  0xb2   :  { %v1268_v42 = vsel %vm998_vm3, %v1267_v20, %v1266_v36  ;;  %v566_v43 = vadd.f32 %v370_v37, %v174_v19  ;;  %v567_v44 = vadd.f32 %v371_v38, %v175_v24  ;;  %v756_v45 = vmul.f32 0.5, %v560_v33  ;;  %v177_v55 = vld [vmem:[%s2849_s0 + $0x152] sm:$0x1]  ;;  %v178_v56 = vld [vmem:[%s2849_s0 + $0x154] sm:$0x1] }
  0xb3   :  { %v1270_v46 = vsel %vm1001_vm4, %v1269_v21, %v1268_v42  ;;  %v757_v47 = vmul.f32 0.5, %v561_v34  ;;  %v758_v48 = vmul.f32 0.5, %v562_v35  ;;  %v759_v49 = vmul.f32 0.5, %v563_v39  ;;  %v179_v57 = vld [vmem:[%s2849_s0 + $0x156] sm:$0x1] }
  0xb4   :  { %v1272_v51 = vsel %vm1004_vm5, %v1271_v22, %v1270_v46  ;;  %v760_v52 = vmul.f32 0.5, %v564_v40  ;;  %v761_v53 = vmul.f32 0.5, %v565_v41  ;;  %v762_v54 = vmul.f32 0.5, %v566_v43  ;;  %v180_v62 = vld [vmem:[%s2849_s0 + $0x158] sm:$0x1] }
  0xb5   :  { %v1274_v58 = vsel %vm1007_vm6, %v1273_v23, %v1272_v51  ;;  %v763_v59 = vmul.f32 0.5, %v567_v44  ;;  %v1275_v60 = vrot.slane %v757_v47, 7  ;;  %v1277_v61 = vrot.slane %v758_v48, 6  ;;  %v181_v63 = vld [vmem:[%s2849_s0 + $0x15a] sm:$0x1] }
  0xb6   :  { %1382 = vst.msk [vmem:[%s2850_s1 + $0x98] sm:$0xff] %vm1362_vm7, %v1274_v58  ;;  %v1279_v0 = vrot.slane %v759_v49, 5  ;;  %v1281_v1 = vrot.slane %v760_v52, 4  ;;  %v1283_v2 = vrot.slane %v761_v53, 3  ;;  %v182_v3 = vld [vmem:[%s2849_s0 + $0x15c] sm:$0x1] }
  0xb7   :  { %v1276_v4 = vsel %vm989_vm0, %v1275_v60, %v756_v45  ;;  %v1285_v5 = vrot.slane %v762_v54, 2  ;;  %v1287_v6 = vrot.slane %v763_v59, 1  ;;  %v183_v7 = vld [vmem:[%s2849_s0 + $0x15e] sm:$0x1]  ;;  %v372_v8 = vld [vmem:[%s2849_s0 + $0x151] sm:$0x1] }
  0xb8   :  { %v1278_v9 = vsel %vm992_vm1, %v1277_v61, %v1276_v4  ;;  %v373_v10 = vld [vmem:[%s2849_s0 + $0x153] sm:$0x1]  ;;  %v374_v11 = vld [vmem:[%s2849_s0 + $0x155] sm:$0x1]  ;;  %v375_v12 = vld [vmem:[%s2849_s0 + $0x157] sm:$0x1]  ;;  %v568_v13 = vadd.f32 %v372_v8, %v176_v50 }
  0xb9   :  { %v1280_v14 = vsel %vm995_vm2, %v1279_v0, %v1278_v9  ;;  %v376_v15 = vld [vmem:[%s2849_s0 + $0x159] sm:$0x1]  ;;  %v377_v16 = vld [vmem:[%s2849_s0 + $0x15b] sm:$0x1]  ;;  %v378_v17 = vld [vmem:[%s2849_s0 + $0x15d] sm:$0x1]  ;;  %v569_v18 = vadd.f32 %v373_v10, %v177_v55  ;;  %v570_v19 = vadd.f32 %v374_v11, %v178_v56  ;;  %v571_v20 = vadd.f32 %v375_v12, %v179_v57 }
  0xba   :  { %v1282_v21 = vsel %vm998_vm3, %v1281_v1, %v1280_v14  ;;  %v379_v22 = vld [vmem:[%s2849_s0 + $0x15f] sm:$0x1]  ;;  %v572_v23 = vadd.f32 %v376_v15, %v180_v62  ;;  %v573_v24 = vadd.f32 %v377_v16, %v181_v63  ;;  %v574_v25 = vadd.f32 %v378_v17, %v182_v3  ;;  %v184_v34 = vld [vmem:[%s2849_s0 + $0x160] sm:$0x1]  ;;  %v185_v35 = vld [vmem:[%s2849_s0 + $0x162] sm:$0x1] }
  0xbb   :  { %v1284_v26 = vsel %vm1001_vm4, %v1283_v2, %v1282_v21  ;;  %v575_v27 = vadd.f32 %v379_v22, %v183_v7  ;;  %v764_v28 = vmul.f32 0.5, %v568_v13  ;;  %v765_v29 = vmul.f32 0.5, %v569_v18  ;;  %v186_v36 = vld [vmem:[%s2849_s0 + $0x164] sm:$0x1]  ;;  %v187_v41 = vld [vmem:[%s2849_s0 + $0x166] sm:$0x1] }
  0xbc   :  { %v1286_v30 = vsel %vm1004_vm5, %v1285_v5, %v1284_v26  ;;  %v766_v31 = vmul.f32 0.5, %v570_v19  ;;  %v767_v32 = vmul.f32 0.5, %v571_v20  ;;  %v768_v33 = vmul.f32 0.5, %v572_v23  ;;  %v188_v42 = vld [vmem:[%s2849_s0 + $0x168] sm:$0x1] }
  0xbd   :  { %v1288_v37 = vsel %vm1007_vm6, %v1287_v6, %v1286_v30  ;;  %v769_v38 = vmul.f32 0.5, %v573_v24  ;;  %v770_v39 = vmul.f32 0.5, %v574_v25  ;;  %v771_v40 = vmul.f32 0.5, %v575_v27  ;;  %v189_v43 = vld [vmem:[%s2849_s0 + $0x16a] sm:$0x1] }
  0xbe   :  { %1383 = vst.msk [vmem:[%s2850_s1 + $0xa0] sm:$0xff] %vm1362_vm7, %v1288_v37  ;;  %v1289_v44 = vrot.slane %v765_v29, 7  ;;  %v1291_v45 = vrot.slane %v766_v31, 6  ;;  %v1293_v46 = vrot.slane %v767_v32, 5  ;;  %v190_v47 = vld [vmem:[%s2849_s0 + $0x16c] sm:$0x1] }
  0xbf   :  { %v1295_v48 = vrot.slane %v768_v33, 4  ;;  %v1297_v49 = vrot.slane %v769_v38, 3  ;;  %v1299_v50 = vrot.slane %v770_v39, 2  ;;  %v1301_v51 = vrot.slane %v771_v40, 1  ;;  %v191_v52 = vld [vmem:[%s2849_s0 + $0x16e] sm:$0x1] }
  0xc0   :  { %v1290_v53 = vsel %vm989_vm0, %v1289_v44, %v764_v28  ;;  %v380_v54 = vld [vmem:[%s2849_s0 + $0x161] sm:$0x1]  ;;  %v381_v55 = vld [vmem:[%s2849_s0 + $0x163] sm:$0x1]  ;;  %v382_v56 = vld [vmem:[%s2849_s0 + $0x165] sm:$0x1] }
  0xc1   :  { %v1292_v57 = vsel %vm992_vm1, %v1291_v45, %v1290_v53  ;;  %v383_v58 = vld [vmem:[%s2849_s0 + $0x167] sm:$0x1]  ;;  %v384_v59 = vld [vmem:[%s2849_s0 + $0x169] sm:$0x1]  ;;  %v385_v60 = vld [vmem:[%s2849_s0 + $0x16b] sm:$0x1]  ;;  %v576_v61 = vadd.f32 %v380_v54, %v184_v34  ;;  %v577_v62 = vadd.f32 %v381_v55, %v185_v35  ;;  %v578_v63 = vadd.f32 %v382_v56, %v186_v36 }
  0xc2   :  { %v1294_v0 = vsel %vm995_vm2, %v1293_v46, %v1292_v57  ;;  %v386_v1 = vld [vmem:[%s2849_s0 + $0x16d] sm:$0x1]  ;;  %v387_v2 = vld [vmem:[%s2849_s0 + $0x16f] sm:$0x1]  ;;  %v579_v3 = vadd.f32 %v383_v58, %v187_v41  ;;  %v580_v4 = vadd.f32 %v384_v59, %v188_v42  ;;  %v581_v5 = vadd.f32 %v385_v60, %v189_v43  ;;  %v192_v14 = vld [vmem:[%s2849_s0 + $0x170] sm:$0x1] }
  0xc3   :  { %v1296_v6 = vsel %vm998_vm3, %v1295_v48, %v1294_v0  ;;  %v582_v7 = vadd.f32 %v386_v1, %v190_v47  ;;  %v583_v8 = vadd.f32 %v387_v2, %v191_v52  ;;  %v772_v9 = vmul.f32 0.5, %v576_v61  ;;  %v193_v19 = vld [vmem:[%s2849_s0 + $0x172] sm:$0x1]  ;;  %v194_v20 = vld [vmem:[%s2849_s0 + $0x174] sm:$0x1] }
  0xc4   :  { %v1298_v10 = vsel %vm1001_vm4, %v1297_v49, %v1296_v6  ;;  %v773_v11 = vmul.f32 0.5, %v577_v62  ;;  %v774_v12 = vmul.f32 0.5, %v578_v63  ;;  %v775_v13 = vmul.f32 0.5, %v579_v3  ;;  %v195_v21 = vld [vmem:[%s2849_s0 + $0x176] sm:$0x1] }
  0xc5   :  { %v1300_v15 = vsel %vm1004_vm5, %v1299_v50, %v1298_v10  ;;  %v776_v16 = vmul.f32 0.5, %v580_v4  ;;  %v777_v17 = vmul.f32 0.5, %v581_v5  ;;  %v778_v18 = vmul.f32 0.5, %v582_v7  ;;  %v196_v26 = vld [vmem:[%s2849_s0 + $0x178] sm:$0x1] }
  0xc6   :  { %v1302_v22 = vsel %vm1007_vm6, %v1301_v51, %v1300_v15  ;;  %v779_v23 = vmul.f32 0.5, %v583_v8  ;;  %v1303_v24 = vrot.slane %v773_v11, 7  ;;  %v1305_v25 = vrot.slane %v774_v12, 6  ;;  %v197_v27 = vld [vmem:[%s2849_s0 + $0x17a] sm:$0x1] }
  0xc7   :  { %1384 = vst.msk [vmem:[%s2850_s1 + $0xa8] sm:$0xff] %vm1362_vm7, %v1302_v22  ;;  %v1307_v28 = vrot.slane %v775_v13, 5  ;;  %v1309_v29 = vrot.slane %v776_v16, 4  ;;  %v1311_v30 = vrot.slane %v777_v17, 3  ;;  %v198_v31 = vld [vmem:[%s2849_s0 + $0x17c] sm:$0x1] }
  0xc8   :  { %v1304_v32 = vsel %vm989_vm0, %v1303_v24, %v772_v9  ;;  %v1313_v33 = vrot.slane %v778_v18, 2  ;;  %v1315_v34 = vrot.slane %v779_v23, 1  ;;  %v199_v35 = vld [vmem:[%s2849_s0 + $0x17e] sm:$0x1]  ;;  %v388_v36 = vld [vmem:[%s2849_s0 + $0x171] sm:$0x1] }
  0xc9   :  { %v1306_v37 = vsel %vm992_vm1, %v1305_v25, %v1304_v32  ;;  %v389_v38 = vld [vmem:[%s2849_s0 + $0x173] sm:$0x1]  ;;  %v390_v39 = vld [vmem:[%s2849_s0 + $0x175] sm:$0x1]  ;;  %v391_v40 = vld [vmem:[%s2849_s0 + $0x177] sm:$0x1]  ;;  %v584_v41 = vadd.f32 %v388_v36, %v192_v14 }
  0xca   :  { %v1308_v42 = vsel %vm995_vm2, %v1307_v28, %v1306_v37  ;;  %v392_v43 = vld [vmem:[%s2849_s0 + $0x179] sm:$0x1]  ;;  %v393_v44 = vld [vmem:[%s2849_s0 + $0x17b] sm:$0x1]  ;;  %v394_v45 = vld [vmem:[%s2849_s0 + $0x17d] sm:$0x1]  ;;  %v585_v46 = vadd.f32 %v389_v38, %v193_v19  ;;  %v586_v47 = vadd.f32 %v390_v39, %v194_v20  ;;  %v587_v48 = vadd.f32 %v391_v40, %v195_v21 }
  0xcb   :  { %v1310_v49 = vsel %vm998_vm3, %v1309_v29, %v1308_v42  ;;  %v395_v50 = vld [vmem:[%s2849_s0 + $0x17f] sm:$0x1]  ;;  %v588_v51 = vadd.f32 %v392_v43, %v196_v26  ;;  %v589_v52 = vadd.f32 %v393_v44, %v197_v27  ;;  %v590_v53 = vadd.f32 %v394_v45, %v198_v31  ;;  %v200_v54 = vld [vmem:[%s2849_s0 + $0x180] sm:$0x1]  ;;  %v201_v59 = vld [vmem:[%s2849_s0 + $0x182] sm:$0x1] }
  0xcc   :  { %v1312_v55 = vsel %vm1001_vm4, %v1311_v30, %v1310_v49  ;;  %v591_v56 = vadd.f32 %v395_v50, %v199_v35  ;;  %v780_v57 = vmul.f32 0.5, %v584_v41  ;;  %v781_v58 = vmul.f32 0.5, %v585_v46  ;;  %v202_v60 = vld [vmem:[%s2849_s0 + $0x184] sm:$0x1]  ;;  %v203_v61 = vld [vmem:[%s2849_s0 + $0x186] sm:$0x1] }
  0xcd   :  { %v1314_v62 = vsel %vm1004_vm5, %v1313_v33, %v1312_v55  ;;  %v782_v63 = vmul.f32 0.5, %v586_v47  ;;  %v783_v0 = vmul.f32 0.5, %v587_v48  ;;  %v784_v1 = vmul.f32 0.5, %v588_v51  ;;  %v396_v2 = vld [vmem:[%s2849_s0 + $0x181] sm:$0x1] }
  0xce   :  { %v1316_v3 = vsel %vm1007_vm6, %v1315_v34, %v1314_v62  ;;  %v785_v4 = vmul.f32 0.5, %v589_v52  ;;  %v786_v5 = vmul.f32 0.5, %v590_v53  ;;  %v787_v6 = vmul.f32 0.5, %v591_v56  ;;  %v397_v7 = vld [vmem:[%s2849_s0 + $0x183] sm:$0x1] }
  0xcf   :  { %1385 = vst.msk [vmem:[%s2850_s1 + $0xb0] sm:$0xff] %vm1362_vm7, %v1316_v3  ;;  %v1317_v8 = vrot.slane %v781_v58, 7  ;;  %v1319_v9 = vrot.slane %v782_v63, 6  ;;  %v1321_v10 = vrot.slane %v783_v0, 5  ;;  %v398_v11 = vld [vmem:[%s2849_s0 + $0x185] sm:$0x1]  ;;  %v592_v15 = vadd.f32 %v396_v2, %v200_v54 }
  0xd0   :  { %v1323_v12 = vrot.slane %v784_v1, 4  ;;  %v1325_v13 = vrot.slane %v785_v4, 3  ;;  %v399_v14 = vld [vmem:[%s2849_s0 + $0x187] sm:$0x1]  ;;  %v593_v17 = vadd.f32 %v397_v7, %v201_v59  ;;  %v594_v18 = vadd.f32 %v398_v11, %v202_v60 }
  0xd1   :  { %v1318_v16 = vsel %vm989_vm0, %v1317_v8, %v780_v57  ;;  %v595_v19 = vadd.f32 %v399_v14, %v203_v61  ;;  %v1327_v21 = vrot.slane %v786_v5, 2  ;;  %v1329_v22 = vrot.slane %v787_v6, 1 }
  0xd2   :  { %v1320_v20 = vsel %vm992_vm1, %v1319_v9, %v1318_v16  ;;  %v788_v23 = vmul.f32 0.5, %v592_v15  ;;  %v789_v25 = vmul.f32 0.5, %v593_v17  ;;  %v790_v26 = vmul.f32 0.5, %v594_v18 }
  0xd3   :  { %v1322_v24 = vsel %vm995_vm2, %v1321_v10, %v1320_v20  ;;  %v791_v27 = vmul.f32 0.5, %v595_v19 }
  0xd4   :  { %v1324_v28 = vsel %vm998_vm3, %v1323_v12, %v1322_v24  ;;  %v1331_v30 = vrot.slane %v789_v25, 7  ;;  %v1333_v31 = vrot.slane %v790_v26, 6 }
  0xd5   :  { %v1326_v29 = vsel %vm1001_vm4, %v1325_v13, %v1324_v28  ;;  %v1335_v32 = vrot.slane %v791_v27, 5 }
  0xd6   :  { %v1328_v33 = vsel %vm1004_vm5, %v1327_v21, %v1326_v29  ;;  %v1332_v35 = vsel %vm989_vm0, %v1331_v30, %v788_v23 }
  0xd7   :  { %v1330_v34 = vsel %vm1007_vm6, %v1329_v22, %v1328_v33  ;;  %v1334_v36 = vsel %vm992_vm1, %v1333_v31, %v1332_v35 }
  0xd8   :  { %1386 = vst.msk [vmem:[%s2850_s1 + $0xb8] sm:$0xff] %vm1362_vm7, %v1330_v34  ;;  %v1336_v37 = vsel %vm995_vm2, %v1335_v32, %v1334_v36 }
  0xd9   :  { %1388 = vst.msk [vmem:[%s2850_s1 + $0xc0] sm:$0xf] %vm1387_vm8, %v1336_v37 }

// kernel: multilabel_cls_forward.8
= control target key start
LH: loop header
LB: loop body
LE: loop exit
PB: predicated region body
PF: predicated region fallthrough
CT: control target
= control target key end

     0   :  { %v1304_v1 = vmov 1   ;;  %vm67_vm0 = vcmask 261120   ;;  %v1305_v9 = vmov 0   ;;  %v1306_v10 = vmov 2   ;;  %s1313_s28 = smov 112   ;;  %s1559_s1 = inlined_call_operand.vmem [shape: bf16[32,80], index: 1, kind: input, shape index: {}]   ;;  %s1560_s0 = inlined_call_operand.vmem [shape: bf16[32,32], index: 0, kind: input, shape index: {}]   ;;  %s1561_s7 = inlined_call_operand.vmem [shape: f32[32,9], index: 7, kind: input, shape index: {}]   ;;  %s1562_s3 = inlined_call_operand.vmem [shape: bf16[9,16,16], index: 3, kind: input, shape index: {}]   ;;  %s1563_s2 = inlined_call_operand.vmem [shape: f32[1,80], index: 2, kind: input, shape index: {}]   ;;  %s1564_s5 = inlined_call_operand.vmem [shape: bf16[16,64], index: 5, kind: input, shape index: {}]   ;;  %s1565_s4 = inlined_call_operand.vmem [shape: f32[1,16], index: 4, kind: input, shape index: {}]   ;;  %s1566_s6 = inlined_call_operand.vmem [shape: f32[1,64], index: 6, kind: input, shape index: {}]   ;;  %s1567_s8 = inlined_call_operand.vmem [shape: bf16[32,64], index: 8, kind: output, shape index: {}]  }
   0x1   :  { %v1290_v0 = vld [vmem:[%s1559_s1 + $0x8] sm:$0xff]   ;;  %1275 = vset.pattern.permute.xlu1 %v1304_v1  ;;  %1274 = vset.pattern.permute.xlu0 %v1304_v1  ;;  %v1291_v2 = vld [vmem:[%s1559_s1] sm:$0xff]   ;;  %v1372_v4 = vld [vmem:[%s1561_s7 + $0x10] sm:$0xff]  ;;  %v1307_v11 = vmov 3   ;;  %v1308_v12 = vmov 5   ;;  %v1309_v13 = vmov 6  }
   0x2   :  { %1196 = vmatprep.subr.bf16.mxu0 %v1290_v0  ;;  %v1292_v3 = vld [vmem:[%s1560_s0] sm:$0xff]   ;;  %187 = vperm.xlu1 %1275, %v1372_v4   ;;  %v1293_v6 = vld [vmem:[%s1560_s0 + $0x8] sm:$0xff]   ;;  %v145_v7 = vld [vmem:[%s1561_s7 + $0x18] sm:$0xff]  ;;  %v1310_v14 = vmov 7   ;;  %v1311_v15 = vmov 8   ;;  %vm127_vm1 = vcmask 130048  }
   0x3   :  { %1197 = vmatpush3.bf16.msra.mxu0 %v1290_v0  ;;  %1200 = vmatprep.mubr.msk.bf16.mxu0 %vm67_vm0, %v1292_v3  ;;  %v142_v5 = vld [vmem:[%s1561_s7] sm:$0xff]  ;;  %v143_v8 = vld [vmem:[%s1561_s7 + $0x8] sm:$0xff]  ;;  %v1312_v16 = vmov 0.0   ;;  %v1295_v18 = vld [vmem:[%s1562_s3 + $0x10] sm:$0xff]   ;;  %vm1090_vm2 = vcmask 519168  }
   0x4   :  { %1198 = vmatprep.subr.bf16.mxu0 %v1291_v2  ;;  %179 = vperm.xlu0 %1274, %v142_v5   ;;  %128 = vst.msk [vmem:[#allocation2] sm:$0xff] %vm127_vm1, %v1312_v16  ;;  %131 = vst.msk [vmem:[#allocation2 + $0x18] sm:$0xff] %vm127_vm1, %v1312_v16  ;;  %v1294_v17 = vld [vmem:[%s1562_s3 + $0x8] sm:$0xff]   ;;  %v1410_v19 = vld [vmem:[%s1562_s3] sm:$0xff]  }
   0x5   :  { %133 = vst.msk [vmem:[#allocation2 + $0x28] sm:$0xff] %vm127_vm1, %v1312_v16  ;;  %129 = vst.msk [vmem:[#allocation2 + $0x8] sm:$0xff] %vm127_vm1, %v1312_v16  ;;  %1204 = vmatprep.subr.bf16.mxu1 %v1294_v17  ;;  %v1416_v20 = vld [vmem:[%s1562_s3 + $0x20] sm:$0xff]  }
   0x6   :  { %191 = vperm.xlu1 %1275, %v145_v7   ;;  %130 = vst.msk [vmem:[#allocation2 + $0x10] sm:$0xff] %vm127_vm1, %v1312_v16  ;;  %132 = vst.msk [vmem:[#allocation2 + $0x20] sm:$0xff] %vm127_vm1, %v1312_v16  ;;  %1205 = vmatpush3.bf16.msra.mxu1 %v1294_v17  ;;  %v1099_v39 = vld [vmem:[%s1563_s2] ss:$0 sm:$0xff] }
   0x7   :  { %1199 = vmatpush3.bf16.msra.mxu0 %v1291_v2  ;;  %1210 = vmatprep.subr.bf16.mxu1 %v1410_v19 }
   0x8   :  { %183 = vperm.xlu0 %1274, %v143_v8   ;;  %1216 = vmatprep.subr.bf16.mxu0 %v1295_v18 }
   0xa   :  { %1201 = vmatmul.mubr.msk.bf16.vlgmr.msra.gmra.mxu0 %vm67_vm0, %v1293_v6  ;;  %1277 = vset.pattern.permute.xlu1 %v1305_v9 }
   0xb   :  { %153 = vperm.xlu1 %1277, %v143_v8   ;;  %1217 = vmatpush3.bf16.msra.mxu0 %v1295_v18 }
   0xc   :  { %1276 = vset.pattern.permute.xlu0 %v1305_v9  ;;  %1228 = vmatprep.subr.bf16.mxu0 %v1416_v20 }
   0xd   :  { %148 = vperm.xlu0 %1276, %v142_v5  }
   0xf   :  { %158 = vperm.xlu1 %1277, %v1372_v4  }
  0x11   :  { %163 = vperm.xlu0 %1276, %v145_v7  }
  0x13   :  { %1278 = vset.pattern.permute.xlu1 %v1306_v10 }
  0x14   :  { %330 = vperm.xlu1 %1278, %v142_v5  }
  0x15   :  { %1279 = vset.pattern.permute.xlu0 %v1306_v10 }
  0x16   :  { %334 = vperm.xlu0 %1279, %v143_v8  }
  0x18   :  { %338 = vperm.xlu1 %1278, %v1372_v4  }
  0x1a   :  { %1280 = vset.pattern.permute.xlu0 %v1307_v11 }
  0x1b   :  { %424 = vperm.xlu0 %1280, %v142_v5  }
  0x1c   :  { %342 = vperm.xlu1 %1278, %v145_v7  }
  0x1f   :  { %436 = vperm.xlu0 %1280, %v145_v7  }
  0x20   :  { %1281 = vset.pattern.permute.xlu1 %v1307_v11 }
  0x21   :  { %428 = vperm.xlu1 %1281, %v143_v8  }
  0x23   :  { %1283 = vset.pattern.permute.xlu0 %v1308_v12 }
  0x24   :  { %596 = vperm.xlu0 %1283, %v143_v8  }
  0x25   :  { %432 = vperm.xlu1 %1281, %v1372_v4  }
  0x28   :  { %1284 = vset.pattern.permute.xlu0 %v1309_v13 }
  0x29   :  { %686 = vperm.xlu0 %1284, %v142_v5   ;;  %1282 = vset.pattern.permute.xlu1 %v1308_v12 }
  0x2a   :  { %592 = vperm.xlu1 %1282, %v142_v5  }
  0x2d   :  { %698 = vperm.xlu0 %1284, %v145_v7  }
  0x2e   :  { %600 = vperm.xlu1 %1282, %v1372_v4  }
  0x31   :  { %1287 = vset.pattern.permute.xlu0 %v1310_v14 }
  0x32   :  { %784 = vperm.xlu0 %1287, %v143_v8   ;;  %604 = vperm.xlu1 %1282, %v145_v7  }
  0x36   :  { %1288 = vset.pattern.permute.xlu0 %v1311_v15  ;;  %1285 = vset.pattern.permute.xlu1 %v1309_v13 }
  0x37   :  { %874 = vperm.xlu0 %1288, %v142_v5   ;;  %690 = vperm.xlu1 %1285, %v143_v8  }
  0x3b   :  { %886 = vperm.xlu0 %1288, %v145_v7   ;;  %694 = vperm.xlu1 %1285, %v1372_v4  }
  0x3f   :  { %1286 = vset.pattern.permute.xlu1 %v1310_v14 }
  0x40   :  { %780 = vperm.xlu1 %1286, %v142_v5  }
  0x44   :  { %788 = vperm.xlu1 %1286, %v1372_v4  }
  0x48   :  { %792 = vperm.xlu1 %1286, %v145_v7  }
  0x4c   :  { %1289 = vset.pattern.permute.xlu1 %v1311_v15 }
  0x4d   :  { %878 = vperm.xlu1 %1289, %v143_v8  }
  0x51   :  { %882 = vperm.xlu1 %1289, %v1372_v4  }
  0x7d   :  { %v1419_v21 = vpop.permute.xlu1 %187 }
  0x7f   :  { %v180_v28 = vpop.permute.xlu0 %179 }
  0x81   :  { %v192_v22 = vpop.permute.xlu1 %191 }
  0x83   :  { %v184_v30 = vpop.permute.xlu0 %183 }
  0x86   :  { %v1421_v23 = vpop.permute.xlu1 %153 }
  0x88   :  { %v149_v32 = vpop.permute.xlu0 %148 }
  0x8a   :  { %v1423_v24 = vpop.permute.xlu1 %158 }
  0x8c   :  { %v1431_v34 = vpop.permute.xlu0 %163 }
  0x8f   :  { %v331_v25 = vpop.permute.xlu1 %330 }
  0x91   :  { %v335_v36 = vpop.permute.xlu0 %334 }
  0x93   :  { %v339_v26 = vpop.permute.xlu1 %338 }
  0x96   :  { %v1437_v38 = vpop.permute.xlu0 %424 }
  0x97   :  { %v343_v27 = vpop.permute.xlu1 %342 }
  0x9a   :  { %v1444_v46 = vpop.permute.xlu0 %436 }
  0x9c   :  { %v1425_v29 = vpop.permute.xlu1 %428 }
  0x9f   :  { %v1451_v55 = vpop.permute.xlu0 %596 }
  0xa0   :  { %v1427_v31 = vpop.permute.xlu1 %432 }
  0xa4   :  { %v687_v57 = vpop.permute.xlu0 %686 }
  0xa5   :  { %v1429_v33 = vpop.permute.xlu1 %592 }
  0xa8   :  { %v699_v14 = vpop.permute.xlu0 %698 }
  0xa9   :  { %v1433_v35 = vpop.permute.xlu1 %600 }
  0xad   :  { %v1435_v37 = vpop.permute.xlu1 %604 }
  0xb2   :  { %v1442_v43 = vpop.permute.xlu1 %690 }
  0xb6   :  { %v1448_v53 = vpop.permute.xlu1 %694 }
  0xbb   :  { %v1454_v56 = vpop.permute.xlu1 %780 }
  0xbf   :  { %v1471_v9 = vpop.permute.xlu1 %788 }
  0xca   :  { %v1202_v40 = vpop.f32.mrf.mxu0 }
  0xcb   :  { %v117_v41 = vadd.f32 %v1202_v40, %v1099_v39 }
  0xcc   :  { %v108_v42 = vpop.f32.mrf.mxu0 }
  0xcd   :  { %v125_v44 = vmax.f32 %v117_v41, 0.0  ;;  %v109_v45 = vadd.f32 %v1099_v39, %v108_v42  ;;  %v785_v42 = vpop.permute.xlu0 %784 }
  0xce   :  { %v1203_v47 = vpop.f32.mrf.mxu0 }
  0xcf   :  { %136 = vst.msk [vmem:[#allocation2 + $0x18] sm:$0xff] %vm127_vm1, %v125_v44  ;;  %v123_v48 = vmax.f32 %v109_v45, 0.0  ;;  %v120_v49 = vadd.f32 %v1203_v47, %v1099_v39  ;;  %1054 = vrot.lane.b32.xlu1 %v109_v45, %s1313_s28 }
  0xd0   :  { %v111_v50 = vpop.f32.mrf.mxu0 }
  0xd1   :  { %134 = vst.msk [vmem:[#allocation2 + $0x8] sm:$0xff] %vm127_vm1, %v123_v48  ;;  %v126_v51 = vmax.f32 %v120_v49, 0.0  ;;  %v112_v52 = vadd.f32 %v1099_v39, %v111_v50  ;;  %v1490_v39 = vpop.permute.xlu1 %792 }
  0xd3   :  { %137 = vst.msk [vmem:[#allocation2 + $0x20] sm:$0xff] %vm127_vm1, %v126_v51  ;;  %v124_v54 = vmax.f32 %v112_v52, 0.0  ;;  %1056 = vrot.lane.b32.xlu0 %v112_v52, %s1313_s28  ;;  %1058 = vrot.lane.b32.xlu1 %v117_v41, %s1313_s28 }
  0xd5   :  { %135 = vst.msk [vmem:[#allocation2 + $0x10] sm:$0xff] %vm127_vm1, %v124_v54 }
  0xd7   :  { %1060 = vrot.lane.b32.xlu0 %v120_v49, %s1313_s28  ;;  %v515_v49 = vld [vmem:[#allocation2 + $0x18] sm:$0xff] }
  0xd8   :  { %v174_v58 = vld [vmem:[#allocation2 + $0x4] sm:$0xff] }
  0xd9   :  { %v325_v61 = vld [vmem:[#allocation2 + $0x5] sm:$0xff]  ;;  %v194_v2 = vmul.f32 %v180_v28, %v174_v58 }
  0xda   :  { %v1456_v59 = vld [vmem:[#allocation2 + $0x1c] sm:$0xff]  ;;  %v345_v6 = vmul.f32 %v331_v25, %v325_v61  ;;  %v419_v41 = vld [vmem:[#allocation2 + $0x7] sm:$0xff]  ;;  %v875_v61 = vpop.permute.xlu0 %874 }
  0xdb   :  { %v1458_v60 = vld [vmem:[#allocation2 + $0x1d] sm:$0xff]  ;;  %v197_v8 = vmul.f32 %v1456_v59, %v192_v22  ;;  %v439_v50 = vmul.f32 %v1437_v38, %v419_v41 }
  0xdc   :  { %v1460_v62 = vld [vmem:[#allocation2 + $0xc] sm:$0xff]  ;;  %v1462_v63 = vld [vmem:[#allocation2 + $0x14] sm:$0xff]  ;;  %v138_v3 = vld [vmem:[#allocation2 + $0x3] sm:$0xff]  ;;  %v348_v12 = vmul.f32 %v1458_v60, %v343_v27 }
  0xdd   :  { %v1464_v0 = vld [vmem:[#allocation2 + $0x15] sm:$0xff]  ;;  %v1466_v1 = vld [vmem:[#allocation2 + $0xd] sm:$0xff]  ;;  %v195_v5 = vmul.f32 %v1460_v62, %v184_v30  ;;  %v196_v10 = vmul.f32 %v1462_v63, %v1419_v21  ;;  %v166_v17 = vmul.f32 %v149_v32, %v138_v3  ;;  %v516_v44 = vld [vmem:[#allocation2 + $0x20] sm:$0xff] }
  0xde   :  { %v139_v4 = vld [vmem:[#allocation2 + $0xb] sm:$0xff]  ;;  %v346_v7 = vmul.f32 %v1466_v1, %v335_v36  ;;  %v347_v11 = vmul.f32 %v1464_v0, %v339_v26  ;;  %v1298_v22 = vld [vmem:[%s1562_s3 + $0x18] sm:$0xff]   ;;  %v518_v52 = vpack.c.bf16 %v516_v44, %v515_v49  ;;  %v684_v58 = vld [vmem:[#allocation2 + $0x23] sm:$0xff] }
  0xdf   :  { %v167_v13 = vmul.f32 %v1421_v23, %v139_v4  ;;  %v198_v15 = vpack.c.bf16 %v195_v5, %v194_v2  ;;  %v514_v18 = vld [vmem:[#allocation2 + $0x10] sm:$0xff]  ;;  %v199_v25 = vpack.c.bf16 %v197_v8, %v196_v10  ;;  %v513_v26 = vld [vmem:[#allocation2 + $0x8] sm:$0xff]  ;;  %v141_v36 = vld [vmem:[#allocation2 + $0x1b] sm:$0xff]  ;;  %v701_v47 = vmul.f32 %v687_v57, %v139_v4 }
  0xe0   :  { %v349_v16 = vpack.c.bf16 %v346_v7, %v345_v6  ;;  %v350_v28 = vpack.c.bf16 %v348_v12, %v347_v11  ;;  %v140_v27 = vld [vmem:[#allocation2 + $0x13] sm:$0xff]  ;;  %v517_v30 = vpack.c.bf16 %v514_v18, %v513_v26  ;;  %v587_v38 = vld [vmem:[#allocation2 + $0x9] sm:$0xff]  ;;  %v422_v2 = vld [vmem:[#allocation2 + $0x1f] sm:$0xff]  ;;  %v703_v4 = vmul.f32 %v1448_v53, %v141_v36  ;;  %v887_v53 = vpop.permute.xlu0 %886 }
  0xe1   :  { %1206 = vmatprep.mubr.msk.bf16.mxu1 %vm127_vm1, %v198_v15  ;;  %v170_v21 = vpack.c.bf16 %v167_v13, %v166_v17  ;;  %v1299_v23 = vld [vmem:[%s1562_s3 + $0x30] sm:$0xff]   ;;  %v168_v40 = vmul.f32 %v1423_v24, %v140_v27  ;;  %v702_v48 = vmul.f32 %v1442_v43, %v140_v27  ;;  %v704_v5 = vmul.f32 %v699_v14, %v684_v58  ;;  %v872_v14 = vld [vmem:[#allocation2 + $0x25] sm:$0xff] }
  0xe2   :  { %1218 = vmatprep.mubr.msk.bf16.mxu0 %vm127_vm1, %v349_v16  ;;  %1207 = vmatmul.mubr.msk.bf16.vlgmr.msra.gmra.mxu1 %vm127_vm1, %v199_v25  ;;  %v420_v32 = vld [vmem:[#allocation2 + $0xf] sm:$0xff]  ;;  %v421_v54 = vld [vmem:[#allocation2 + $0x17] sm:$0xff]  ;;  %v607_v6 = vmul.f32 %v1429_v33, %v587_v38  ;;  %v889_v10 = vmul.f32 %v875_v61, %v1466_v1  ;;  %v442_v11 = vmul.f32 %v1444_v46, %v422_v2  ;;  %v590_v17 = vld [vmem:[#allocation2 + $0x21] sm:$0xff] }
  0xe3   :  { %1219 = vmatmul.mubr.msk.bf16.vlgmr.msra.gmra.mxu0 %vm127_vm1, %v350_v28  ;;  %1211 = vmatpush3.bf16.msra.mxu1 %v1410_v19  ;;  %v440_v45 = vmul.f32 %v1425_v29, %v420_v32  ;;  %v169_v19 = vmul.f32 %v1431_v34, %v141_v36  ;;  %v1301_v29 = vld [vmem:[%s1562_s3 + $0x40] sm:$0xff]   ;;  %v879_v34 = vpop.permute.xlu1 %878  ;;  %v705_v43 = vpack.c.bf16 %v702_v48, %v701_v47  ;;  %v588_v57 = vld [vmem:[#allocation2 + $0x11] sm:$0xff] }
  0xe4   :  { %1212 = vmatprep.mubr.msk.bf16.mxu1 %vm127_vm1, %v170_v21  ;;  %1230 = vmatprep.mubr.msk.bf16.mxu0 %vm127_vm1, %v517_v30  ;;  %v441_v3 = vmul.f32 %v1427_v31, %v421_v54  ;;  %v608_v7 = vmul.f32 %v1451_v55, %v588_v57  ;;  %v890_v8 = vmul.f32 %v879_v34, %v1464_v0  ;;  %v1302_v31 = vld [vmem:[%s1562_s3 + $0x38] sm:$0xff]  }
  0xe5   :  { %1229 = vmatpush3.bf16.msra.mxu0 %v1416_v20  ;;  %1222 = vmatprep.subr.bf16.mxu1 %v1298_v22  ;;  %v171_v51 = vpack.c.bf16 %v169_v19, %v168_v40  ;;  %v1300_v20 = vld [vmem:[%s1562_s3 + $0x28] sm:$0xff]   ;;  %v443_v24 = vpack.c.bf16 %v440_v45, %v439_v50  ;;  %v706_v15 = vpack.c.bf16 %v704_v5, %v703_v4  ;;  %v589_v33 = vld [vmem:[#allocation2 + $0x19] sm:$0xff] }
  0xe6   :  { %1240 = vmatprep.subr.bf16.mxu0 %v1299_v23  ;;  %v444_v13 = vpack.c.bf16 %v442_v11, %v441_v3  ;;  %v611_v16 = vpack.c.bf16 %v608_v7, %v607_v6  ;;  %v893_v55 = vpack.c.bf16 %v890_v8, %v889_v10  ;;  %v892_v46 = vmul.f32 %v887_v53, %v872_v14 }
  0xe7   :  { %v883_v12 = vpop.permute.xlu1 %882  ;;  %v609_v1 = vmul.f32 %v1433_v35, %v589_v33  ;;  %v610_v18 = vmul.f32 %v1435_v37, %v590_v17  ;;  %v795_v25 = vmul.f32 %v1454_v56, %v1460_v62  ;;  %v796_v28 = vmul.f32 %v785_v42, %v1462_v63  ;;  %v1303_v62 = vld [vmem:[%s1564_s5] sm:$0xff]  }
  0xe8   :  { %v891_v0 = vmul.f32 %v883_v12, %v1458_v60  ;;  %v778_v60 = vld [vmem:[#allocation2 + $0x24] sm:$0xff]  ;;  %v797_v35 = vmul.f32 %v1471_v9, %v1456_v59 }
  0xe9   :  { %v612_v21 = vpack.c.bf16 %v610_v18, %v609_v1  ;;  %v799_v26 = vpack.c.bf16 %v796_v28, %v795_v25  ;;  %v798_v37 = vmul.f32 %v1490_v39, %v778_v60 }
  0xea   :  { %1213 = vmatmul.mubr.msk.bf16.vlgmr.msra.gmra.mxu1 %vm127_vm1, %v171_v51 }
  0xeb   :  { %1231 = vmatmul.mubr.msk.bf16.vlgmr.msra.gmra.mxu0 %vm127_vm1, %v518_v52  ;;  %1223 = vmatpush3.bf16.msra.mxu1 %v1298_v22  ;;  %v894_v22 = vpack.c.bf16 %v892_v46, %v891_v0  ;;  %v800_v56 = vpack.c.bf16 %v798_v37, %v797_v35 }
  0xec   :  { %1224 = vmatprep.mubr.msk.bf16.mxu1 %vm127_vm1, %v443_v24  ;;  %1242 = vmatprep.mubr.msk.bf16.mxu0 %vm127_vm1, %v705_v43 }
  0xed   :  { %1241 = vmatpush3.bf16.msra.mxu0 %v1299_v23  ;;  %1234 = vmatprep.subr.bf16.mxu1 %v1300_v20 }
  0xee   :  { %1252 = vmatprep.subr.bf16.mxu0 %v1301_v29 }
  0xf2   :  { %1225 = vmatmul.mubr.msk.bf16.vlgmr.msra.gmra.mxu1 %vm127_vm1, %v444_v13 }
  0xf3   :  { %1243 = vmatmul.mubr.msk.bf16.vlgmr.msra.gmra.mxu0 %vm127_vm1, %v706_v15  ;;  %1235 = vmatpush3.bf16.msra.mxu1 %v1300_v20 }
  0xf4   :  { %1236 = vmatprep.mubr.msk.bf16.mxu1 %vm127_vm1, %v611_v16  ;;  %1254 = vmatprep.mubr.msk.bf16.mxu0 %vm127_vm1, %v893_v55 }
  0xf5   :  { %1253 = vmatpush3.bf16.msra.mxu0 %v1301_v29  ;;  %1246 = vmatprep.subr.bf16.mxu1 %v1302_v31 }
  0xfa   :  { %1237 = vmatmul.mubr.msk.bf16.vlgmr.msra.gmra.mxu1 %vm127_vm1, %v612_v21 }
  0xfb   :  { %1255 = vmatmul.mubr.msk.bf16.vlgmr.msra.gmra.mxu0 %vm127_vm1, %v894_v22  ;;  %1247 = vmatpush3.bf16.msra.mxu1 %v1302_v31 }
  0xfc   :  { %1248 = vmatprep.mubr.msk.bf16.mxu1 %vm127_vm1, %v799_v26  ;;  %1258 = vmatprep.subr.bf16.mxu1 %v1303_v62 }
 0x102   :  { %1249 = vmatmul.mubr.msk.bf16.vlgmr.msra.gmra.mxu1 %vm127_vm1, %v800_v56 }
 0x103   :  { %1259 = vmatpush3.bf16.msra.mxu1 %v1303_v62 }
 0x1a2   :  { %v1208_v63 = vpop.f32.mrf.mxu1 }
 0x1a3   :  { %v1220_v27 = vpop.f32.mrf.mxu0 }
 0x1a4   :  { %v249_v23 = vpop.f32.mrf.mxu1 }
 0x1a5   :  { %v400_v30 = vpop.f32.mrf.mxu0 }
 0x1a6   :  { %v1209_v32 = vpop.f32.mrf.mxu1 }
 0x1a7   :  { %v1221_v36 = vpop.f32.mrf.mxu0 }
 0x1a8   :  { %v252_v40 = vpop.f32.mrf.mxu1 }
 0x1a9   :  { %v403_v41 = vpop.f32.mrf.mxu0 }
 0x1aa   :  { %v1214_v59 = vpop.f32.mrf.mxu1 }
 0x1ab   :  { %v1232_v9 = vpop.f32.mrf.mxu0  ;;  %v319_v48 = vadd.f32 %v1214_v59, %v1208_v63  ;;  %v1149_v63 = vld [vmem:[%s1565_s4] ss:$0 sm:$0xff] }
 0x1ac   :  { %v310_v39 = vpop.f32.mrf.mxu1 }
 0x1ad   :  { %v568_v42 = vpop.f32.mrf.mxu0  ;;  %v311_v51 = vadd.f32 %v310_v39, %v249_v23  ;;  %v417_v54 = vadd.f32 %v1220_v27, %v319_v48  ;;  %v1150_v48 = vld [vmem:[%s1566_s6] ss:$0 sm:$0xff] }
 0x1ae   :  { %v1215_v44 = vpop.f32.mrf.mxu1 }
 0x1af   :  { %v1233_v45 = vpop.f32.mrf.mxu0  ;;  %v322_v24 = vadd.f32 %v1215_v44, %v1209_v32  ;;  %v415_v43 = vadd.f32 %v400_v30, %v311_v51 }
 0x1b0   :  { %v313_v19 = vpop.f32.mrf.mxu1 }
 0x1b1   :  { %v571_v47 = vpop.f32.mrf.mxu0  ;;  %v314_v34 = vadd.f32 %v313_v19, %v252_v40  ;;  %v418_v2 = vadd.f32 %v1221_v36, %v322_v24 }
 0x1b2   :  { %v1226_v49 = vpop.f32.mrf.mxu1 }
 0x1b3   :  { %v1244_v50 = vpop.f32.mrf.mxu0  ;;  %v511_v38 = vadd.f32 %v1226_v49, %v417_v54  ;;  %v416_v6 = vadd.f32 %v403_v41, %v314_v34  ;;  %v1057_v49 = vpop.permute.xlu0 %1056 }
 0x1b4   :  { %v494_v52 = vpop.f32.mrf.mxu1 }
 0x1b5   :  { %v756_v20 = vpop.f32.mrf.mxu0  ;;  %v509_v61 = vadd.f32 %v494_v52, %v415_v43  ;;  %v585_v7 = vadd.f32 %v1232_v9, %v511_v38 }
 0x1b6   :  { %v1227_v58 = vpop.f32.mrf.mxu1 }
 0x1b7   :  { %v1245_v29 = vpop.f32.mrf.mxu0  ;;  %v512_v5 = vadd.f32 %v1227_v58, %v418_v2  ;;  %v583_v11 = vadd.f32 %v568_v42, %v509_v61  ;;  %v1061_v38 = vpop.permute.xlu0 %1060 }
 0x1b8   :  { %v497_v57 = vpop.f32.mrf.mxu1 }
 0x1b9   :  { %v759_v3 = vpop.f32.mrf.mxu0  ;;  %v510_v10 = vadd.f32 %v497_v57, %v416_v6  ;;  %v586_v53 = vadd.f32 %v1233_v45, %v512_v5 }
 0x1ba   :  { %v1238_v4 = vpop.f32.mrf.mxu1 }
 0x1bb   :  { %v679_v12 = vadd.f32 %v1238_v4, %v585_v7  ;;  %v1256_v13 = vpop.f32.mrf.mxu0  ;;  %v584_v33 = vadd.f32 %v571_v47, %v510_v10  ;;  %v1055_v47 = vpop.permute.xlu1 %1054 }
 0x1bc   :  { %v662_v8 = vpop.f32.mrf.mxu1 }
 0x1bd   :  { %v677_v31 = vadd.f32 %v662_v8, %v583_v11  ;;  %v944_v17 = vpop.f32.mrf.mxu0  ;;  %v773_v55 = vadd.f32 %v1244_v50, %v679_v12 }
 0x1be   :  { %v1239_v15 = vpop.f32.mrf.mxu1 }
 0x1bf   :  { %v680_v16 = vadd.f32 %v1239_v15, %v586_v53  ;;  %v771_v1 = vadd.f32 %v756_v20, %v677_v31  ;;  %v1257_v21 = vpop.f32.mrf.mxu0  ;;  %v1059_v52 = vpop.permute.xlu1 %1058 }
 0x1c0   :  { %v665_v14 = vpop.f32.mrf.mxu1 }
 0x1c1   :  { %v678_v46 = vadd.f32 %v665_v14, %v584_v33  ;;  %v774_v22 = vadd.f32 %v1245_v29, %v680_v16  ;;  %v947_v30 = vpop.f32.mrf.mxu0 }
 0x1c2   :  { %v1250_v0 = vpop.f32.mrf.mxu1 }
 0x1c3   :  { %v867_v18 = vadd.f32 %v1250_v0, %v773_v55  ;;  %v772_v37 = vadd.f32 %v759_v3, %v678_v46 }
 0x1c4   :  { %v850_v25 = vpop.f32.mrf.mxu1 }
 0x1c5   :  { %v865_v28 = vadd.f32 %v850_v25, %v771_v1  ;;  %v961_v56 = vadd.f32 %v1256_v13, %v867_v18 }
 0x1c6   :  { %v1251_v60 = vpop.f32.mrf.mxu1 }
 0x1c7   :  { %v959_v26 = vadd.f32 %v944_v17, %v865_v28  ;;  %v868_v35 = vadd.f32 %v1251_v60, %v774_v22  ;;  %v972_v41 = vadd.f32 %v1149_v63, %v961_v56 }
 0x1c8   :  { %v853_v62 = vpop.f32.mrf.mxu1 }
 0x1c9   :  { %v962_v27 = vadd.f32 %v1257_v21, %v868_v35  ;;  %v866_v23 = vadd.f32 %v853_v62, %v772_v37  ;;  %v970_v32 = vadd.f32 %v1149_v63, %v959_v26  ;;  %v976_v44 = vmax.f32 %v972_v41, 0.0 }
 0x1cb   :  { %v973_v36 = vadd.f32 %v1149_v63, %v962_v27  ;;  %v960_v40 = vadd.f32 %v947_v30, %v866_v23  ;;  %v974_v39 = vmax.f32 %v970_v32, 0.0 }
 0x1cd   :  { %v971_v59 = vadd.f32 %v1149_v63, %v960_v40  ;;  %v977_v9 = vmax.f32 %v973_v36, 0.0 }
 0x1cf   :  { %v975_v42 = vmax.f32 %v971_v59, 0.0  ;;  %v979_v19 = vpack.c.bf16 %v977_v9, %v976_v44 }
 0x1d1   :  { %v978_v45 = vpack.c.bf16 %v975_v42, %v974_v39 }
 0x1d3   :  { %1260 = vmatprep.mubr.msk.bf16.mxu1 %vm127_vm1, %v978_v45 }
 0x1d4   :  { %1261 = vmatmul.mubr.msk.bf16.vlgmr.msra.gmra.mxu1 %vm127_vm1, %v979_v19 }
 0x294   :  { %v1262_v50 = vpop.f32.mrf.mxu1 }
 0x295   :  { %v1044_v51 = vadd.f32 %v1262_v50, %v1150_v48 }
 0x296   :  { %v1035_v20 = vpop.f32.mrf.mxu1 }
 0x297   :  { %v1068_v24 = vadd.f32 %v1059_v52, %v1044_v51  ;;  %v1036_v54 = vadd.f32 %v1150_v48, %v1035_v20 }
 0x298   :  { %v1263_v58 = vpop.f32.mrf.mxu1 }
 0x299   :  { %v1072_v29 = vmax.f32 %v1068_v24, 0.0  ;;  %v1066_v34 = vadd.f32 %v1055_v47, %v1036_v54  ;;  %v1047_v43 = vadd.f32 %v1263_v58, %v1150_v48 }
 0x29a   :  { %v1038_v57 = vpop.f32.mrf.mxu1 }
 0x29b   :  { %v1160_v61 = vpack.c.bf16 %v1072_v29, %v1072_v29  ;;  %v1070_v2 = vmax.f32 %v1066_v34, 0.0  ;;  %v1069_v3 = vadd.f32 %v1061_v38, %v1047_v43  ;;  %v1039_v4 = vadd.f32 %v1150_v48, %v1038_v57 }
 0x29d   :  { %1093 = vst.msk [vmem:[%s1567_s8 + $0x8] sm:$0xf] %vm1090_vm2, %v1160_v61  ;;  %v1158_v5 = vpack.c.bf16 %v1070_v2, %v1070_v2  ;;  %v1073_v6 = vmax.f32 %v1069_v3, 0.0  ;;  %v1067_v7 = vadd.f32 %v1057_v49, %v1039_v4 }
 0x29f   :  { %1091 = vst.msk [vmem:[%s1567_s8] sm:$0xf] %vm1090_vm2, %v1158_v5  ;;  %v1161_v8 = vpack.c.bf16 %v1073_v6, %v1073_v6  ;;  %v1071_v10 = vmax.f32 %v1067_v7, 0.0 }
 0x2a1   :  { %1094 = vst.msk [vmem:[%s1567_s8 + $0xc] sm:$0xf] %vm1090_vm2, %v1161_v8  ;;  %v1159_v11 = vpack.c.bf16 %v1071_v10, %v1071_v10 }
 0x2a3   :  { %1092 = vst.msk [vmem:[%s1567_s8 + $0x4] sm:$0xf] %vm1090_vm2, %v1159_v11 }

// kernel: multilabel_cls_forward.9
= control target key start
LH: loop header
LB: loop body
LE: loop exit
PB: predicated region body
PF: predicated region fallthrough
CT: control target
= control target key end

     0   :  { %v1319_v1 = vmov 1   ;;  %vm83_vm0 = vcmask 523264   ;;  %v1320_v11 = vmov 0   ;;  %v1321_v12 = vmov 2   ;;  %s1562_s1 = inlined_call_operand.vmem [shape: bf16[64,16], index: 1, kind: input, shape index: {}]   ;;  %s1563_s0 = inlined_call_operand.vmem [shape: bf16[32,64], index: 0, kind: input, shape index: {}]   ;;  %s1564_s7 = inlined_call_operand.vmem [shape: f32[32,9], index: 7, kind: input, shape index: {}]   ;;  %s1565_s3 = inlined_call_operand.vmem [shape: bf16[9,16,16], index: 3, kind: input, shape index: {}]   ;;  %s1566_s2 = inlined_call_operand.vmem [shape: f32[1,16], index: 2, kind: input, shape index: {}]   ;;  %s1567_s5 = inlined_call_operand.vmem [shape: bf16[16,64], index: 5, kind: input, shape index: {}]   ;;  %s1568_s4 = inlined_call_operand.vmem [shape: f32[1,16], index: 4, kind: input, shape index: {}]   ;;  %s1569_s6 = inlined_call_operand.vmem [shape: f32[1,64], index: 6, kind: input, shape index: {}]   ;;  %s1570_s8 = inlined_call_operand.vmem [shape: bf16[32,64], index: 8, kind: output, shape index: {}]  }
   0x1   :  { %v1301_v0 = vld [vmem:[%s1562_s1 + $0x18] sm:$0xff]   ;;  %1286 = vset.pattern.permute.xlu1 %v1319_v1  ;;  %1285 = vset.pattern.permute.xlu0 %v1319_v1  ;;  %v1302_v2 = vld [vmem:[%s1562_s1 + $0x10] sm:$0xff]   ;;  %v1303_v3 = vld [vmem:[%s1562_s1 + $0x8] sm:$0xff]   ;;  %v1322_v13 = vmov 3   ;;  %v1323_v14 = vmov 5   ;;  %v1324_v15 = vmov 6  }
   0x2   :  { %1204 = vmatprep.subr.bf16.mxu0 %v1301_v0  ;;  %v1385_v4 = vld [vmem:[%s1563_s0] sm:$0xff]   ;;  %v1390_v5 = vld [vmem:[%s1564_s7 + $0x10] sm:$0xff]  ;;  %v165_v7 = vld [vmem:[%s1564_s7 + $0x18] sm:$0xff]  ;;  %v1325_v16 = vmov 7   ;;  %v1326_v17 = vmov 8   ;;  %vm147_vm1 = vcmask 130048  }
   0x3   :  { %1205 = vmatpush3.bf16.msra.mxu0 %v1301_v0  ;;  %207 = vperm.xlu1 %1286, %v1390_v5   ;;  %v162_v6 = vld [vmem:[%s1564_s7] sm:$0xff]  ;;  %v163_v9 = vld [vmem:[%s1564_s7 + $0x8] sm:$0xff]  ;;  %v1327_v18 = vmov 0.0   ;;  %v1308_v20 = vld [vmem:[%s1565_s3 + $0x18] sm:$0xff]   ;;  %vm1094_vm2 = vcmask 519168  }
   0x4   :  { %1206 = vmatprep.subr.bf16.mxu0 %v1302_v2  ;;  %199 = vperm.xlu0 %1285, %v162_v6   ;;  %v1304_v8 = vld [vmem:[%s1562_s1] sm:$0xff]   ;;  %v1410_v10 = vld [vmem:[%s1563_s0 + $0x8] sm:$0xff]   ;;  %148 = vst.msk [vmem:[#allocation2] sm:$0xff] %vm147_vm1, %v1327_v18  ;;  %151 = vst.msk [vmem:[#allocation2 + $0x18] sm:$0xff] %vm147_vm1, %v1327_v18 }
   0x5   :  { %1212 = vmatprep.mubr.msk.bf16.mxu0 %vm83_vm0, %v1385_v4  ;;  %153 = vst.msk [vmem:[#allocation2 + $0x28] sm:$0xff] %vm147_vm1, %v1327_v18  ;;  %149 = vst.msk [vmem:[#allocation2 + $0x8] sm:$0xff] %vm147_vm1, %v1327_v18  ;;  %v1307_v19 = vld [vmem:[%s1565_s3 + $0x8] sm:$0xff]   ;;  %v1436_v21 = vld [vmem:[%s1565_s3] sm:$0xff]  }
   0x6   :  { %150 = vst.msk [vmem:[#allocation2 + $0x10] sm:$0xff] %vm147_vm1, %v1327_v18  ;;  %152 = vst.msk [vmem:[#allocation2 + $0x20] sm:$0xff] %vm147_vm1, %v1327_v18  ;;  %1216 = vmatprep.subr.bf16.mxu1 %v1307_v19  ;;  %v1442_v22 = vld [vmem:[%s1565_s3 + $0x28] sm:$0xff]   ;;  %v1103_v40 = vld [vmem:[%s1566_s2] ss:$0 sm:$0xff] }
   0x7   :  { %1207 = vmatpush3.bf16.msra.mxu0 %v1302_v2  ;;  %211 = vperm.xlu1 %1286, %v165_v7  }
   0x8   :  { %1208 = vmatprep.subr.bf16.mxu0 %v1303_v3  ;;  %203 = vperm.xlu0 %1285, %v163_v9  }
   0x9   :  { %1217 = vmatpush3.bf16.msra.mxu1 %v1307_v19 }
   0xa   :  { %1222 = vmatprep.subr.bf16.mxu1 %v1436_v21 }
   0xb   :  { %1209 = vmatpush3.bf16.msra.mxu0 %v1303_v3  ;;  %1288 = vset.pattern.permute.xlu1 %v1320_v11 }
   0xc   :  { %1210 = vmatprep.subr.bf16.mxu0 %v1304_v8  ;;  %173 = vperm.xlu1 %1288, %v163_v9  }
   0xd   :  { %1287 = vset.pattern.permute.xlu0 %v1320_v11 }
   0xe   :  { %168 = vperm.xlu0 %1287, %v162_v6  }
   0xf   :  { %1211 = vmatpush3.bf16.msra.mxu0 %v1304_v8 }
  0x10   :  { %178 = vperm.xlu1 %1288, %v1390_v5   ;;  %1234 = vmatprep.subr.bf16.mxu0 %v1308_v20 }
  0x12   :  { %1213 = vmatmul.mubr.msk.bf16.vlgmr.msra.gmra.mxu0 %vm83_vm0, %v1410_v10  ;;  %183 = vperm.xlu0 %1287, %v165_v7  }
  0x13   :  { %1235 = vmatpush3.bf16.msra.mxu0 %v1308_v20 }
  0x14   :  { %1289 = vset.pattern.permute.xlu1 %v1321_v12  ;;  %1246 = vmatprep.subr.bf16.mxu0 %v1442_v22 }
  0x15   :  { %350 = vperm.xlu1 %1289, %v162_v6  }
  0x16   :  { %1290 = vset.pattern.permute.xlu0 %v1321_v12 }
  0x17   :  { %354 = vperm.xlu0 %1290, %v163_v9  }
  0x19   :  { %358 = vperm.xlu1 %1289, %v1390_v5  }
  0x1b   :  { %1291 = vset.pattern.permute.xlu0 %v1322_v13 }
  0x1c   :  { %444 = vperm.xlu0 %1291, %v162_v6  }
  0x1d   :  { %362 = vperm.xlu1 %1289, %v165_v7  }
  0x20   :  { %456 = vperm.xlu0 %1291, %v165_v7  }
  0x21   :  { %1292 = vset.pattern.permute.xlu1 %v1322_v13 }
  0x22   :  { %448 = vperm.xlu1 %1292, %v163_v9  }
  0x24   :  { %1294 = vset.pattern.permute.xlu0 %v1323_v14 }
  0x25   :  { %616 = vperm.xlu0 %1294, %v163_v9  }
  0x26   :  { %452 = vperm.xlu1 %1292, %v1390_v5  }
  0x29   :  { %1295 = vset.pattern.permute.xlu0 %v1324_v15 }
  0x2a   :  { %706 = vperm.xlu0 %1295, %v162_v6   ;;  %1293 = vset.pattern.permute.xlu1 %v1323_v14 }
  0x2b   :  { %612 = vperm.xlu1 %1293, %v162_v6  }
  0x2e   :  { %718 = vperm.xlu0 %1295, %v165_v7  }
  0x2f   :  { %620 = vperm.xlu1 %1293, %v1390_v5  }
  0x32   :  { %1298 = vset.pattern.permute.xlu0 %v1325_v16 }
  0x33   :  { %804 = vperm.xlu0 %1298, %v163_v9   ;;  %624 = vperm.xlu1 %1293, %v165_v7  }
  0x37   :  { %1299 = vset.pattern.permute.xlu0 %v1326_v17  ;;  %1296 = vset.pattern.permute.xlu1 %v1324_v15 }
  0x38   :  { %894 = vperm.xlu0 %1299, %v162_v6   ;;  %710 = vperm.xlu1 %1296, %v163_v9  }
  0x3c   :  { %906 = vperm.xlu0 %1299, %v165_v7   ;;  %714 = vperm.xlu1 %1296, %v1390_v5  }
  0x40   :  { %1297 = vset.pattern.permute.xlu1 %v1325_v16 }
  0x41   :  { %800 = vperm.xlu1 %1297, %v162_v6  }
  0x45   :  { %808 = vperm.xlu1 %1297, %v1390_v5  }
  0x49   :  { %812 = vperm.xlu1 %1297, %v165_v7  }
  0x4d   :  { %1300 = vset.pattern.permute.xlu1 %v1326_v17 }
  0x4e   :  { %898 = vperm.xlu1 %1300, %v163_v9  }
  0x52   :  { %902 = vperm.xlu1 %1300, %v1390_v5  }
  0x7e   :  { %v208_v23 = vpop.permute.xlu1 %207 }
  0x7f   :  { %v200_v28 = vpop.permute.xlu0 %199 }
  0x82   :  { %v212_v24 = vpop.permute.xlu1 %211 }
  0x83   :  { %v204_v30 = vpop.permute.xlu0 %203 }
  0x87   :  { %v174_v25 = vpop.permute.xlu1 %173 }
  0x89   :  { %v169_v32 = vpop.permute.xlu0 %168 }
  0x8b   :  { %v1445_v26 = vpop.permute.xlu1 %178 }
  0x8d   :  { %v1453_v34 = vpop.permute.xlu0 %183 }
  0x90   :  { %v1447_v27 = vpop.permute.xlu1 %350 }
  0x92   :  { %v1455_v36 = vpop.permute.xlu0 %354 }
  0x94   :  { %v1449_v29 = vpop.permute.xlu1 %358 }
  0x97   :  { %v445_v38 = vpop.permute.xlu0 %444 }
  0x98   :  { %v1451_v31 = vpop.permute.xlu1 %362 }
  0x9b   :  { %v457_v44 = vpop.permute.xlu0 %456 }
  0x9d   :  { %v449_v33 = vpop.permute.xlu1 %448 }
  0xa0   :  { %v617_v56 = vpop.permute.xlu0 %616 }
  0xa1   :  { %v453_v35 = vpop.permute.xlu1 %452 }
  0xa5   :  { %v1472_v58 = vpop.permute.xlu0 %706 }
  0xa6   :  { %v613_v37 = vpop.permute.xlu1 %612 }
  0xa9   :  { %v1480_v19 = vpop.permute.xlu0 %718 }
  0xaa   :  { %v1457_v39 = vpop.permute.xlu1 %620 }
  0xae   :  { %v1462_v47 = vpop.permute.xlu1 %624 }
  0xb3   :  { %v1467_v55 = vpop.permute.xlu1 %710 }
  0xb7   :  { %v1470_v57 = vpop.permute.xlu1 %714 }
  0xbc   :  { %v801_v18 = vpop.permute.xlu1 %800 }
  0xd2   :  { %v1214_v41 = vpop.f32.mrf.mxu0 }
  0xd3   :  { %v133_v42 = vadd.f32 %v1214_v41, %v1103_v40 }
  0xd4   :  { %v124_v43 = vpop.f32.mrf.mxu0 }
  0xd5   :  { %v141_v45 = vmax.f32 %v133_v42, 0.0  ;;  %v125_v46 = vadd.f32 %v1103_v40, %v124_v43 }
  0xd6   :  { %v1215_v48 = vpop.f32.mrf.mxu0 }
  0xd7   :  { %156 = vst.msk [vmem:[#allocation2 + $0x18] sm:$0xff] %vm147_vm1, %v141_v45  ;;  %v139_v49 = vmax.f32 %v125_v46, 0.0  ;;  %v136_v50 = vadd.f32 %v1215_v48, %v1103_v40 }
  0xd8   :  { %v127_v51 = vpop.f32.mrf.mxu0 }
  0xd9   :  { %154 = vst.msk [vmem:[#allocation2 + $0x8] sm:$0xff] %vm147_vm1, %v139_v49  ;;  %v142_v52 = vmax.f32 %v136_v50, 0.0  ;;  %v128_v53 = vadd.f32 %v1103_v40, %v127_v51  ;;  %v809_v50 = vpop.permute.xlu1 %808  ;;  %v805_v51 = vpop.permute.xlu0 %804 }
  0xdb   :  { %157 = vst.msk [vmem:[#allocation2 + $0x20] sm:$0xff] %vm147_vm1, %v142_v52  ;;  %v140_v54 = vmax.f32 %v128_v53, 0.0 }
  0xdd   :  { %155 = vst.msk [vmem:[#allocation2 + $0x10] sm:$0xff] %vm147_vm1, %v140_v54 }
  0xe0   :  { %v194_v59 = vld [vmem:[#allocation2 + $0x4] sm:$0xff] }
  0xe1   :  { %v439_v61 = vld [vmem:[#allocation2 + $0x7] sm:$0xff]  ;;  %v214_v1 = vmul.f32 %v200_v28, %v194_v59 }
  0xe2   :  { %v1474_v60 = vld [vmem:[#allocation2 + $0x1c] sm:$0xff]  ;;  %v459_v7 = vmul.f32 %v445_v38, %v439_v61  ;;  %v345_v49 = vld [vmem:[#allocation2 + $0x5] sm:$0xff] }
  0xe3   :  { %v442_v0 = vld [vmem:[#allocation2 + $0x1f] sm:$0xff]  ;;  %v217_v9 = vmul.f32 %v1474_v60, %v212_v24  ;;  %v1311_v24 = vld [vmem:[%s1565_s3 + $0x10] sm:$0xff]  }
  0xe4   :  { %v795_v62 = vld [vmem:[#allocation2 + $0xc] sm:$0xff]  ;;  %v796_v63 = vld [vmem:[#allocation2 + $0x14] sm:$0xff]  ;;  %v158_v5 = vld [vmem:[#allocation2 + $0x3] sm:$0xff]  ;;  %v462_v16 = vmul.f32 %v457_v44, %v442_v0 }
  0xe5   :  { %v440_v2 = vld [vmem:[#allocation2 + $0xf] sm:$0xff]  ;;  %v441_v3 = vld [vmem:[#allocation2 + $0x17] sm:$0xff]  ;;  %v215_v6 = vmul.f32 %v795_v62, %v204_v30  ;;  %v216_v14 = vmul.f32 %v796_v63, %v208_v23  ;;  %v186_v40 = vmul.f32 %v169_v32, %v158_v5  ;;  %v610_v32 = vld [vmem:[#allocation2 + $0x21] sm:$0xff]  ;;  %v815_v52 = vmul.f32 %v801_v18, %v795_v62 }
  0xe6   :  { %v460_v8 = vmul.f32 %v449_v33, %v440_v2  ;;  %v1477_v11 = vld [vmem:[#allocation2 + $0xb] sm:$0xff]  ;;  %v461_v15 = vmul.f32 %v453_v35, %v441_v3  ;;  %v1312_v23 = vld [vmem:[%s1565_s3 + $0x38] sm:$0xff]   ;;  %v630_v48 = vmul.f32 %v1462_v47, %v610_v32  ;;  %v816_v53 = vmul.f32 %v805_v51, %v796_v63  ;;  %v1313_v47 = vld [vmem:[%s1565_s3 + $0x20] sm:$0xff]  }
  0xe7   :  { %v607_v12 = vld [vmem:[#allocation2 + $0x9] sm:$0xff]  ;;  %v608_v13 = vld [vmem:[#allocation2 + $0x11] sm:$0xff]  ;;  %v187_v17 = vmul.f32 %v174_v25, %v1477_v11  ;;  %v218_v20 = vpack.c.bf16 %v215_v6, %v214_v1  ;;  %v219_v38 = vpack.c.bf16 %v217_v9, %v216_v14  ;;  %v609_v42 = vld [vmem:[#allocation2 + $0x19] sm:$0xff] }
  0xe8   :  { %v463_v28 = vpack.c.bf16 %v460_v8, %v459_v7  ;;  %v627_v30 = vmul.f32 %v613_v37, %v607_v12  ;;  %v464_v33 = vpack.c.bf16 %v462_v16, %v461_v15  ;;  %v628_v41 = vmul.f32 %v617_v56, %v608_v13  ;;  %v160_v35 = vld [vmem:[#allocation2 + $0x13] sm:$0xff]  ;;  %v161_v44 = vld [vmem:[#allocation2 + $0x1b] sm:$0xff]  ;;  %v798_v59 = vld [vmem:[#allocation2 + $0x24] sm:$0xff] }
  0xe9   :  { %1218 = vmatprep.mubr.msk.bf16.mxu1 %vm147_vm1, %v218_v20  ;;  %v190_v25 = vpack.c.bf16 %v187_v17, %v186_v40  ;;  %v1490_v37 = vld [vmem:[#allocation2 + $0xd] sm:$0xff]  ;;  %v188_v45 = vmul.f32 %v1445_v26, %v160_v35  ;;  %v629_v46 = vmul.f32 %v1457_v39, %v609_v42  ;;  %v189_v54 = vmul.f32 %v1453_v34, %v161_v44  ;;  %v890_v39 = vld [vmem:[#allocation2 + $0x15] sm:$0xff]  ;;  %v891_v62 = vld [vmem:[#allocation2 + $0x1d] sm:$0xff]  ;;  %v895_v17 = vpop.permute.xlu0 %894 }
  0xea   :  { %1236 = vmatprep.mubr.msk.bf16.mxu0 %vm147_vm1, %v463_v28  ;;  %1219 = vmatmul.mubr.msk.bf16.vlgmr.msra.gmra.mxu1 %vm147_vm1, %v219_v38  ;;  %v631_v43 = vpack.c.bf16 %v628_v41, %v627_v30  ;;  %v819_v0 = vpack.c.bf16 %v816_v53, %v815_v52  ;;  %v367_v63 = vmul.f32 %v890_v39, %v1449_v29  ;;  %v534_v2 = vld [vmem:[#allocation2 + $0x10] sm:$0xff]  ;;  %v533_v6 = vld [vmem:[#allocation2 + $0x8] sm:$0xff]  ;;  %v536_v29 = vld [vmem:[#allocation2 + $0x20] sm:$0xff] }
  0xeb   :  { %1237 = vmatmul.mubr.msk.bf16.vlgmr.msra.gmra.mxu0 %vm147_vm1, %v464_v33  ;;  %1223 = vmatpush3.bf16.msra.mxu1 %v1436_v21  ;;  %v366_v21 = vmul.f32 %v1490_v37, %v1455_v36  ;;  %v191_v56 = vpack.c.bf16 %v189_v54, %v188_v45  ;;  %v632_v26 = vpack.c.bf16 %v630_v48, %v629_v46  ;;  %v813_v36 = vpop.permute.xlu1 %812  ;;  %v1314_v7 = vld [vmem:[%s1565_s3 + $0x30] sm:$0xff]   ;;  %v535_v9 = vld [vmem:[#allocation2 + $0x18] sm:$0xff]  ;;  %v1315_v13 = vld [vmem:[%s1565_s3 + $0x40] sm:$0xff]  }
  0xec   :  { %1224 = vmatprep.mubr.msk.bf16.mxu1 %vm147_vm1, %v190_v25  ;;  %1248 = vmatprep.mubr.msk.bf16.mxu0 %vm147_vm1, %v631_v43  ;;  %v818_v34 = vmul.f32 %v813_v36, %v798_v59  ;;  %v368_v1 = vmul.f32 %v891_v62, %v1451_v31  ;;  %v537_v8 = vpack.c.bf16 %v534_v2, %v533_v6  ;;  %v704_v15 = vld [vmem:[#allocation2 + $0x23] sm:$0xff] }
  0xed   :  { %1247 = vmatpush3.bf16.msra.mxu0 %v1442_v22  ;;  %1228 = vmatprep.subr.bf16.mxu1 %v1311_v24  ;;  %v365_v22 = vmul.f32 %v1447_v27, %v345_v49  ;;  %v817_v27 = vmul.f32 %v809_v50, %v1474_v60  ;;  %v721_v31 = vmul.f32 %v1472_v58, %v1477_v11  ;;  %v907_v30 = vpop.permute.xlu0 %906  ;;  %v892_v38 = vld [vmem:[#allocation2 + $0x25] sm:$0xff] }
  0xee   :  { %1258 = vmatprep.subr.bf16.mxu0 %v1312_v23  ;;  %v370_v5 = vpack.c.bf16 %v368_v1, %v367_v63  ;;  %v722_v60 = vmul.f32 %v1467_v55, %v160_v35  ;;  %v538_v12 = vpack.c.bf16 %v536_v29, %v535_v9  ;;  %v723_v58 = vmul.f32 %v1470_v57, %v161_v44  ;;  %v1316_v57 = vld [vmem:[%s1567_s5] sm:$0xff]  }
  0xef   :  { %v369_v61 = vpack.c.bf16 %v366_v21, %v365_v22  ;;  %v820_v3 = vpack.c.bf16 %v818_v34, %v817_v27  ;;  %v899_v16 = vpop.permute.xlu1 %898  ;;  %v724_v55 = vmul.f32 %v1480_v19, %v704_v15  ;;  %v909_v18 = vmul.f32 %v895_v17, %v1490_v37 }
  0xf0   :  { %v725_v14 = vpack.c.bf16 %v722_v60, %v721_v31  ;;  %v910_v11 = vmul.f32 %v899_v16, %v890_v39  ;;  %v912_v41 = vmul.f32 %v907_v30, %v892_v38 }
  0xf1   :  { %v726_v20 = vpack.c.bf16 %v724_v55, %v723_v58 }
  0xf2   :  { %1225 = vmatmul.mubr.msk.bf16.vlgmr.msra.gmra.mxu1 %vm147_vm1, %v191_v56  ;;  %v913_v28 = vpack.c.bf16 %v910_v11, %v909_v18 }
  0xf3   :  { %1249 = vmatmul.mubr.msk.bf16.vlgmr.msra.gmra.mxu0 %vm147_vm1, %v632_v26  ;;  %1229 = vmatpush3.bf16.msra.mxu1 %v1311_v24  ;;  %v903_v40 = vpop.permute.xlu1 %902 }
  0xf4   :  { %1230 = vmatprep.mubr.msk.bf16.mxu1 %vm147_vm1, %v369_v61  ;;  %1260 = vmatprep.mubr.msk.bf16.mxu0 %vm147_vm1, %v819_v0  ;;  %v911_v33 = vmul.f32 %v903_v40, %v891_v62 }
  0xf5   :  { %1259 = vmatpush3.bf16.msra.mxu0 %v1312_v23  ;;  %1240 = vmatprep.subr.bf16.mxu1 %v1313_v47 }
  0xf6   :  { %v914_v24 = vpack.c.bf16 %v912_v41, %v911_v33  ;;  %1270 = vmatprep.subr.bf16.mxu0 %v1316_v57 }
  0xfa   :  { %1231 = vmatmul.mubr.msk.bf16.vlgmr.msra.gmra.mxu1 %vm147_vm1, %v370_v5 }
  0xfb   :  { %1261 = vmatmul.mubr.msk.bf16.vlgmr.msra.gmra.mxu0 %vm147_vm1, %v820_v3  ;;  %1241 = vmatpush3.bf16.msra.mxu1 %v1313_v47 }
  0xfc   :  { %1242 = vmatprep.mubr.msk.bf16.mxu1 %vm147_vm1, %v537_v8  ;;  %1252 = vmatprep.subr.bf16.mxu1 %v1314_v7 }
  0xfd   :  { %1271 = vmatpush3.bf16.msra.mxu0 %v1316_v57 }
 0x102   :  { %1243 = vmatmul.mubr.msk.bf16.vlgmr.msra.gmra.mxu1 %vm147_vm1, %v538_v12 }
 0x103   :  { %1253 = vmatpush3.bf16.msra.mxu1 %v1314_v7  ;;  %1254 = vmatprep.mubr.msk.bf16.mxu1 %vm147_vm1, %v725_v14 }
 0x104   :  { %1264 = vmatprep.subr.bf16.mxu1 %v1315_v13 }
 0x10a   :  { %1255 = vmatmul.mubr.msk.bf16.vlgmr.msra.gmra.mxu1 %vm147_vm1, %v726_v20 }
 0x10b   :  { %1265 = vmatpush3.bf16.msra.mxu1 %v1315_v13  ;;  %1266 = vmatprep.mubr.msk.bf16.mxu1 %vm147_vm1, %v913_v28 }
 0x112   :  { %1267 = vmatmul.mubr.msk.bf16.vlgmr.msra.gmra.mxu1 %vm147_vm1, %v914_v24 }
 0x1aa   :  { %v1220_v19 = vpop.f32.mrf.mxu1 }
 0x1ab   :  { %v1238_v23 = vpop.f32.mrf.mxu0 }
 0x1ac   :  { %v269_v25 = vpop.f32.mrf.mxu1 }
 0x1ad   :  { %v514_v35 = vpop.f32.mrf.mxu0 }
 0x1ae   :  { %v1221_v42 = vpop.f32.mrf.mxu1 }
 0x1af   :  { %v1239_v37 = vpop.f32.mrf.mxu0 }
 0x1b0   :  { %v272_v32 = vpop.f32.mrf.mxu1 }
 0x1b1   :  { %v517_v45 = vpop.f32.mrf.mxu0 }
 0x1b2   :  { %v1226_v43 = vpop.f32.mrf.mxu1 }
 0x1b3   :  { %v1250_v49 = vpop.f32.mrf.mxu0  ;;  %v339_v22 = vadd.f32 %v1226_v43, %v1220_v19 }
 0x1b4   :  { %v330_v44 = vpop.f32.mrf.mxu1 }
 0x1b5   :  { %v682_v21 = vpop.f32.mrf.mxu0  ;;  %v331_v54 = vadd.f32 %v330_v44, %v269_v25  ;;  %v1155_v25 = vld [vmem:[%s1568_s4] ss:$0 sm:$0xff] }
 0x1b6   :  { %v1227_v46 = vpop.f32.mrf.mxu1 }
 0x1b7   :  { %v1251_v56 = vpop.f32.mrf.mxu0  ;;  %v342_v59 = vadd.f32 %v1227_v46, %v1221_v42 }
 0x1b8   :  { %v333_v48 = vpop.f32.mrf.mxu1 }
 0x1b9   :  { %v334_v0 = vadd.f32 %v333_v48, %v272_v32  ;;  %v685_v62 = vpop.f32.mrf.mxu0 }
 0x1ba   :  { %v1232_v50 = vpop.f32.mrf.mxu1 }
 0x1bb   :  { %v437_v61 = vadd.f32 %v1232_v50, %v339_v22  ;;  %v1262_v6 = vpop.f32.mrf.mxu0 }
 0x1bc   :  { %v420_v51 = vpop.f32.mrf.mxu1 }
 0x1bd   :  { %v435_v39 = vadd.f32 %v420_v51, %v331_v54  ;;  %v531_v1 = vadd.f32 %v1238_v23, %v437_v61  ;;  %v870_v13 = vpop.f32.mrf.mxu0  ;;  %v145_v54 = vunpack.c.l.bf16 %v1410_v10 }
 0x1be   :  { %v1233_v52 = vpop.f32.mrf.mxu1 }
 0x1bf   :  { %v438_v36 = vadd.f32 %v1233_v52, %v342_v59  ;;  %v529_v63 = vadd.f32 %v514_v35, %v435_v39  ;;  %v1263_v20 = vpop.f32.mrf.mxu0 }
 0x1c0   :  { %v423_v53 = vpop.f32.mrf.mxu1 }
 0x1c1   :  { %v436_v34 = vadd.f32 %v423_v53, %v334_v0  ;;  %v532_v5 = vadd.f32 %v1239_v37, %v438_v36  ;;  %v873_v57 = vpop.f32.mrf.mxu0  ;;  %v1156_v53 = vld [vmem:[%s1569_s6] ss:$0 sm:$0xff]  ;;  %v144_v36 = vunpack.c.h.bf16 %v1385_v4 }
 0x1c2   :  { %v1244_v26 = vpop.f32.mrf.mxu1 }
 0x1c3   :  { %v605_v7 = vadd.f32 %v1244_v26, %v531_v1  ;;  %v530_v31 = vadd.f32 %v517_v45, %v436_v34 }
 0x1c4   :  { %v588_v47 = vpop.f32.mrf.mxu1 }
 0x1c5   :  { %v603_v3 = vadd.f32 %v588_v47, %v529_v63  ;;  %v699_v14 = vadd.f32 %v1250_v49, %v605_v7  ;;  %v146_v47 = vunpack.c.h.bf16 %v1410_v10 }
 0x1c6   :  { %v1245_v27 = vpop.f32.mrf.mxu1 }
 0x1c7   :  { %v606_v29 = vadd.f32 %v1245_v27, %v532_v5  ;;  %v697_v12 = vadd.f32 %v682_v21, %v603_v3 }
 0x1c8   :  { %v591_v2 = vpop.f32.mrf.mxu1 }
 0x1c9   :  { %v604_v9 = vadd.f32 %v591_v2, %v530_v31  ;;  %v700_v17 = vadd.f32 %v1251_v56, %v606_v29  ;;  %v143_v56 = vunpack.c.l.bf16 %v1385_v4 }
 0x1ca   :  { %v1256_v8 = vpop.f32.mrf.mxu1 }
 0x1cb   :  { %v793_v58 = vadd.f32 %v1256_v8, %v699_v14  ;;  %v698_v18 = vadd.f32 %v685_v62, %v604_v9 }
 0x1cc   :  { %v776_v60 = vpop.f32.mrf.mxu1 }
 0x1cd   :  { %v791_v16 = vadd.f32 %v776_v60, %v697_v12  ;;  %v887_v38 = vadd.f32 %v1262_v6, %v793_v58 }
 0x1ce   :  { %v1257_v15 = vpop.f32.mrf.mxu1 }
 0x1cf   :  { %v794_v11 = vadd.f32 %v1257_v15, %v700_v17  ;;  %v885_v30 = vadd.f32 %v870_v13, %v791_v16 }
 0x1d0   :  { %v779_v55 = vpop.f32.mrf.mxu1 }
 0x1d1   :  { %v792_v40 = vadd.f32 %v779_v55, %v698_v18  ;;  %v888_v24 = vadd.f32 %v1263_v20, %v794_v11 }
 0x1d2   :  { %v1268_v28 = vpop.f32.mrf.mxu1 }
 0x1d3   :  { %v981_v19 = vadd.f32 %v1268_v28, %v887_v38  ;;  %v886_v42 = vadd.f32 %v873_v57, %v792_v40 }
 0x1d4   :  { %v964_v33 = vpop.f32.mrf.mxu1 }
 0x1d5   :  { %v979_v41 = vadd.f32 %v964_v33, %v885_v30  ;;  %v992_v45 = vadd.f32 %v1155_v25, %v981_v19 }
 0x1d6   :  { %v1269_v23 = vpop.f32.mrf.mxu1 }
 0x1d7   :  { %v982_v35 = vadd.f32 %v1269_v23, %v888_v24  ;;  %v990_v37 = vadd.f32 %v1155_v25, %v979_v41  ;;  %v996_v51 = vmax.f32 %v992_v45, 0.0 }
 0x1d8   :  { %v967_v32 = vpop.f32.mrf.mxu1 }
 0x1d9   :  { %v993_v43 = vadd.f32 %v1155_v25, %v982_v35  ;;  %v980_v44 = vadd.f32 %v967_v32, %v886_v42  ;;  %v994_v49 = vmax.f32 %v990_v37, 0.0 }
 0x1db   :  { %v991_v46 = vadd.f32 %v1155_v25, %v980_v44  ;;  %v997_v48 = vmax.f32 %v993_v43, 0.0 }
 0x1dd   :  { %v995_v50 = vmax.f32 %v991_v46, 0.0  ;;  %v999_v52 = vpack.c.bf16 %v997_v48, %v996_v51 }
 0x1df   :  { %v998_v21 = vpack.c.bf16 %v995_v50, %v994_v49 }
 0x1e1   :  { %1272 = vmatprep.mubr.msk.bf16.mxu0 %vm147_vm1, %v998_v21 }
 0x1e2   :  { %1273 = vmatmul.mubr.msk.bf16.vlgmr.msra.gmra.mxu0 %vm147_vm1, %v999_v52 }
 0x2a2   :  { %v1274_v22 = vpop.f32.mrf.mxu0 }
 0x2a3   :  { %v1064_v26 = vadd.f32 %v1274_v22, %v1156_v53 }
 0x2a4   :  { %v1055_v59 = vpop.f32.mrf.mxu0 }
 0x2a5   :  { %v1072_v39 = vadd.f32 %v1064_v26, %v145_v54  ;;  %v1056_v61 = vadd.f32 %v1156_v53, %v1055_v59 }
 0x2a6   :  { %v1275_v0 = vpop.f32.mrf.mxu0 }
 0x2a7   :  { %v1076_v62 = vmax.f32 %v1072_v39, 0.0  ;;  %v1070_v27 = vadd.f32 %v1056_v61, %v143_v56  ;;  %v1067_v34 = vadd.f32 %v1275_v0, %v1156_v53 }
 0x2a8   :  { %v1058_v63 = vpop.f32.mrf.mxu0 }
 0x2a9   :  { %v1166_v1 = vpack.c.bf16 %v1076_v62, %v1076_v62  ;;  %v1074_v2 = vmax.f32 %v1070_v27, 0.0  ;;  %v1073_v3 = vadd.f32 %v1067_v34, %v146_v47  ;;  %v1059_v5 = vadd.f32 %v1156_v53, %v1058_v63 }
 0x2ab   :  { %1097 = vst.msk [vmem:[%s1570_s8 + $0x8] sm:$0xf] %vm1094_vm2, %v1166_v1  ;;  %v1164_v6 = vpack.c.bf16 %v1074_v2, %v1074_v2  ;;  %v1077_v7 = vmax.f32 %v1073_v3, 0.0  ;;  %v1071_v8 = vadd.f32 %v1059_v5, %v144_v36 }
 0x2ad   :  { %1095 = vst.msk [vmem:[%s1570_s8] sm:$0xf] %vm1094_vm2, %v1164_v6  ;;  %v1167_v4 = vpack.c.bf16 %v1077_v7, %v1077_v7  ;;  %v1075_v10 = vmax.f32 %v1071_v8, 0.0 }
 0x2af   :  { %1098 = vst.msk [vmem:[%s1570_s8 + $0xc] sm:$0xf] %vm1094_vm2, %v1167_v4  ;;  %v1165_v29 = vpack.c.bf16 %v1075_v10, %v1075_v10 }
 0x2b1   :  { %1096 = vst.msk [vmem:[%s1570_s8 + $0x4] sm:$0xf] %vm1094_vm2, %v1165_v29 }

// kernel: multilabel_cls_forward.11
= control target key start
LH: loop header
LB: loop body
LE: loop exit
PB: predicated region body
PF: predicated region fallthrough
CT: control target
= control target key end

     0   :  { %v286_v1 = vmov 0.0   ;;  %vm287_vm0 = vmmov 0   ;;  %vm39_vm1 = vcmask 261120   ;;  %s352_s0 = inlined_call_operand.vmem [shape: bf16[32,64], index: 0, kind: input, shape index: {}]   ;;  %s353_s1 = inlined_call_operand.vmem [shape: bf16[2,32], index: 1, kind: input, shape index: {}]   ;;  %s354_s2 = inlined_call_operand.vmem [shape: bf16[64,8], index: 2, kind: input, shape index: {}]   ;;  %s355_s3 = inlined_call_operand.vmem [shape: f32[1,8], index: 3, kind: input, shape index: {}]   ;;  %s356_s4 = inlined_call_operand.vmem [shape: f32[2,8], index: 4, kind: input, shape index: {}]   ;;  %s357_s5 = inlined_call_operand.hbm [shape: f32[1,1], index: 5, kind: output, shape index: {}]  }
   0x1   :  { %v254_v0 = vld [vmem:[%s352_s0 + $0x8] sm:$0xff]   ;;  %231 = vmatprep.subr.bf16.mxu0 %v286_v1  ;;  %239 = vmatprep.subr.bf16.mxu1 %v286_v1  ;;  %v255_v2 = vld [vmem:[%s352_s0] sm:$0xff]   ;;  %v256_v3 = vld [vmem:[%s354_s2 + $0x18] sm:$0xff]  }
   0x2   :  { %232 = vmatpush3.bf16.msra.mxu0 %v254_v0  ;;  %235 = vmatprep.mubr.msk.bf16.mxu0 %vm287_vm0, %v286_v1  ;;  %v257_v4 = vld [vmem:[%s354_s2 + $0x10] sm:$0xff]   ;;  %v22_v5 = vld [vmem:[%s353_s1] sm:$0x1] }
   0x3   :  { %233 = vmatprep.subr.bf16.mxu0 %v286_v1  ;;  %247 = vmatprep.mubr.msk.bf16.mxu1 %vm287_vm0, %v286_v1 }
   0x4   :  { %240 = vmatpush3.bf16.msra.mxu1 %v256_v3 }
   0x5   :  { %241 = vmatprep.subr.bf16.mxu1 %v286_v1 }
   0x6   :  { %234 = vmatpush3.bf16.msra.mxu0 %v255_v2 }
   0x7   :  { %10 = vsyncpa [#allocation3], 0  ;;  %v258_v6 = vld [vmem:[%s354_s2 + $0x8] sm:$0xff]   ;;  %v259_v7 = vld [vmem:[%s354_s2] sm:$0xff]   ;;  %vm123_vm2 = vcmask 523264   ;;  %vm167_vm3 = vcmask 58368  }
   0x8   :  { %242 = vmatpush3.bf16.msra.mxu1 %v257_v4  ;;  %v217_v13 = vld [vmem:[%s355_s3] ss:$0 sm:$0xff]  ;;  %vm186_vm4 = vcmask 1041408   ;;  %s288_s7 = smov [#allocation2]   ;;  %vm198_vm5 = vcmask 0  }
   0x9   :  { %236 = vmatmul.mubr.msk.bf16.vlgmr.msra.gmra.mxu0 %vm39_vm1, %v22_v5  ;;  %243 = vmatprep.subr.bf16.mxu1 %v286_v1  ;;  %v180_v26 = vld [vmem:[%s356_s4] sm:$0x3]  ;;  %s206_s8 = sshll.u32 %s288_s7, 4  ;;  %s207_s8 = int_to_ptr.vmem [resolvable:$true] %s206_s8 }
   0xa   :  { %v181_v29 = vsub.f32 0.0, %v180_v26  ;;  %s264_s4 = scalar_lea.vmem %s207_s8, 16  ;;  %s268_s9 = scalar_lea.vmem %s207_s8, 32 }
   0xb   :  { %p265_p0 = scmp.ne.s32.totalorder %s207_s8, %s264_s4  ;;  %p269_p1 = scmp.lt.s32.totalorder %s207_s8, %s207_s8 }
   0xc   :  { %244 = vmatpush3.bf16.msra.mxu1 %v258_v6  ;;  %p270_p2 = scmp.lt.s32.totalorder %s268_s9, %s264_s4 }
   0xd   :  { %245 = vmatprep.subr.bf16.mxu1 %v286_v1 }
   0xe   :  { %p271_p3 = por %p270_p2, %p269_p1 }
  0x10   :  { %246 = vmatpush3.bf16.msra.mxu1 %v259_v7  ;;  %p272_p4 = pnand %p271_p3, %p265_p0 }
  0xc9   :  { %v77_v8 = vpop.f32.mrf.mxu0 }
  0xca   :  { %v83_v9 = vpack.c.bf16 %v77_v8, %v77_v8 }
  0xcb   :  { %v237_v10 = vpop.f32.mrf.mxu0 }
  0xcc   :  { %248 = vmatmul.mubr.msk.bf16.vlgmr.msra.gmra.mxu1 %vm123_vm2, %v83_v9 }
  0xcd   :  { %v80_v11 = vpop.f32.mrf.mxu0 }
  0xcf   :  { %v238_v12 = vpop.f32.mrf.mxu0 }
 0x18c   :  { %v161_v14 = vpop.f32.mrf.mxu1 }
 0x18d   :  { %v162_v15 = vadd.f32 %v217_v13, %v161_v14 }
 0x18e   :  { %v249_v16 = vpop.f32.mrf.mxu1 }
 0x18f   :  { %v168_v17 = vsel %vm167_vm3, %v162_v15, -inf }
 0x190   :  { %169 = vmax.xlane.f32.xlu0 %v168_v17  ;;  %v164_v18 = vpop.f32.mrf.mxu1 }
 0x192   :  { %v250_v19 = vpop.f32.mrf.mxu1 }
 0x219   :  { %v170_v20 = vpop.xlane.xlu0 %169 }
 0x21a   :  { %v171_v21 = vsub.f32 %v162_v15, %v170_v20 }
 0x21c   :  { %v172_v22 = vmul.f32 1.442695, %v171_v21 }
 0x21e   :  { %260 = vpow2.f32 %v172_v22 }
 0x22b   :  { %v261_v23 = vpop.eup %260 }
 0x22c   :  { %v174_v24 = vsel %vm167_vm3, %v261_v23, 0.0 }
 0x22d   :  { %175 = vadd.xlane.f32.xlu0 %v174_v24 }
 0x2b6   :  { %v176_v25 = vpop.xlane.xlu0 %175 }
 0x2b7   :  { %262 = vlog2.f32 %v176_v25 }
 0x2c4   :  { %v263_v27 = vpop.eup %262 }
 0x2c5   :  { %v178_v28 = vmul.f32 0.6931472, %v263_v27 }
 0x2c7   :  { %v179_v30 = vsub.f32 %v171_v21, %v178_v28 }
 0x2c9   :  { %v182_v31 = vmul.f32 %v181_v29, %v179_v30 }
 0x2cb   :  { %v183_v32 = vsel %vm167_vm3, %v182_v31, 0.0 }
 0x2cc   :  { %184 = vadd.xlane.f32.xlu1 %v183_v32 }
 0x355   :  { %v185_v33 = vpop.xlane.xlu1 %184 }
 0x356   :  { %v187_v34 = vsel %vm186_vm4, %v185_v33, 0.0 }
 0x357   :  { %v188_v35 = vrot.slane %v187_v34, 4 }
 0x359   :  { %v189_v36 = vadd.f32 %v188_v35, %v187_v34 }
 0x35b   :  { %v190_v37 = vrot.slane %v189_v36, 2 }
 0x35d   :  { %v191_v38 = vadd.f32 %v190_v37, %v189_v36 }
 0x35f   :  { %v192_v39 = vrot.slane %v191_v38, 1 }
 0x361   :  { %v193_v40 = vadd.f32 %v192_v39, %v191_v38 }
 0x363   :  { %v195_v41 = vmul.f32 0.5, %v193_v40 }
 0x365   :  { %v197_v42 = vmul.f32 0.1, %v195_v41 }
 0x367   :  { %199 = vst.msk [vmem:[#allocation2] sm:$0x1] %vm198_vm5, %v197_v42 }
 0x368   :  { %275 = shalt.err (!%p272_p4)
}
 0x369   :  { %209 = dma.vmem_to_hbm [thread:$0]  %s207_s8, 16, %s357_s5, [#allocation3]  }
 0x36a   :  { %284 = dma.done.wait [#allocation3], 16  }
 0x36b   :  { %285 = vsyncadd [#allocation3], 4294967280 }
 0x36c   :  { %213 = vsyncpa [#allocation3], 1 }

</bundles_post_ra>
